<compile_context>
chip_gen: v5e
topology: v5e:2x2
jax: 0.10.0
libtpu: 0.0.40
codegen_flags: <defaults>
</compile_context>

<pallas_src>
import numpy as np
import jax
import jax.numpy as jnp
from jax import lax
from jax.experimental import pallas as pl
from jax.experimental.pallas import tpu as pltpu

# ----------------------------- configuration -------------------------------
STEPS = 2
FILTER_MULTIPLIER = 16
K = 8
NUM_PRIMITIVES = 8

N = 2
H_IN, W_IN = 16, 16

C_IN = int(FILTER_MULTIPLIER * STEPS * 0.5)          # 16
C_OUT = FILTER_MULTIPLIER                            # 16
CP = C_OUT // K                                      # 2 channels per MixedOp
NUM_BRANCHES = sum(i + 1 for i in range(STEPS))      # 3
BN_EPS = 1e-5

assert CP == 2 and N == 2, "kernel is specialized for CP == 2, N == 2"


def scale_dimension(dim, scale):
    return int((float(dim) - 1.0) * scale + 1.0) if dim % 2 else int(dim * scale)


H_DN = scale_dimension(H_IN, 0.5)    # 8
W_DN = scale_dimension(W_IN, 0.5)    # 8
HW = H_DN * W_DN                     # 64
LANES = N * HW                       # 128 working lanes: [batch0 64px | batch1 64px]
INV_NHW = 1.0 / float(N * H_DN * W_DN)

# conv-op geometry: (name, kernel, dilation)
STAGE1_OPS = [("sep3", 3, 1), ("sep5", 5, 1), ("dil3", 3, 2), ("dil5", 5, 2)]
STAGE2_OPS = [("sep3", 3, 1), ("sep5", 5, 1)]
STAGE1_DW = {"sep3": "sep3_dw1", "sep5": "sep5_dw1", "dil3": "dil3_dw", "dil5": "dil5_dw"}
STAGE1_PW = {"sep3": "sep3_pw1", "sep5": "sep5_pw1", "dil3": "dil3_pw", "dil5": "dil5_pw"}
STAGE2_DW = {"sep3": "sep3_dw2", "sep5": "sep5_dw2"}
STAGE2_PW = {"sep3": "sep3_pw2", "sep5": "sep5_pw2"}

# (name, torch weight shape, kaiming fan_in)
BRANCH_SPEC = [
    ("sep3_dw1", (CP, 1, 3, 3), 9),  ("sep3_pw1", (CP, CP, 1, 1), CP),
    ("sep3_dw2", (CP, 1, 3, 3), 9),  ("sep3_pw2", (CP, CP, 1, 1), CP),
    ("sep5_dw1", (CP, 1, 5, 5), 25), ("sep5_pw1", (CP, CP, 1, 1), CP),
    ("sep5_dw2", (CP, 1, 5, 5), 25), ("sep5_pw2", (CP, CP, 1, 1), CP),
    ("dil3_dw",  (CP, 1, 3, 3), 9),  ("dil3_pw",  (CP, CP, 1, 1), CP),
    ("dil5_dw",  (CP, 1, 5, 5), 25), ("dil5_pw",  (CP, CP, 1, 1), CP),
]


def _union_taps(kd_list):
    taps, seen = [], set()
    for k, dil in kd_list:
        pad = dil * (k - 1) // 2
        for ki in range(k):
            for kj in range(k):
                t = (ki * dil - pad, kj * dil - pad)
                if t not in seen:
                    seen.add(t)
                    taps.append(t)
    return taps


TAPS1 = _union_taps([(k, d) for _, k, d in STAGE1_OPS])      # 41 distinct offsets
TAPS2 = _union_taps([(k, d) for _, k, d in STAGE2_OPS])      # 25 distinct offsets
POOL_TAPS = [(dy, dx) for dy in (-1, 0, 1) for dx in (-1, 0, 1)]


def _shift(dy, dx):
    # lane rotation s such that rolled[l] = x[(l + dy*W + dx) mod LANES]
    return (-(dy * W_DN + dx)) % LANES


SHIFT1 = [_shift(dy, dx) for dy, dx in TAPS1]
SHIFT2 = [_shift(dy, dx) for dy, dx in TAPS2]
PSHIFT = [_shift(dy, dx) for dy, dx in POOL_TAPS]


# --------------------- host-side constant constructors ---------------------
def _bilinear_matrix(in_size, out_size):
    m = np.zeros((out_size, in_size), dtype=np.float32)
    if out_size == 1:
        m[0, 0] = 1.0
        return m
    scale = (in_size - 1) / (out_size - 1)
    for o in range(out_size):
        src = o * scale
        i0 = min(int(np.floor(src)), in_size - 1)
        i1 = min(i0 + 1, in_size - 1)
        w1 = src - i0
        m[o, i0] += 1.0 - w1
        m[o, i1] += w1
    return m


def _resize_matrix_bd():
    # block-diagonal over batch so the resize produces (C_IN, N*HW) in one matmul
    r = np.kron(_bilinear_matrix(H_IN, H_DN), _bilinear_matrix(W_IN, W_DN))  # (64, 256)
    rt = r.T.astype(np.float32)                                              # (256, 64)
    bd = np.zeros((N * H_IN * W_IN, LANES), np.float32)
    for n in range(N):
        bd[n * H_IN * W_IN:(n + 1) * H_IN * W_IN, n * HW:(n + 1) * HW] = rt
    return bd


def _valid_mask(dy, dx):
    # 1.0 where pixel (i+dy, j+dx) is inside the 8x8 image, per lane (both batches)
    m = np.zeros((LANES,), np.float32)
    for n in range(N):
        for i in range(H_DN):
            for j in range(W_DN):
                if 0 <= i + dy < H_DN and 0 <= j + dx < W_DN:
                    m[n * HW + i * W_DN + j] = 1.0
    return m


def _pool_masks():
    return np.stack([_valid_mask(dy, dx) for dy, dx in POOL_TAPS]).astype(np.float32)


def _inv_count():                    # avg_pool_3x3, count_include_pad=False
    inv = np.zeros((1, LANES), np.float32)
    for n in range(N):
        for i in range(H_DN):
            for j in range(W_DN):
                ci = sum(1 for d in (-1, 0, 1) if 0 <= i + d < H_DN)
                cj = sum(1 for d in (-1, 0, 1) if 0 <= j + d < W_DN)
                inv[0, n * HW + i * W_DN + j] = 1.0 / (ci * cj)
    return inv


def _shuffle_mats():
    # channel_shuffle(cat([mix(2ch), passthrough(14ch)]), K=8):
    #   shuffled[m] = pre[src(m)], src(m) = CP*(m%K) + m//K
    p1y = np.zeros((C_OUT, C_OUT), np.float32)   # picks passthrough rows from the state
    p1m = np.zeros((C_OUT, CP), np.float32)      # picks the 2 mixed-op rows
    for m in range(C_OUT):
        src = CP * (m % K) + m // K
        if src < CP:
            p1m[m, src] = 1.0
        else:
            p1y[m, src] = 1.0
    return p1y, p1m


P1Y_NP, P1M_NP = _shuffle_mats()


def _pack_dw(branch_wts, ops, dw_keys, taps):
    """Boundary-masked, sublane-broadcast depthwise weights.

    Row layout: s = (op_index * n_inst + branch) * CP + channel.
    Entry [t, s, l] = dw_weight(op, branch, channel, tap t) * valid(tap t, lane l),
    zero if op does not use tap t.
    """
    n_inst = len(branch_wts)
    rows = len(ops) * n_inst * CP
    out = np.zeros((len(taps), rows, LANES), np.float32)
    for t, (dy, dx) in enumerate(taps):
        vm = _valid_mask(dy, dx)
        for oi, (oname, k, dil) in enumerate(ops):
            pad = dil * (k - 1) // 2
            if (dy + pad) % dil != 0 or (dx + pad) % dil != 0:
                continue
            ki, kj = (dy + pad) // dil, (dx + pad) // dil
            if not (0 <= ki < k and 0 <= kj < k):
                continue
            wname = dw_keys[oname]
            for b in range(n_inst):
                w = branch_wts[b][wname]                     # (CP, 1, k, k)
                for c in range(CP):
                    out[t, (oi * n_inst + b) * CP + c, :] = w[c, 0, ki, kj] * vm
    return out


def _pack_pw(branch_wts, ops, pw_keys):
    """Block-diagonal 1x1-conv matrix: one MXU matmul applies all packed pointwise convs."""
    n_inst = len(branch_wts)
    rows = len(ops) * n_inst * CP
    m = np.zeros((rows, rows), np.float32)
    for oi, (oname, _, _) in enumerate(ops):
        wname = pw_keys[oname]
        for b in range(n_inst):
            w = branch_wts[b][wname]                         # (CP, CP, 1, 1)
            base = (oi * n_inst + b) * CP
            for co in range(CP):
                for ci in range(CP):
                    m[base + co, base + ci] = w[co, ci, 0, 0]
    return m


# ------------------------------- the kernel ---------------------------------
def _down_cell_kernel(alphas_ref, gamma_ref, xc_ref, rt_ref, wpre_ref,
                      w1p_ref, pw1p_ref, w2p_ref, pw2p_ref,
                      w1b2_ref, pw1b2_ref, w2b2_ref, pw2b2_ref,
                      pmask_ref, invcnt_ref, p1y_ref, p1m_ref,
                      asel01s_ref, asel01d_ref, asel2s_ref, asel2d_ref,
                      out_ref):
    f32 = jnp.float32

    def lroll(v, s):
        # out[:, i] = v[:, (i - s) mod LANES]  (static lane rotation)
        if s == 0:
            return v
        return jnp.concatenate([v[:, LANES - s:], v[:, :LANES - s]], axis=1)

    def bn_rows(v):
        # BatchNorm2d(affine=False), batch statistics; one row = one (op, channel)
        s1 = jnp.sum(v, axis=1, keepdims=True)
        s2 = jnp.sum(v * v, axis=1, keepdims=True)
        mu = s1 * INV_NHW
        var = jnp.maximum(s2 * INV_NHW - mu * mu, 0.0)
        return (v - mu) * lax.rsqrt(var + BN_EPS)

    def dw_conv(h, w_ref, shifts):
        # boundary-masked depthwise conv: 4 rotating partial accumulators
        parts = [None, None, None, None]
        for t, s in enumerate(shifts):
            term = w_ref[t] * lroll(h, s)
            i = t & 3
            parts[i] = term if parts[i] is None else parts[i] + term
        acc = parts[0]
        for p in parts[1:]:
            if p is not None:
                acc = acc + p
        return acc

    # ---- preprocess: bilinear resize -> ReLU -> 1x1 conv -> BN ----
    r = jnp.maximum(jnp.dot(xc_ref[...], rt_ref[...], preferred_element_type=f32), 0.0)
    y0 = bn_rows(jnp.dot(wpre_ref[...], r, preferred_element_type=f32))      # (16, 128)

    pmask = pmask_ref[...]          # (9, 128) 3x3-tap validity masks (hoisted)
    inv_cnt = invcnt_ref[...]       # (1, 128)

    def pools(xt):
        # max_pool_3x3 (+BN) and avg_pool_3x3(count_include_pad=False) (+BN), shared rolls
        mp = None
        ap = None
        for t in range(len(POOL_TAPS)):
            rolled = lroll(xt, PSHIFT[t])
            m = pmask[t:t + 1, :]
            cand = jnp.where(m > 0.5, rolled, xt)     # invalid taps fall back to centre
            mp = cand if mp is None else jnp.maximum(mp, cand)
            term = m * rolled
            ap = term if ap is None else ap + term
        ap = ap * inv_cnt
        both = bn_rows(jnp.concatenate([mp, ap], axis=0))   # (4, 128), per-row stats
        return both[:CP, :], both[CP:, :]

    def packed_convs(xt, w1_ref, pw1_ref, w2_ref, pw2_ref, n_inst):
        # sep_conv_3x3/5x5 + dil_conv_3x3/5x5 for n_inst branches, packed on sublanes
        half = 2 * n_inst * CP
        rx = jnp.maximum(xt, 0.0)
        h1 = jnp.concatenate([rx] * (4 * n_inst), axis=0)        # (4*n_inst*CP, 128)
        dw1 = dw_conv(h1, w1_ref, SHIFT1)
        bn1 = bn_rows(jnp.dot(pw1_ref[...], dw1, preferred_element_type=f32))
        # dil convs are done after their (final) BN; sep convs continue to stage 2
        h2 = jnp.maximum(bn1[:half, :], 0.0)
        dw2 = dw_conv(h2, w2_ref, SHIFT2)
        sep_out = bn_rows(jnp.dot(pw2_ref[...], dw2, preferred_element_type=f32))
        dil_out = bn1[half:, :]
        return sep_out, dil_out

    # ---- branches 0 & 1 (shared input: channels 0,1 of state0) ----
    xt01 = y0[:CP, :]
    bnmp, bnap = pools(xt01)
    sep01, dil01 = packed_convs(xt01, w1p_ref, pw1p_ref, w2p_ref, pw2p_ref, 2)
    pool_skip = jnp.concatenate(
        [alphas_ref[0, 1] * bnmp + alphas_ref[0, 2] * bnap + alphas_ref[0, 3] * xt01,
         alphas_ref[1, 1] * bnmp + alphas_ref[1, 2] * bnap + alphas_ref[1, 3] * xt01],
        axis=0)                                                  # (4, 128): rows (b, c)
    a01 = (pool_skip
           + jnp.dot(asel01s_ref[...], sep01, preferred_element_type=f32)
           + jnp.dot(asel01d_ref[...], dil01, preferred_element_type=f32))

    g0 = gamma_ref[0]
    g1 = gamma_ref[1]
    g2 = gamma_ref[2]

    # ---- state1 = gamma0 * channel_shuffle(cat([mix0, state0[2:]])) ----
    py = jnp.dot(p1y_ref[...], y0, preferred_element_type=f32)               # reused for state2
    s1 = g0 * (py + jnp.dot(p1m_ref[...], a01[:CP, :], preferred_element_type=f32))

    # ---- branch 2 (input: channels 0,1 of state1) ----
    xt2 = s1[:CP, :]
    bnmp2, bnap2 = pools(xt2)
    sep2, dil2 = packed_convs(xt2, w1b2_ref, pw1b2_ref, w2b2_ref, pw2b2_ref, 1)
    a2 = (alphas_ref[2, 1] * bnmp2 + alphas_ref[2, 2] * bnap2 + alphas_ref[2, 3] * xt2
          + jnp.dot(asel2s_ref[...], sep2, preferred_element_type=f32)
          + jnp.dot(asel2d_ref[...], dil2, preferred_element_type=f32))

    # ---- state2 = gamma1*shuffle(mix1(state0)) + gamma2*shuffle(mix2(state1)) ----
    s2 = (g1 * (py + jnp.dot(p1m_ref[...], a01[CP:2 * CP, :], preferred_element_type=f32))
          + g2 * (jnp.dot(p1y_ref[...], s1, preferred_element_type=f32)
                  + jnp.dot(p1m_ref[...], a2, preferred_element_type=f32)))

    # ---- lane-dense output: (2*C_OUT, N*HW) = (32, 128) ----
    out_ref[...] = jnp.concatenate([s1, s2], axis=0)


_N_VMEM_IN = 19
_fused_call = pl.pallas_call(
    _down_cell_kernel,
    out_shape=jax.ShapeDtypeStruct((2 * C_OUT, LANES), jnp.float32),
    in_specs=[pl.BlockSpec(memory_space=pltpu.MemorySpace.SMEM),   # alphas (3, 8)
              pl.BlockSpec(memory_space=pltpu.MemorySpace.SMEM)]   # gamma (3,)
             + [pl.BlockSpec(memory_space=pltpu.MemorySpace.VMEM)] * _N_VMEM_IN,
    out_specs=pl.BlockSpec(memory_space=pltpu.MemorySpace.VMEM),
)


# ------------------------------- JAX wrapper ---------------------------------
def down_cell_forward(x, n_alphas, n_gamma, consts):
    # (N, C, H, W) -> (C, N*H*W) so the resize matmul is lane-dense (tiny XLA transpose)
    xc = jnp.transpose(x, (1, 0, 2, 3)).reshape(C_IN, N * H_IN * W_IN)

    def dup2(v):
        return jnp.repeat(v, CP)

    # alpha selection matrices: one matmul applies (alpha_p * op_p) for all packed convs
    asel01_sep = jnp.concatenate([jnp.diag(dup2(n_alphas[0:2, 4])),
                                  jnp.diag(dup2(n_alphas[0:2, 5]))], axis=1)   # (4, 8)
    asel01_dil = jnp.concatenate([jnp.diag(dup2(n_alphas[0:2, 6])),
                                  jnp.diag(dup2(n_alphas[0:2, 7]))], axis=1)   # (4, 8)
    asel2_sep = jnp.concatenate([jnp.diag(dup2(n_alphas[2:3, 4])),
                                 jnp.diag(dup2(n_alphas[2:3, 5]))], axis=1)    # (2, 4)
    asel2_dil = jnp.concatenate([jnp.diag(dup2(n_alphas[2:3, 6])),
                                 jnp.diag(dup2(n_alphas[2:3, 7]))], axis=1)    # (2, 4)

    out = _fused_call(
        n_alphas, n_gamma, xc,
        consts["rt"], consts["w_pre"],
        consts["w1_pair"], consts["pw1_pair"], consts["w2_pair"], consts["pw2_pair"],
        consts["w1_b2"], consts["pw1_b2"], consts["w2_b2"], consts["pw2_b2"],
        consts["pool_mask"], consts["inv_cnt"], consts["p1y"], consts["p1m"],
        asel01_sep, asel01_dil, asel2_sep, asel2_dil)

    # (2*C_OUT, N, H, W) -> (N, 2*C_OUT, H, W): 16 KiB fixup outside the kernel
    return jnp.transpose(out.reshape(2 * C_OUT, N, H_DN, W_DN), (1, 0, 2, 3))


# --------------------------------- main --------------------------------------
if __name__ == "__main__":
    key = jax.random.PRNGKey(0)

    def kaiming(k, shape, fan_in):
        return np.asarray(jax.random.normal(k, shape, dtype=jnp.float32)) * np.sqrt(2.0 / fan_in)

    # preprocess 1x1 conv weight (C_out, C_in)
    key, k_pre = jax.random.split(key)
    w_pre = kaiming(k_pre, (C_OUT, C_IN), C_IN)

    # per-branch MixedOp conv weights
    branch_w = []
    for _ in range(NUM_BRANCHES):
        wd = {}
        for name, shape, fan_in in BRANCH_SPEC:
            key, sub = jax.random.split(key)
            wd[name] = kaiming(sub, shape, fan_in)
        branch_w.append(wd)

    consts = {
        "rt": jnp.asarray(_resize_matrix_bd()),                                 # (512, 128)
        "w_pre": jnp.asarray(w_pre),                                            # (16, 16)
        "w1_pair": jnp.asarray(_pack_dw(branch_w[:2], STAGE1_OPS, STAGE1_DW, TAPS1)),  # (41,16,128)
        "pw1_pair": jnp.asarray(_pack_pw(branch_w[:2], STAGE1_OPS, STAGE1_PW)),        # (16,16)
        "w2_pair": jnp.asarray(_pack_dw(branch_w[:2], STAGE2_OPS, STAGE2_DW, TAPS2)),  # (25,8,128)
        "pw2_pair": jnp.asarray(_pack_pw(branch_w[:2], STAGE2_OPS, STAGE2_PW)),        # (8,8)
        "w1_b2": jnp.asarray(_pack_dw(branch_w[2:], STAGE1_OPS, STAGE1_DW, TAPS1)),    # (41,8,128)
        "pw1_b2": jnp.asarray(_pack_pw(branch_w[2:], STAGE1_OPS, STAGE1_PW)),          # (8,8)
        "w2_b2": jnp.asarray(_pack_dw(branch_w[2:], STAGE2_OPS, STAGE2_DW, TAPS2)),    # (25,4,128)
        "pw2_b2": jnp.asarray(_pack_pw(branch_w[2:], STAGE2_OPS, STAGE2_PW)),          # (4,4)
        "pool_mask": jnp.asarray(_pool_masks()),                                # (9, 128)
        "inv_cnt": jnp.asarray(_inv_count()),                                   # (1, 128)
        "p1y": jnp.asarray(P1Y_NP),                                             # (16, 16)
        "p1m": jnp.asarray(P1M_NP),                                             # (16, 2)
    }

    key, k_a, k_g, k_x = jax.random.split(key, 4)
    n_alphas = jax.nn.softmax(0.1 * jax.random.normal(k_a, (NUM_BRANCHES, NUM_PRIMITIVES)), axis=-1)
    n_gamma = jax.nn.sigmoid(jax.random.normal(k_g, (NUM_BRANCHES,)))
    x = jax.random.normal(k_x, (N, C_IN, H_IN, W_IN), dtype=jnp.float32)

    fwd = jax.jit(down_cell_forward)
    out = jax.block_until_ready(fwd(x, n_alphas, n_gamma, consts))
    assert out.shape == (N, STEPS * C_OUT, H_DN, W_DN), out.shape
    assert bool(jnp.all(jnp.isfinite(out)))
    print("KERNEL_OK")
</pallas_src>

<mosaic_0001>
module attributes {stable_mosaic.version = 11 : i64} {
  func.func @_down_cell_kernel(%arg0: memref<3x8xf32, #tpu.memory_space<smem>>, %arg1: memref<3xf32, #tpu.memory_space<smem>>, %arg2: memref<16x512xf32, #tpu.memory_space<vmem>>, %arg3: memref<512x128xf32, #tpu.memory_space<vmem>>, %arg4: memref<16x16xf32, #tpu.memory_space<vmem>>, %arg5: memref<41x16x128xf32, #tpu.memory_space<vmem>>, %arg6: memref<16x16xf32, #tpu.memory_space<vmem>>, %arg7: memref<25x8x128xf32, #tpu.memory_space<vmem>>, %arg8: memref<8x8xf32, #tpu.memory_space<vmem>>, %arg9: memref<41x8x128xf32, #tpu.memory_space<vmem>>, %arg10: memref<8x8xf32, #tpu.memory_space<vmem>>, %arg11: memref<25x4x128xf32, #tpu.memory_space<vmem>>, %arg12: memref<4x4xf32, #tpu.memory_space<vmem>>, %arg13: memref<9x128xf32, #tpu.memory_space<vmem>>, %arg14: memref<1x128xf32, #tpu.memory_space<vmem>>, %arg15: memref<16x16xf32, #tpu.memory_space<vmem>>, %arg16: memref<16x2xf32, #tpu.memory_space<vmem>>, %arg17: memref<4x8xf32, #tpu.memory_space<vmem>>, %arg18: memref<4x8xf32, #tpu.memory_space<vmem>>, %arg19: memref<2x4xf32, #tpu.memory_space<vmem>>, %arg20: memref<2x4xf32, #tpu.memory_space<vmem>>, %arg21: memref<32x128xf32, #tpu.memory_space<vmem>>) attributes {dimension_semantics = [], scalar_prefetch = 0 : i64, scratch_operands = 0 : i64, tpu.core_type = #tpu.core_type<tc>} {
    %c0 = arith.constant 0 : index
    %c0_0 = arith.constant 0 : index
    %0 = vector.load %arg2[%c0, %c0_0] : memref<16x512xf32, #tpu.memory_space<vmem>>, vector<16x512xf32>
    %c0_1 = arith.constant 0 : index
    %c0_2 = arith.constant 0 : index
    %1 = vector.load %arg3[%c0_1, %c0_2] : memref<512x128xf32, #tpu.memory_space<vmem>>, vector<512x128xf32>
    %cst = arith.constant dense<0.000000e+00> : vector<16x128xf32>
    %2 = tpu.matmul %0, %1, %cst {dimension_numbers = #tpu.dot_dimension_numbers<[1], [0], [0], [1], [0, 0, 1, 1], [], []>} : vector<16x512xf32>, vector<512x128xf32>, vector<16x128xf32> -> vector<16x128xf32>
    %cst_3 = arith.constant 0.000000e+00 : f32
    %3 = vector.broadcast %cst_3 : f32 to vector<16x128xf32>
    %4 = arith.maximumf %2, %3 : vector<16x128xf32>
    %c0_4 = arith.constant 0 : index
    %c0_5 = arith.constant 0 : index
    %5 = vector.load %arg4[%c0_4, %c0_5] : memref<16x16xf32, #tpu.memory_space<vmem>>, vector<16x16xf32>
    %cst_6 = arith.constant dense<0.000000e+00> : vector<16x128xf32>
    %6 = tpu.matmul %5, %4, %cst_6 {dimension_numbers = #tpu.dot_dimension_numbers<[1], [0], [0], [1], [0, 0, 1, 1], [], []>} : vector<16x16xf32>, vector<16x128xf32>, vector<16x128xf32> -> vector<16x128xf32>
    %cst_7 = arith.constant dense<0.000000e+00> : vector<16xf32>
    %7 = vector.multi_reduction <add>, %6, %cst_7 [1] : vector<16x128xf32> to vector<16xf32>
    %8 = vector.shape_cast %7 : vector<16xf32> to vector<16x1xf32>
    %9 = arith.mulf %6, %6 : vector<16x128xf32>
    %cst_8 = arith.constant dense<0.000000e+00> : vector<16xf32>
    %10 = vector.multi_reduction <add>, %9, %cst_8 [1] : vector<16x128xf32> to vector<16xf32>
    %11 = vector.shape_cast %10 : vector<16xf32> to vector<16x1xf32>
    %cst_9 = arith.constant 7.812500e-03 : f32
    %12 = vector.broadcast %cst_9 : f32 to vector<16x1xf32>
    %13 = arith.mulf %8, %12 : vector<16x1xf32>
    %cst_10 = arith.constant 7.812500e-03 : f32
    %14 = vector.broadcast %cst_10 : f32 to vector<16x1xf32>
    %15 = arith.mulf %11, %14 : vector<16x1xf32>
    %16 = arith.mulf %13, %13 : vector<16x1xf32>
    %17 = arith.subf %15, %16 : vector<16x1xf32>
    %cst_11 = arith.constant 0.000000e+00 : f32
    %18 = vector.broadcast %cst_11 : f32 to vector<16x1xf32>
    %19 = arith.maximumf %17, %18 : vector<16x1xf32>
    %20 = vector.broadcast %13 : vector<16x1xf32> to vector<16x128xf32>
    %21 = arith.subf %6, %20 : vector<16x128xf32>
    %cst_12 = arith.constant 9.99999974E-6 : f32
    %22 = vector.broadcast %cst_12 : f32 to vector<16x1xf32>
    %23 = arith.addf %19, %22 : vector<16x1xf32>
    %24 = math.rsqrt %23 : vector<16x1xf32>
    %25 = vector.broadcast %24 : vector<16x1xf32> to vector<16x128xf32>
    %26 = arith.mulf %21, %25 : vector<16x128xf32>
    %c0_13 = arith.constant 0 : index
    %c0_14 = arith.constant 0 : index
    %27 = vector.load %arg13[%c0_13, %c0_14] : memref<9x128xf32, #tpu.memory_space<vmem>>, vector<9x128xf32>
    %c0_15 = arith.constant 0 : index
    %c0_16 = arith.constant 0 : index
    %28 = vector.load %arg14[%c0_15, %c0_16] : memref<1x128xf32, #tpu.memory_space<vmem>>, vector<1x128xf32>
    %29 = vector.extract_strided_slice %26 {offsets = [0, 0], sizes = [2, 128], strides = [1, 1]} : vector<16x128xf32> to vector<2x128xf32>
    %30 = vector.extract_strided_slice %29 {offsets = [0, 119], sizes = [2, 9], strides = [1, 1]} : vector<2x128xf32> to vector<2x9xf32>
    %31 = vector.extract_strided_slice %29 {offsets = [0, 0], sizes = [2, 119], strides = [1, 1]} : vector<2x128xf32> to vector<2x119xf32>
    %32 = tpu.concatenate %30, %31 in 1 : vector<2x9xf32>, vector<2x119xf32> -> vector<2x128xf32>
    %33 = vector.extract_strided_slice %27 {offsets = [0, 0], sizes = [1, 128], strides = [1, 1]} : vector<9x128xf32> to vector<1x128xf32>
    %cst_17 = arith.constant 5.000000e-01 : f32
    %34 = vector.broadcast %cst_17 : f32 to vector<1x128xf32>
    %35 = arith.cmpf ogt, %33, %34 : vector<1x128xf32>
    %36 = vector.shape_cast %35 : vector<1x128xi1> to vector<1x128xi1>
    %37 = vector.broadcast %36 : vector<1x128xi1> to vector<2x128xi1>
    %38 = arith.select %37, %32, %29 : vector<2x128xi1>, vector<2x128xf32>
    %39 = vector.broadcast %33 : vector<1x128xf32> to vector<2x128xf32>
    %40 = arith.mulf %39, %32 : vector<2x128xf32>
    %41 = vector.extract_strided_slice %29 {offsets = [0, 120], sizes = [2, 8], strides = [1, 1]} : vector<2x128xf32> to vector<2x8xf32>
    %42 = vector.extract_strided_slice %29 {offsets = [0, 0], sizes = [2, 120], strides = [1, 1]} : vector<2x128xf32> to vector<2x120xf32>
    %43 = tpu.concatenate %41, %42 in 1 : vector<2x8xf32>, vector<2x120xf32> -> vector<2x128xf32>
    %44 = vector.extract_strided_slice %27 {offsets = [1, 0], sizes = [1, 128], strides = [1, 1]} : vector<9x128xf32> to vector<1x128xf32>
    %cst_18 = arith.constant 5.000000e-01 : f32
    %45 = vector.broadcast %cst_18 : f32 to vector<1x128xf32>
    %46 = arith.cmpf ogt, %44, %45 : vector<1x128xf32>
    %47 = vector.shape_cast %46 : vector<1x128xi1> to vector<1x128xi1>
    %48 = vector.broadcast %47 : vector<1x128xi1> to vector<2x128xi1>
    %49 = arith.select %48, %43, %29 : vector<2x128xi1>, vector<2x128xf32>
    %50 = arith.maximumf %38, %49 : vector<2x128xf32>
    %51 = vector.broadcast %44 : vector<1x128xf32> to vector<2x128xf32>
    %52 = arith.mulf %51, %43 : vector<2x128xf32>
    %53 = arith.addf %40, %52 : vector<2x128xf32>
    %54 = vector.extract_strided_slice %29 {offsets = [0, 121], sizes = [2, 7], strides = [1, 1]} : vector<2x128xf32> to vector<2x7xf32>
    %55 = vector.extract_strided_slice %29 {offsets = [0, 0], sizes = [2, 121], strides = [1, 1]} : vector<2x128xf32> to vector<2x121xf32>
    %56 = tpu.concatenate %54, %55 in 1 : vector<2x7xf32>, vector<2x121xf32> -> vector<2x128xf32>
    %57 = vector.extract_strided_slice %27 {offsets = [2, 0], sizes = [1, 128], strides = [1, 1]} : vector<9x128xf32> to vector<1x128xf32>
    %cst_19 = arith.constant 5.000000e-01 : f32
    %58 = vector.broadcast %cst_19 : f32 to vector<1x128xf32>
    %59 = arith.cmpf ogt, %57, %58 : vector<1x128xf32>
    %60 = vector.shape_cast %59 : vector<1x128xi1> to vector<1x128xi1>
    %61 = vector.broadcast %60 : vector<1x128xi1> to vector<2x128xi1>
    %62 = arith.select %61, %56, %29 : vector<2x128xi1>, vector<2x128xf32>
    %63 = arith.maximumf %50, %62 : vector<2x128xf32>
    %64 = vector.broadcast %57 : vector<1x128xf32> to vector<2x128xf32>
    %65 = arith.mulf %64, %56 : vector<2x128xf32>
    %66 = arith.addf %53, %65 : vector<2x128xf32>
    %67 = vector.extract_strided_slice %29 {offsets = [0, 127], sizes = [2, 1], strides = [1, 1]} : vector<2x128xf32> to vector<2x1xf32>
    %68 = vector.extract_strided_slice %29 {offsets = [0, 0], sizes = [2, 127], strides = [1, 1]} : vector<2x128xf32> to vector<2x127xf32>
    %69 = tpu.concatenate %67, %68 in 1 : vector<2x1xf32>, vector<2x127xf32> -> vector<2x128xf32>
    %70 = vector.extract_strided_slice %27 {offsets = [3, 0], sizes = [1, 128], strides = [1, 1]} : vector<9x128xf32> to vector<1x128xf32>
    %cst_20 = arith.constant 5.000000e-01 : f32
    %71 = vector.broadcast %cst_20 : f32 to vector<1x128xf32>
    %72 = arith.cmpf ogt, %70, %71 : vector<1x128xf32>
    %73 = vector.shape_cast %72 : vector<1x128xi1> to vector<1x128xi1>
    %74 = vector.broadcast %73 : vector<1x128xi1> to vector<2x128xi1>
    %75 = arith.select %74, %69, %29 : vector<2x128xi1>, vector<2x128xf32>
    %76 = arith.maximumf %63, %75 : vector<2x128xf32>
    %77 = vector.broadcast %70 : vector<1x128xf32> to vector<2x128xf32>
    %78 = arith.mulf %77, %69 : vector<2x128xf32>
    %79 = arith.addf %66, %78 : vector<2x128xf32>
    %80 = vector.extract_strided_slice %27 {offsets = [4, 0], sizes = [1, 128], strides = [1, 1]} : vector<9x128xf32> to vector<1x128xf32>
    %cst_21 = arith.constant 5.000000e-01 : f32
    %81 = vector.broadcast %cst_21 : f32 to vector<1x128xf32>
    %82 = arith.cmpf ogt, %80, %81 : vector<1x128xf32>
    %83 = vector.shape_cast %82 : vector<1x128xi1> to vector<1x128xi1>
    %84 = vector.broadcast %83 : vector<1x128xi1> to vector<2x128xi1>
    %85 = arith.select %84, %29, %29 : vector<2x128xi1>, vector<2x128xf32>
    %86 = arith.maximumf %76, %85 : vector<2x128xf32>
    %87 = vector.broadcast %80 : vector<1x128xf32> to vector<2x128xf32>
    %88 = arith.mulf %87, %29 : vector<2x128xf32>
    %89 = arith.addf %79, %88 : vector<2x128xf32>
    %90 = vector.extract_strided_slice %29 {offsets = [0, 1], sizes = [2, 127], strides = [1, 1]} : vector<2x128xf32> to vector<2x127xf32>
    %91 = vector.extract_strided_slice %29 {offsets = [0, 0], sizes = [2, 1], strides = [1, 1]} : vector<2x128xf32> to vector<2x1xf32>
    %92 = tpu.concatenate %90, %91 in 1 : vector<2x127xf32>, vector<2x1xf32> -> vector<2x128xf32>
    %93 = vector.extract_strided_slice %27 {offsets = [5, 0], sizes = [1, 128], strides = [1, 1]} : vector<9x128xf32> to vector<1x128xf32>
    %cst_22 = arith.constant 5.000000e-01 : f32
    %94 = vector.broadcast %cst_22 : f32 to vector<1x128xf32>
    %95 = arith.cmpf ogt, %93, %94 : vector<1x128xf32>
    %96 = vector.shape_cast %95 : vector<1x128xi1> to vector<1x128xi1>
    %97 = vector.broadcast %96 : vector<1x128xi1> to vector<2x128xi1>
    %98 = arith.select %97, %92, %29 : vector<2x128xi1>, vector<2x128xf32>
    %99 = arith.maximumf %86, %98 : vector<2x128xf32>
    %100 = vector.broadcast %93 : vector<1x128xf32> to vector<2x128xf32>
    %101 = arith.mulf %100, %92 : vector<2x128xf32>
    %102 = arith.addf %89, %101 : vector<2x128xf32>
    %103 = vector.extract_strided_slice %29 {offsets = [0, 7], sizes = [2, 121], strides = [1, 1]} : vector<2x128xf32> to vector<2x121xf32>
    %104 = vector.extract_strided_slice %29 {offsets = [0, 0], sizes = [2, 7], strides = [1, 1]} : vector<2x128xf32> to vector<2x7xf32>
    %105 = tpu.concatenate %103, %104 in 1 : vector<2x121xf32>, vector<2x7xf32> -> vector<2x128xf32>
    %106 = vector.extract_strided_slice %27 {offsets = [6, 0], sizes = [1, 128], strides = [1, 1]} : vector<9x128xf32> to vector<1x128xf32>
    %cst_23 = arith.constant 5.000000e-01 : f32
    %107 = vector.broadcast %cst_23 : f32 to vector<1x128xf32>
    %108 = arith.cmpf ogt, %106, %107 : vector<1x128xf32>
    %109 = vector.shape_cast %108 : vector<1x128xi1> to vector<1x128xi1>
    %110 = vector.broadcast %109 : vector<1x128xi1> to vector<2x128xi1>
    %111 = arith.select %110, %105, %29 : vector<2x128xi1>, vector<2x128xf32>
    %112 = arith.maximumf %99, %111 : vector<2x128xf32>
    %113 = vector.broadcast %106 : vector<1x128xf32> to vector<2x128xf32>
    %114 = arith.mulf %113, %105 : vector<2x128xf32>
    %115 = arith.addf %102, %114 : vector<2x128xf32>
    %116 = vector.extract_strided_slice %29 {offsets = [0, 8], sizes = [2, 120], strides = [1, 1]} : vector<2x128xf32> to vector<2x120xf32>
    %117 = vector.extract_strided_slice %29 {offsets = [0, 0], sizes = [2, 8], strides = [1, 1]} : vector<2x128xf32> to vector<2x8xf32>
    %118 = tpu.concatenate %116, %117 in 1 : vector<2x120xf32>, vector<2x8xf32> -> vector<2x128xf32>
    %119 = vector.extract_strided_slice %27 {offsets = [7, 0], sizes = [1, 128], strides = [1, 1]} : vector<9x128xf32> to vector<1x128xf32>
    %cst_24 = arith.constant 5.000000e-01 : f32
    %120 = vector.broadcast %cst_24 : f32 to vector<1x128xf32>
    %121 = arith.cmpf ogt, %119, %120 : vector<1x128xf32>
    %122 = vector.shape_cast %121 : vector<1x128xi1> to vector<1x128xi1>
    %123 = vector.broadcast %122 : vector<1x128xi1> to vector<2x128xi1>
    %124 = arith.select %123, %118, %29 : vector<2x128xi1>, vector<2x128xf32>
    %125 = arith.maximumf %112, %124 : vector<2x128xf32>
    %126 = vector.broadcast %119 : vector<1x128xf32> to vector<2x128xf32>
    %127 = arith.mulf %126, %118 : vector<2x128xf32>
    %128 = arith.addf %115, %127 : vector<2x128xf32>
    %129 = vector.extract_strided_slice %29 {offsets = [0, 9], sizes = [2, 119], strides = [1, 1]} : vector<2x128xf32> to vector<2x119xf32>
    %130 = vector.extract_strided_slice %29 {offsets = [0, 0], sizes = [2, 9], strides = [1, 1]} : vector<2x128xf32> to vector<2x9xf32>
    %131 = tpu.concatenate %129, %130 in 1 : vector<2x119xf32>, vector<2x9xf32> -> vector<2x128xf32>
    %132 = vector.extract_strided_slice %27 {offsets = [8, 0], sizes = [1, 128], strides = [1, 1]} : vector<9x128xf32> to vector<1x128xf32>
    %cst_25 = arith.constant 5.000000e-01 : f32
    %133 = vector.broadcast %cst_25 : f32 to vector<1x128xf32>
    %134 = arith.cmpf ogt, %132, %133 : vector<1x128xf32>
    %135 = vector.shape_cast %134 : vector<1x128xi1> to vector<1x128xi1>
    %136 = vector.broadcast %135 : vector<1x128xi1> to vector<2x128xi1>
    %137 = arith.select %136, %131, %29 : vector<2x128xi1>, vector<2x128xf32>
    %138 = arith.maximumf %125, %137 : vector<2x128xf32>
    %139 = vector.broadcast %132 : vector<1x128xf32> to vector<2x128xf32>
    %140 = arith.mulf %139, %131 : vector<2x128xf32>
    %141 = arith.addf %128, %140 : vector<2x128xf32>
    %142 = vector.broadcast %28 : vector<1x128xf32> to vector<2x128xf32>
    %143 = arith.mulf %141, %142 : vector<2x128xf32>
    %144 = tpu.concatenate %138, %143 in 0 : vector<2x128xf32>, vector<2x128xf32> -> vector<4x128xf32>
    %cst_26 = arith.constant dense<0.000000e+00> : vector<4xf32>
    %145 = vector.multi_reduction <add>, %144, %cst_26 [1] : vector<4x128xf32> to vector<4xf32>
    %146 = vector.shape_cast %145 : vector<4xf32> to vector<4x1xf32>
    %147 = arith.mulf %144, %144 : vector<4x128xf32>
    %cst_27 = arith.constant dense<0.000000e+00> : vector<4xf32>
    %148 = vector.multi_reduction <add>, %147, %cst_27 [1] : vector<4x128xf32> to vector<4xf32>
    %149 = vector.shape_cast %148 : vector<4xf32> to vector<4x1xf32>
    %cst_28 = arith.constant 7.812500e-03 : f32
    %150 = vector.broadcast %cst_28 : f32 to vector<4x1xf32>
    %151 = arith.mulf %146, %150 : vector<4x1xf32>
    %cst_29 = arith.constant 7.812500e-03 : f32
    %152 = vector.broadcast %cst_29 : f32 to vector<4x1xf32>
    %153 = arith.mulf %149, %152 : vector<4x1xf32>
    %154 = arith.mulf %151, %151 : vector<4x1xf32>
    %155 = arith.subf %153, %154 : vector<4x1xf32>
    %cst_30 = arith.constant 0.000000e+00 : f32
    %156 = vector.broadcast %cst_30 : f32 to vector<4x1xf32>
    %157 = arith.maximumf %155, %156 : vector<4x1xf32>
    %158 = vector.broadcast %151 : vector<4x1xf32> to vector<4x128xf32>
    %159 = arith.subf %144, %158 : vector<4x128xf32>
    %cst_31 = arith.constant 9.99999974E-6 : f32
    %160 = vector.broadcast %cst_31 : f32 to vector<4x1xf32>
    %161 = arith.addf %157, %160 : vector<4x1xf32>
    %162 = math.rsqrt %161 : vector<4x1xf32>
    %163 = vector.broadcast %162 : vector<4x1xf32> to vector<4x128xf32>
    %164 = arith.mulf %159, %163 : vector<4x128xf32>
    %165 = vector.extract_strided_slice %164 {offsets = [0, 0], sizes = [2, 128], strides = [1, 1]} : vector<4x128xf32> to vector<2x128xf32>
    %166 = vector.extract_strided_slice %164 {offsets = [2, 0], sizes = [2, 128], strides = [1, 1]} : vector<4x128xf32> to vector<2x128xf32>
    %cst_32 = arith.constant 0.000000e+00 : f32
    %167 = vector.broadcast %cst_32 : f32 to vector<2x128xf32>
    %168 = arith.maximumf %29, %167 : vector<2x128xf32>
    %169 = tpu.concatenate %168, %168, %168, %168, %168, %168, %168, %168 in 0 : vector<2x128xf32>, vector<2x128xf32>, vector<2x128xf32>, vector<2x128xf32>, vector<2x128xf32>, vector<2x128xf32>, vector<2x128xf32>, vector<2x128xf32> -> vector<16x128xf32>
    %c0_33 = arith.constant 0 : index
    %c0_34 = arith.constant 0 : index
    %c0_35 = arith.constant 0 : index
    %170 = vector.load %arg5[%c0_33, %c0_34, %c0_35] : memref<41x16x128xf32, #tpu.memory_space<vmem>>, vector<1x16x128xf32>
    %171 = vector.shape_cast %170 : vector<1x16x128xf32> to vector<16x128xf32>
    %172 = vector.extract_strided_slice %169 {offsets = [0, 119], sizes = [16, 9], strides = [1, 1]} : vector<16x128xf32> to vector<16x9xf32>
    %173 = vector.extract_strided_slice %169 {offsets = [0, 0], sizes = [16, 119], strides = [1, 1]} : vector<16x128xf32> to vector<16x119xf32>
    %174 = tpu.concatenate %172, %173 in 1 : vector<16x9xf32>, vector<16x119xf32> -> vector<16x128xf32>
    %175 = arith.mulf %171, %174 : vector<16x128xf32>
    %c1 = arith.constant 1 : index
    %c0_36 = arith.constant 0 : index
    %c0_37 = arith.constant 0 : index
    %176 = vector.load %arg5[%c1, %c0_36, %c0_37] : memref<41x16x128xf32, #tpu.memory_space<vmem>>, vector<1x16x128xf32>
    %177 = vector.shape_cast %176 : vector<1x16x128xf32> to vector<16x128xf32>
    %178 = vector.extract_strided_slice %169 {offsets = [0, 120], sizes = [16, 8], strides = [1, 1]} : vector<16x128xf32> to vector<16x8xf32>
    %179 = vector.extract_strided_slice %169 {offsets = [0, 0], sizes = [16, 120], strides = [1, 1]} : vector<16x128xf32> to vector<16x120xf32>
    %180 = tpu.concatenate %178, %179 in 1 : vector<16x8xf32>, vector<16x120xf32> -> vector<16x128xf32>
    %181 = arith.mulf %177, %180 : vector<16x128xf32>
    %c2 = arith.constant 2 : index
    %c0_38 = arith.constant 0 : index
    %c0_39 = arith.constant 0 : index
    %182 = vector.load %arg5[%c2, %c0_38, %c0_39] : memref<41x16x128xf32, #tpu.memory_space<vmem>>, vector<1x16x128xf32>
    %183 = vector.shape_cast %182 : vector<1x16x128xf32> to vector<16x128xf32>
    %184 = vector.extract_strided_slice %169 {offsets = [0, 121], sizes = [16, 7], strides = [1, 1]} : vector<16x128xf32> to vector<16x7xf32>
    %185 = vector.extract_strided_slice %169 {offsets = [0, 0], sizes = [16, 121], strides = [1, 1]} : vector<16x128xf32> to vector<16x121xf32>
    %186 = tpu.concatenate %184, %185 in 1 : vector<16x7xf32>, vector<16x121xf32> -> vector<16x128xf32>
    %187 = arith.mulf %183, %186 : vector<16x128xf32>
    %c3 = arith.constant 3 : index
    %c0_40 = arith.constant 0 : index
    %c0_41 = arith.constant 0 : index
    %188 = vector.load %arg5[%c3, %c0_40, %c0_41] : memref<41x16x128xf32, #tpu.memory_space<vmem>>, vector<1x16x128xf32>
    %189 = vector.shape_cast %188 : vector<1x16x128xf32> to vector<16x128xf32>
    %190 = vector.extract_strided_slice %169 {offsets = [0, 127], sizes = [16, 1], strides = [1, 1]} : vector<16x128xf32> to vector<16x1xf32>
    %191 = vector.extract_strided_slice %169 {offsets = [0, 0], sizes = [16, 127], strides = [1, 1]} : vector<16x128xf32> to vector<16x127xf32>
    %192 = tpu.concatenate %190, %191 in 1 : vector<16x1xf32>, vector<16x127xf32> -> vector<16x128xf32>
    %193 = arith.mulf %189, %192 : vector<16x128xf32>
    %c4 = arith.constant 4 : index
    %c0_42 = arith.constant 0 : index
    %c0_43 = arith.constant 0 : index
    %194 = vector.load %arg5[%c4, %c0_42, %c0_43] : memref<41x16x128xf32, #tpu.memory_space<vmem>>, vector<1x16x128xf32>
    %195 = vector.shape_cast %194 : vector<1x16x128xf32> to vector<16x128xf32>
    %196 = arith.mulf %195, %169 : vector<16x128xf32>
    %197 = arith.addf %175, %196 : vector<16x128xf32>
    %c5 = arith.constant 5 : index
    %c0_44 = arith.constant 0 : index
    %c0_45 = arith.constant 0 : index
    %198 = vector.load %arg5[%c5, %c0_44, %c0_45] : memref<41x16x128xf32, #tpu.memory_space<vmem>>, vector<1x16x128xf32>
    %199 = vector.shape_cast %198 : vector<1x16x128xf32> to vector<16x128xf32>
    %200 = vector.extract_strided_slice %169 {offsets = [0, 1], sizes = [16, 127], strides = [1, 1]} : vector<16x128xf32> to vector<16x127xf32>
    %201 = vector.extract_strided_slice %169 {offsets = [0, 0], sizes = [16, 1], strides = [1, 1]} : vector<16x128xf32> to vector<16x1xf32>
    %202 = tpu.concatenate %200, %201 in 1 : vector<16x127xf32>, vector<16x1xf32> -> vector<16x128xf32>
    %203 = arith.mulf %199, %202 : vector<16x128xf32>
    %204 = arith.addf %181, %203 : vector<16x128xf32>
    %c6 = arith.constant 6 : index
    %c0_46 = arith.constant 0 : index
    %c0_47 = arith.constant 0 : index
    %205 = vector.load %arg5[%c6, %c0_46, %c0_47] : memref<41x16x128xf32, #tpu.memory_space<vmem>>, vector<1x16x128xf32>
    %206 = vector.shape_cast %205 : vector<1x16x128xf32> to vector<16x128xf32>
    %207 = vector.extract_strided_slice %169 {offsets = [0, 7], sizes = [16, 121], strides = [1, 1]} : vector<16x128xf32> to vector<16x121xf32>
    %208 = vector.extract_strided_slice %169 {offsets = [0, 0], sizes = [16, 7], strides = [1, 1]} : vector<16x128xf32> to vector<16x7xf32>
    %209 = tpu.concatenate %207, %208 in 1 : vector<16x121xf32>, vector<16x7xf32> -> vector<16x128xf32>
    %210 = arith.mulf %206, %209 : vector<16x128xf32>
    %211 = arith.addf %187, %210 : vector<16x128xf32>
    %c7 = arith.constant 7 : index
    %c0_48 = arith.constant 0 : index
    %c0_49 = arith.constant 0 : index
    %212 = vector.load %arg5[%c7, %c0_48, %c0_49] : memref<41x16x128xf32, #tpu.memory_space<vmem>>, vector<1x16x128xf32>
    %213 = vector.shape_cast %212 : vector<1x16x128xf32> to vector<16x128xf32>
    %214 = vector.extract_strided_slice %169 {offsets = [0, 8], sizes = [16, 120], strides = [1, 1]} : vector<16x128xf32> to vector<16x120xf32>
    %215 = vector.extract_strided_slice %169 {offsets = [0, 0], sizes = [16, 8], strides = [1, 1]} : vector<16x128xf32> to vector<16x8xf32>
    %216 = tpu.concatenate %214, %215 in 1 : vector<16x120xf32>, vector<16x8xf32> -> vector<16x128xf32>
    %217 = arith.mulf %213, %216 : vector<16x128xf32>
    %218 = arith.addf %193, %217 : vector<16x128xf32>
    %c8 = arith.constant 8 : index
    %c0_50 = arith.constant 0 : index
    %c0_51 = arith.constant 0 : index
    %219 = vector.load %arg5[%c8, %c0_50, %c0_51] : memref<41x16x128xf32, #tpu.memory_space<vmem>>, vector<1x16x128xf32>
    %220 = vector.shape_cast %219 : vector<1x16x128xf32> to vector<16x128xf32>
    %221 = vector.extract_strided_slice %169 {offsets = [0, 9], sizes = [16, 119], strides = [1, 1]} : vector<16x128xf32> to vector<16x119xf32>
    %222 = vector.extract_strided_slice %169 {offsets = [0, 0], sizes = [16, 9], strides = [1, 1]} : vector<16x128xf32> to vector<16x9xf32>
    %223 = tpu.concatenate %221, %222 in 1 : vector<16x119xf32>, vector<16x9xf32> -> vector<16x128xf32>
    %224 = arith.mulf %220, %223 : vector<16x128xf32>
    %225 = arith.addf %197, %224 : vector<16x128xf32>
    %c9 = arith.constant 9 : index
    %c0_52 = arith.constant 0 : index
    %c0_53 = arith.constant 0 : index
    %226 = vector.load %arg5[%c9, %c0_52, %c0_53] : memref<41x16x128xf32, #tpu.memory_space<vmem>>, vector<1x16x128xf32>
    %227 = vector.shape_cast %226 : vector<1x16x128xf32> to vector<16x128xf32>
    %228 = vector.extract_strided_slice %169 {offsets = [0, 110], sizes = [16, 18], strides = [1, 1]} : vector<16x128xf32> to vector<16x18xf32>
    %229 = vector.extract_strided_slice %169 {offsets = [0, 0], sizes = [16, 110], strides = [1, 1]} : vector<16x128xf32> to vector<16x110xf32>
    %230 = tpu.concatenate %228, %229 in 1 : vector<16x18xf32>, vector<16x110xf32> -> vector<16x128xf32>
    %231 = arith.mulf %227, %230 : vector<16x128xf32>
    %232 = arith.addf %204, %231 : vector<16x128xf32>
    %c10 = arith.constant 10 : index
    %c0_54 = arith.constant 0 : index
    %c0_55 = arith.constant 0 : index
    %233 = vector.load %arg5[%c10, %c0_54, %c0_55] : memref<41x16x128xf32, #tpu.memory_space<vmem>>, vector<1x16x128xf32>
    %234 = vector.shape_cast %233 : vector<1x16x128xf32> to vector<16x128xf32>
    %235 = vector.extract_strided_slice %169 {offsets = [0, 111], sizes = [16, 17], strides = [1, 1]} : vector<16x128xf32> to vector<16x17xf32>
    %236 = vector.extract_strided_slice %169 {offsets = [0, 0], sizes = [16, 111], strides = [1, 1]} : vector<16x128xf32> to vector<16x111xf32>
    %237 = tpu.concatenate %235, %236 in 1 : vector<16x17xf32>, vector<16x111xf32> -> vector<16x128xf32>
    %238 = arith.mulf %234, %237 : vector<16x128xf32>
    %239 = arith.addf %211, %238 : vector<16x128xf32>
    %c11 = arith.constant 11 : index
    %c0_56 = arith.constant 0 : index
    %c0_57 = arith.constant 0 : index
    %240 = vector.load %arg5[%c11, %c0_56, %c0_57] : memref<41x16x128xf32, #tpu.memory_space<vmem>>, vector<1x16x128xf32>
    %241 = vector.shape_cast %240 : vector<1x16x128xf32> to vector<16x128xf32>
    %242 = vector.extract_strided_slice %169 {offsets = [0, 112], sizes = [16, 16], strides = [1, 1]} : vector<16x128xf32> to vector<16x16xf32>
    %243 = vector.extract_strided_slice %169 {offsets = [0, 0], sizes = [16, 112], strides = [1, 1]} : vector<16x128xf32> to vector<16x112xf32>
    %244 = tpu.concatenate %242, %243 in 1 : vector<16x16xf32>, vector<16x112xf32> -> vector<16x128xf32>
    %245 = arith.mulf %241, %244 : vector<16x128xf32>
    %246 = arith.addf %218, %245 : vector<16x128xf32>
    %c12 = arith.constant 12 : index
    %c0_58 = arith.constant 0 : index
    %c0_59 = arith.constant 0 : index
    %247 = vector.load %arg5[%c12, %c0_58, %c0_59] : memref<41x16x128xf32, #tpu.memory_space<vmem>>, vector<1x16x128xf32>
    %248 = vector.shape_cast %247 : vector<1x16x128xf32> to vector<16x128xf32>
    %249 = vector.extract_strided_slice %169 {offsets = [0, 113], sizes = [16, 15], strides = [1, 1]} : vector<16x128xf32> to vector<16x15xf32>
    %250 = vector.extract_strided_slice %169 {offsets = [0, 0], sizes = [16, 113], strides = [1, 1]} : vector<16x128xf32> to vector<16x113xf32>
    %251 = tpu.concatenate %249, %250 in 1 : vector<16x15xf32>, vector<16x113xf32> -> vector<16x128xf32>
    %252 = arith.mulf %248, %251 : vector<16x128xf32>
    %253 = arith.addf %225, %252 : vector<16x128xf32>
    %c13 = arith.constant 13 : index
    %c0_60 = arith.constant 0 : index
    %c0_61 = arith.constant 0 : index
    %254 = vector.load %arg5[%c13, %c0_60, %c0_61] : memref<41x16x128xf32, #tpu.memory_space<vmem>>, vector<1x16x128xf32>
    %255 = vector.shape_cast %254 : vector<1x16x128xf32> to vector<16x128xf32>
    %256 = vector.extract_strided_slice %169 {offsets = [0, 114], sizes = [16, 14], strides = [1, 1]} : vector<16x128xf32> to vector<16x14xf32>
    %257 = vector.extract_strided_slice %169 {offsets = [0, 0], sizes = [16, 114], strides = [1, 1]} : vector<16x128xf32> to vector<16x114xf32>
    %258 = tpu.concatenate %256, %257 in 1 : vector<16x14xf32>, vector<16x114xf32> -> vector<16x128xf32>
    %259 = arith.mulf %255, %258 : vector<16x128xf32>
    %260 = arith.addf %232, %259 : vector<16x128xf32>
    %c14 = arith.constant 14 : index
    %c0_62 = arith.constant 0 : index
    %c0_63 = arith.constant 0 : index
    %261 = vector.load %arg5[%c14, %c0_62, %c0_63] : memref<41x16x128xf32, #tpu.memory_space<vmem>>, vector<1x16x128xf32>
    %262 = vector.shape_cast %261 : vector<1x16x128xf32> to vector<16x128xf32>
    %263 = vector.extract_strided_slice %169 {offsets = [0, 118], sizes = [16, 10], strides = [1, 1]} : vector<16x128xf32> to vector<16x10xf32>
    %264 = vector.extract_strided_slice %169 {offsets = [0, 0], sizes = [16, 118], strides = [1, 1]} : vector<16x128xf32> to vector<16x118xf32>
    %265 = tpu.concatenate %263, %264 in 1 : vector<16x10xf32>, vector<16x118xf32> -> vector<16x128xf32>
    %266 = arith.mulf %262, %265 : vector<16x128xf32>
    %267 = arith.addf %239, %266 : vector<16x128xf32>
    %c15 = arith.constant 15 : index
    %c0_64 = arith.constant 0 : index
    %c0_65 = arith.constant 0 : index
    %268 = vector.load %arg5[%c15, %c0_64, %c0_65] : memref<41x16x128xf32, #tpu.memory_space<vmem>>, vector<1x16x128xf32>
    %269 = vector.shape_cast %268 : vector<1x16x128xf32> to vector<16x128xf32>
    %270 = vector.extract_strided_slice %169 {offsets = [0, 122], sizes = [16, 6], strides = [1, 1]} : vector<16x128xf32> to vector<16x6xf32>
    %271 = vector.extract_strided_slice %169 {offsets = [0, 0], sizes = [16, 122], strides = [1, 1]} : vector<16x128xf32> to vector<16x122xf32>
    %272 = tpu.concatenate %270, %271 in 1 : vector<16x6xf32>, vector<16x122xf32> -> vector<16x128xf32>
    %273 = arith.mulf %269, %272 : vector<16x128xf32>
    %274 = arith.addf %246, %273 : vector<16x128xf32>
    %c16 = arith.constant 16 : index
    %c0_66 = arith.constant 0 : index
    %c0_67 = arith.constant 0 : index
    %275 = vector.load %arg5[%c16, %c0_66, %c0_67] : memref<41x16x128xf32, #tpu.memory_space<vmem>>, vector<1x16x128xf32>
    %276 = vector.shape_cast %275 : vector<1x16x128xf32> to vector<16x128xf32>
    %277 = vector.extract_strided_slice %169 {offsets = [0, 126], sizes = [16, 2], strides = [1, 1]} : vector<16x128xf32> to vector<16x2xf32>
    %278 = vector.extract_strided_slice %169 {offsets = [0, 0], sizes = [16, 126], strides = [1, 1]} : vector<16x128xf32> to vector<16x126xf32>
    %279 = tpu.concatenate %277, %278 in 1 : vector<16x2xf32>, vector<16x126xf32> -> vector<16x128xf32>
    %280 = arith.mulf %276, %279 : vector<16x128xf32>
    %281 = arith.addf %253, %280 : vector<16x128xf32>
    %c17 = arith.constant 17 : index
    %c0_68 = arith.constant 0 : index
    %c0_69 = arith.constant 0 : index
    %282 = vector.load %arg5[%c17, %c0_68, %c0_69] : memref<41x16x128xf32, #tpu.memory_space<vmem>>, vector<1x16x128xf32>
    %283 = vector.shape_cast %282 : vector<1x16x128xf32> to vector<16x128xf32>
    %284 = vector.extract_strided_slice %169 {offsets = [0, 2], sizes = [16, 126], strides = [1, 1]} : vector<16x128xf32> to vector<16x126xf32>
    %285 = vector.extract_strided_slice %169 {offsets = [0, 0], sizes = [16, 2], strides = [1, 1]} : vector<16x128xf32> to vector<16x2xf32>
    %286 = tpu.concatenate %284, %285 in 1 : vector<16x126xf32>, vector<16x2xf32> -> vector<16x128xf32>
    %287 = arith.mulf %283, %286 : vector<16x128xf32>
    %288 = arith.addf %260, %287 : vector<16x128xf32>
    %c18 = arith.constant 18 : index
    %c0_70 = arith.constant 0 : index
    %c0_71 = arith.constant 0 : index
    %289 = vector.load %arg5[%c18, %c0_70, %c0_71] : memref<41x16x128xf32, #tpu.memory_space<vmem>>, vector<1x16x128xf32>
    %290 = vector.shape_cast %289 : vector<1x16x128xf32> to vector<16x128xf32>
    %291 = vector.extract_strided_slice %169 {offsets = [0, 6], sizes = [16, 122], strides = [1, 1]} : vector<16x128xf32> to vector<16x122xf32>
    %292 = vector.extract_strided_slice %169 {offsets = [0, 0], sizes = [16, 6], strides = [1, 1]} : vector<16x128xf32> to vector<16x6xf32>
    %293 = tpu.concatenate %291, %292 in 1 : vector<16x122xf32>, vector<16x6xf32> -> vector<16x128xf32>
    %294 = arith.mulf %290, %293 : vector<16x128xf32>
    %295 = arith.addf %267, %294 : vector<16x128xf32>
    %c19 = arith.constant 19 : index
    %c0_72 = arith.constant 0 : index
    %c0_73 = arith.constant 0 : index
    %296 = vector.load %arg5[%c19, %c0_72, %c0_73] : memref<41x16x128xf32, #tpu.memory_space<vmem>>, vector<1x16x128xf32>
    %297 = vector.shape_cast %296 : vector<1x16x128xf32> to vector<16x128xf32>
    %298 = vector.extract_strided_slice %169 {offsets = [0, 10], sizes = [16, 118], strides = [1, 1]} : vector<16x128xf32> to vector<16x118xf32>
    %299 = vector.extract_strided_slice %169 {offsets = [0, 0], sizes = [16, 10], strides = [1, 1]} : vector<16x128xf32> to vector<16x10xf32>
    %300 = tpu.concatenate %298, %299 in 1 : vector<16x118xf32>, vector<16x10xf32> -> vector<16x128xf32>
    %301 = arith.mulf %297, %300 : vector<16x128xf32>
    %302 = arith.addf %274, %301 : vector<16x128xf32>
    %c20 = arith.constant 20 : index
    %c0_74 = arith.constant 0 : index
    %c0_75 = arith.constant 0 : index
    %303 = vector.load %arg5[%c20, %c0_74, %c0_75] : memref<41x16x128xf32, #tpu.memory_space<vmem>>, vector<1x16x128xf32>
    %304 = vector.shape_cast %303 : vector<1x16x128xf32> to vector<16x128xf32>
    %305 = vector.extract_strided_slice %169 {offsets = [0, 14], sizes = [16, 114], strides = [1, 1]} : vector<16x128xf32> to vector<16x114xf32>
    %306 = vector.extract_strided_slice %169 {offsets = [0, 0], sizes = [16, 14], strides = [1, 1]} : vector<16x128xf32> to vector<16x14xf32>
    %307 = tpu.concatenate %305, %306 in 1 : vector<16x114xf32>, vector<16x14xf32> -> vector<16x128xf32>
    %308 = arith.mulf %304, %307 : vector<16x128xf32>
    %309 = arith.addf %281, %308 : vector<16x128xf32>
    %c21 = arith.constant 21 : index
    %c0_76 = arith.constant 0 : index
    %c0_77 = arith.constant 0 : index
    %310 = vector.load %arg5[%c21, %c0_76, %c0_77] : memref<41x16x128xf32, #tpu.memory_space<vmem>>, vector<1x16x128xf32>
    %311 = vector.shape_cast %310 : vector<1x16x128xf32> to vector<16x128xf32>
    %312 = vector.extract_strided_slice %169 {offsets = [0, 15], sizes = [16, 113], strides = [1, 1]} : vector<16x128xf32> to vector<16x113xf32>
    %313 = vector.extract_strided_slice %169 {offsets = [0, 0], sizes = [16, 15], strides = [1, 1]} : vector<16x128xf32> to vector<16x15xf32>
    %314 = tpu.concatenate %312, %313 in 1 : vector<16x113xf32>, vector<16x15xf32> -> vector<16x128xf32>
    %315 = arith.mulf %311, %314 : vector<16x128xf32>
    %316 = arith.addf %288, %315 : vector<16x128xf32>
    %c22 = arith.constant 22 : index
    %c0_78 = arith.constant 0 : index
    %c0_79 = arith.constant 0 : index
    %317 = vector.load %arg5[%c22, %c0_78, %c0_79] : memref<41x16x128xf32, #tpu.memory_space<vmem>>, vector<1x16x128xf32>
    %318 = vector.shape_cast %317 : vector<1x16x128xf32> to vector<16x128xf32>
    %319 = vector.extract_strided_slice %169 {offsets = [0, 16], sizes = [16, 112], strides = [1, 1]} : vector<16x128xf32> to vector<16x112xf32>
    %320 = vector.extract_strided_slice %169 {offsets = [0, 0], sizes = [16, 16], strides = [1, 1]} : vector<16x128xf32> to vector<16x16xf32>
    %321 = tpu.concatenate %319, %320 in 1 : vector<16x112xf32>, vector<16x16xf32> -> vector<16x128xf32>
    %322 = arith.mulf %318, %321 : vector<16x128xf32>
    %323 = arith.addf %295, %322 : vector<16x128xf32>
    %c23 = arith.constant 23 : index
    %c0_80 = arith.constant 0 : index
    %c0_81 = arith.constant 0 : index
    %324 = vector.load %arg5[%c23, %c0_80, %c0_81] : memref<41x16x128xf32, #tpu.memory_space<vmem>>, vector<1x16x128xf32>
    %325 = vector.shape_cast %324 : vector<1x16x128xf32> to vector<16x128xf32>
    %326 = vector.extract_strided_slice %169 {offsets = [0, 17], sizes = [16, 111], strides = [1, 1]} : vector<16x128xf32> to vector<16x111xf32>
    %327 = vector.extract_strided_slice %169 {offsets = [0, 0], sizes = [16, 17], strides = [1, 1]} : vector<16x128xf32> to vector<16x17xf32>
    %328 = tpu.concatenate %326, %327 in 1 : vector<16x111xf32>, vector<16x17xf32> -> vector<16x128xf32>
    %329 = arith.mulf %325, %328 : vector<16x128xf32>
    %330 = arith.addf %302, %329 : vector<16x128xf32>
    %c24 = arith.constant 24 : index
    %c0_82 = arith.constant 0 : index
    %c0_83 = arith.constant 0 : index
    %331 = vector.load %arg5[%c24, %c0_82, %c0_83] : memref<41x16x128xf32, #tpu.memory_space<vmem>>, vector<1x16x128xf32>
    %332 = vector.shape_cast %331 : vector<1x16x128xf32> to vector<16x128xf32>
    %333 = vector.extract_strided_slice %169 {offsets = [0, 18], sizes = [16, 110], strides = [1, 1]} : vector<16x128xf32> to vector<16x110xf32>
    %334 = vector.extract_strided_slice %169 {offsets = [0, 0], sizes = [16, 18], strides = [1, 1]} : vector<16x128xf32> to vector<16x18xf32>
    %335 = tpu.concatenate %333, %334 in 1 : vector<16x110xf32>, vector<16x18xf32> -> vector<16x128xf32>
    %336 = arith.mulf %332, %335 : vector<16x128xf32>
    %337 = arith.addf %309, %336 : vector<16x128xf32>
    %c25 = arith.constant 25 : index
    %c0_84 = arith.constant 0 : index
    %c0_85 = arith.constant 0 : index
    %338 = vector.load %arg5[%c25, %c0_84, %c0_85] : memref<41x16x128xf32, #tpu.memory_space<vmem>>, vector<1x16x128xf32>
    %339 = vector.shape_cast %338 : vector<1x16x128xf32> to vector<16x128xf32>
    %340 = vector.extract_strided_slice %169 {offsets = [0, 92], sizes = [16, 36], strides = [1, 1]} : vector<16x128xf32> to vector<16x36xf32>
    %341 = vector.extract_strided_slice %169 {offsets = [0, 0], sizes = [16, 92], strides = [1, 1]} : vector<16x128xf32> to vector<16x92xf32>
    %342 = tpu.concatenate %340, %341 in 1 : vector<16x36xf32>, vector<16x92xf32> -> vector<16x128xf32>
    %343 = arith.mulf %339, %342 : vector<16x128xf32>
    %344 = arith.addf %316, %343 : vector<16x128xf32>
    %c26 = arith.constant 26 : index
    %c0_86 = arith.constant 0 : index
    %c0_87 = arith.constant 0 : index
    %345 = vector.load %arg5[%c26, %c0_86, %c0_87] : memref<41x16x128xf32, #tpu.memory_space<vmem>>, vector<1x16x128xf32>
    %346 = vector.shape_cast %345 : vector<1x16x128xf32> to vector<16x128xf32>
    %347 = vector.extract_strided_slice %169 {offsets = [0, 94], sizes = [16, 34], strides = [1, 1]} : vector<16x128xf32> to vector<16x34xf32>
    %348 = vector.extract_strided_slice %169 {offsets = [0, 0], sizes = [16, 94], strides = [1, 1]} : vector<16x128xf32> to vector<16x94xf32>
    %349 = tpu.concatenate %347, %348 in 1 : vector<16x34xf32>, vector<16x94xf32> -> vector<16x128xf32>
    %350 = arith.mulf %346, %349 : vector<16x128xf32>
    %351 = arith.addf %323, %350 : vector<16x128xf32>
    %c27 = arith.constant 27 : index
    %c0_88 = arith.constant 0 : index
    %c0_89 = arith.constant 0 : index
    %352 = vector.load %arg5[%c27, %c0_88, %c0_89] : memref<41x16x128xf32, #tpu.memory_space<vmem>>, vector<1x16x128xf32>
    %353 = vector.shape_cast %352 : vector<1x16x128xf32> to vector<16x128xf32>
    %354 = vector.extract_strided_slice %169 {offsets = [0, 96], sizes = [16, 32], strides = [1, 1]} : vector<16x128xf32> to vector<16x32xf32>
    %355 = vector.extract_strided_slice %169 {offsets = [0, 0], sizes = [16, 96], strides = [1, 1]} : vector<16x128xf32> to vector<16x96xf32>
    %356 = tpu.concatenate %354, %355 in 1 : vector<16x32xf32>, vector<16x96xf32> -> vector<16x128xf32>
    %357 = arith.mulf %353, %356 : vector<16x128xf32>
    %358 = arith.addf %330, %357 : vector<16x128xf32>
    %c28 = arith.constant 28 : index
    %c0_90 = arith.constant 0 : index
    %c0_91 = arith.constant 0 : index
    %359 = vector.load %arg5[%c28, %c0_90, %c0_91] : memref<41x16x128xf32, #tpu.memory_space<vmem>>, vector<1x16x128xf32>
    %360 = vector.shape_cast %359 : vector<1x16x128xf32> to vector<16x128xf32>
    %361 = vector.extract_strided_slice %169 {offsets = [0, 98], sizes = [16, 30], strides = [1, 1]} : vector<16x128xf32> to vector<16x30xf32>
    %362 = vector.extract_strided_slice %169 {offsets = [0, 0], sizes = [16, 98], strides = [1, 1]} : vector<16x128xf32> to vector<16x98xf32>
    %363 = tpu.concatenate %361, %362 in 1 : vector<16x30xf32>, vector<16x98xf32> -> vector<16x128xf32>
    %364 = arith.mulf %360, %363 : vector<16x128xf32>
    %365 = arith.addf %337, %364 : vector<16x128xf32>
    %c29 = arith.constant 29 : index
    %c0_92 = arith.constant 0 : index
    %c0_93 = arith.constant 0 : index
    %366 = vector.load %arg5[%c29, %c0_92, %c0_93] : memref<41x16x128xf32, #tpu.memory_space<vmem>>, vector<1x16x128xf32>
    %367 = vector.shape_cast %366 : vector<1x16x128xf32> to vector<16x128xf32>
    %368 = vector.extract_strided_slice %169 {offsets = [0, 100], sizes = [16, 28], strides = [1, 1]} : vector<16x128xf32> to vector<16x28xf32>
    %369 = vector.extract_strided_slice %169 {offsets = [0, 0], sizes = [16, 100], strides = [1, 1]} : vector<16x128xf32> to vector<16x100xf32>
    %370 = tpu.concatenate %368, %369 in 1 : vector<16x28xf32>, vector<16x100xf32> -> vector<16x128xf32>
    %371 = arith.mulf %367, %370 : vector<16x128xf32>
    %372 = arith.addf %344, %371 : vector<16x128xf32>
    %c30 = arith.constant 30 : index
    %c0_94 = arith.constant 0 : index
    %c0_95 = arith.constant 0 : index
    %373 = vector.load %arg5[%c30, %c0_94, %c0_95] : memref<41x16x128xf32, #tpu.memory_space<vmem>>, vector<1x16x128xf32>
    %374 = vector.shape_cast %373 : vector<1x16x128xf32> to vector<16x128xf32>
    %375 = vector.extract_strided_slice %169 {offsets = [0, 108], sizes = [16, 20], strides = [1, 1]} : vector<16x128xf32> to vector<16x20xf32>
    %376 = vector.extract_strided_slice %169 {offsets = [0, 0], sizes = [16, 108], strides = [1, 1]} : vector<16x128xf32> to vector<16x108xf32>
    %377 = tpu.concatenate %375, %376 in 1 : vector<16x20xf32>, vector<16x108xf32> -> vector<16x128xf32>
    %378 = arith.mulf %374, %377 : vector<16x128xf32>
    %379 = arith.addf %351, %378 : vector<16x128xf32>
    %c31 = arith.constant 31 : index
    %c0_96 = arith.constant 0 : index
    %c0_97 = arith.constant 0 : index
    %380 = vector.load %arg5[%c31, %c0_96, %c0_97] : memref<41x16x128xf32, #tpu.memory_space<vmem>>, vector<1x16x128xf32>
    %381 = vector.shape_cast %380 : vector<1x16x128xf32> to vector<16x128xf32>
    %382 = vector.extract_strided_slice %169 {offsets = [0, 116], sizes = [16, 12], strides = [1, 1]} : vector<16x128xf32> to vector<16x12xf32>
    %383 = vector.extract_strided_slice %169 {offsets = [0, 0], sizes = [16, 116], strides = [1, 1]} : vector<16x128xf32> to vector<16x116xf32>
    %384 = tpu.concatenate %382, %383 in 1 : vector<16x12xf32>, vector<16x116xf32> -> vector<16x128xf32>
    %385 = arith.mulf %381, %384 : vector<16x128xf32>
    %386 = arith.addf %358, %385 : vector<16x128xf32>
    %c32 = arith.constant 32 : index
    %c0_98 = arith.constant 0 : index
    %c0_99 = arith.constant 0 : index
    %387 = vector.load %arg5[%c32, %c0_98, %c0_99] : memref<41x16x128xf32, #tpu.memory_space<vmem>>, vector<1x16x128xf32>
    %388 = vector.shape_cast %387 : vector<1x16x128xf32> to vector<16x128xf32>
    %389 = vector.extract_strided_slice %169 {offsets = [0, 124], sizes = [16, 4], strides = [1, 1]} : vector<16x128xf32> to vector<16x4xf32>
    %390 = vector.extract_strided_slice %169 {offsets = [0, 0], sizes = [16, 124], strides = [1, 1]} : vector<16x128xf32> to vector<16x124xf32>
    %391 = tpu.concatenate %389, %390 in 1 : vector<16x4xf32>, vector<16x124xf32> -> vector<16x128xf32>
    %392 = arith.mulf %388, %391 : vector<16x128xf32>
    %393 = arith.addf %365, %392 : vector<16x128xf32>
    %c33 = arith.constant 33 : index
    %c0_100 = arith.constant 0 : index
    %c0_101 = arith.constant 0 : index
    %394 = vector.load %arg5[%c33, %c0_100, %c0_101] : memref<41x16x128xf32, #tpu.memory_space<vmem>>, vector<1x16x128xf32>
    %395 = vector.shape_cast %394 : vector<1x16x128xf32> to vector<16x128xf32>
    %396 = vector.extract_strided_slice %169 {offsets = [0, 4], sizes = [16, 124], strides = [1, 1]} : vector<16x128xf32> to vector<16x124xf32>
    %397 = vector.extract_strided_slice %169 {offsets = [0, 0], sizes = [16, 4], strides = [1, 1]} : vector<16x128xf32> to vector<16x4xf32>
    %398 = tpu.concatenate %396, %397 in 1 : vector<16x124xf32>, vector<16x4xf32> -> vector<16x128xf32>
    %399 = arith.mulf %395, %398 : vector<16x128xf32>
    %400 = arith.addf %372, %399 : vector<16x128xf32>
    %c34 = arith.constant 34 : index
    %c0_102 = arith.constant 0 : index
    %c0_103 = arith.constant 0 : index
    %401 = vector.load %arg5[%c34, %c0_102, %c0_103] : memref<41x16x128xf32, #tpu.memory_space<vmem>>, vector<1x16x128xf32>
    %402 = vector.shape_cast %401 : vector<1x16x128xf32> to vector<16x128xf32>
    %403 = vector.extract_strided_slice %169 {offsets = [0, 12], sizes = [16, 116], strides = [1, 1]} : vector<16x128xf32> to vector<16x116xf32>
    %404 = vector.extract_strided_slice %169 {offsets = [0, 0], sizes = [16, 12], strides = [1, 1]} : vector<16x128xf32> to vector<16x12xf32>
    %405 = tpu.concatenate %403, %404 in 1 : vector<16x116xf32>, vector<16x12xf32> -> vector<16x128xf32>
    %406 = arith.mulf %402, %405 : vector<16x128xf32>
    %407 = arith.addf %379, %406 : vector<16x128xf32>
    %c35 = arith.constant 35 : index
    %c0_104 = arith.constant 0 : index
    %c0_105 = arith.constant 0 : index
    %408 = vector.load %arg5[%c35, %c0_104, %c0_105] : memref<41x16x128xf32, #tpu.memory_space<vmem>>, vector<1x16x128xf32>
    %409 = vector.shape_cast %408 : vector<1x16x128xf32> to vector<16x128xf32>
    %410 = vector.extract_strided_slice %169 {offsets = [0, 20], sizes = [16, 108], strides = [1, 1]} : vector<16x128xf32> to vector<16x108xf32>
    %411 = vector.extract_strided_slice %169 {offsets = [0, 0], sizes = [16, 20], strides = [1, 1]} : vector<16x128xf32> to vector<16x20xf32>
    %412 = tpu.concatenate %410, %411 in 1 : vector<16x108xf32>, vector<16x20xf32> -> vector<16x128xf32>
    %413 = arith.mulf %409, %412 : vector<16x128xf32>
    %414 = arith.addf %386, %413 : vector<16x128xf32>
    %c36 = arith.constant 36 : index
    %c0_106 = arith.constant 0 : index
    %c0_107 = arith.constant 0 : index
    %415 = vector.load %arg5[%c36, %c0_106, %c0_107] : memref<41x16x128xf32, #tpu.memory_space<vmem>>, vector<1x16x128xf32>
    %416 = vector.shape_cast %415 : vector<1x16x128xf32> to vector<16x128xf32>
    %417 = vector.extract_strided_slice %169 {offsets = [0, 28], sizes = [16, 100], strides = [1, 1]} : vector<16x128xf32> to vector<16x100xf32>
    %418 = vector.extract_strided_slice %169 {offsets = [0, 0], sizes = [16, 28], strides = [1, 1]} : vector<16x128xf32> to vector<16x28xf32>
    %419 = tpu.concatenate %417, %418 in 1 : vector<16x100xf32>, vector<16x28xf32> -> vector<16x128xf32>
    %420 = arith.mulf %416, %419 : vector<16x128xf32>
    %421 = arith.addf %393, %420 : vector<16x128xf32>
    %c37 = arith.constant 37 : index
    %c0_108 = arith.constant 0 : index
    %c0_109 = arith.constant 0 : index
    %422 = vector.load %arg5[%c37, %c0_108, %c0_109] : memref<41x16x128xf32, #tpu.memory_space<vmem>>, vector<1x16x128xf32>
    %423 = vector.shape_cast %422 : vector<1x16x128xf32> to vector<16x128xf32>
    %424 = vector.extract_strided_slice %169 {offsets = [0, 30], sizes = [16, 98], strides = [1, 1]} : vector<16x128xf32> to vector<16x98xf32>
    %425 = vector.extract_strided_slice %169 {offsets = [0, 0], sizes = [16, 30], strides = [1, 1]} : vector<16x128xf32> to vector<16x30xf32>
    %426 = tpu.concatenate %424, %425 in 1 : vector<16x98xf32>, vector<16x30xf32> -> vector<16x128xf32>
    %427 = arith.mulf %423, %426 : vector<16x128xf32>
    %428 = arith.addf %400, %427 : vector<16x128xf32>
    %c38 = arith.constant 38 : index
    %c0_110 = arith.constant 0 : index
    %c0_111 = arith.constant 0 : index
    %429 = vector.load %arg5[%c38, %c0_110, %c0_111] : memref<41x16x128xf32, #tpu.memory_space<vmem>>, vector<1x16x128xf32>
    %430 = vector.shape_cast %429 : vector<1x16x128xf32> to vector<16x128xf32>
    %431 = vector.extract_strided_slice %169 {offsets = [0, 32], sizes = [16, 96], strides = [1, 1]} : vector<16x128xf32> to vector<16x96xf32>
    %432 = vector.extract_strided_slice %169 {offsets = [0, 0], sizes = [16, 32], strides = [1, 1]} : vector<16x128xf32> to vector<16x32xf32>
    %433 = tpu.concatenate %431, %432 in 1 : vector<16x96xf32>, vector<16x32xf32> -> vector<16x128xf32>
    %434 = arith.mulf %430, %433 : vector<16x128xf32>
    %435 = arith.addf %407, %434 : vector<16x128xf32>
    %c39 = arith.constant 39 : index
    %c0_112 = arith.constant 0 : index
    %c0_113 = arith.constant 0 : index
    %436 = vector.load %arg5[%c39, %c0_112, %c0_113] : memref<41x16x128xf32, #tpu.memory_space<vmem>>, vector<1x16x128xf32>
    %437 = vector.shape_cast %436 : vector<1x16x128xf32> to vector<16x128xf32>
    %438 = vector.extract_strided_slice %169 {offsets = [0, 34], sizes = [16, 94], strides = [1, 1]} : vector<16x128xf32> to vector<16x94xf32>
    %439 = vector.extract_strided_slice %169 {offsets = [0, 0], sizes = [16, 34], strides = [1, 1]} : vector<16x128xf32> to vector<16x34xf32>
    %440 = tpu.concatenate %438, %439 in 1 : vector<16x94xf32>, vector<16x34xf32> -> vector<16x128xf32>
    %441 = arith.mulf %437, %440 : vector<16x128xf32>
    %442 = arith.addf %414, %441 : vector<16x128xf32>
    %c40 = arith.constant 40 : index
    %c0_114 = arith.constant 0 : index
    %c0_115 = arith.constant 0 : index
    %443 = vector.load %arg5[%c40, %c0_114, %c0_115] : memref<41x16x128xf32, #tpu.memory_space<vmem>>, vector<1x16x128xf32>
    %444 = vector.shape_cast %443 : vector<1x16x128xf32> to vector<16x128xf32>
    %445 = vector.extract_strided_slice %169 {offsets = [0, 36], sizes = [16, 92], strides = [1, 1]} : vector<16x128xf32> to vector<16x92xf32>
    %446 = vector.extract_strided_slice %169 {offsets = [0, 0], sizes = [16, 36], strides = [1, 1]} : vector<16x128xf32> to vector<16x36xf32>
    %447 = tpu.concatenate %445, %446 in 1 : vector<16x92xf32>, vector<16x36xf32> -> vector<16x128xf32>
    %448 = arith.mulf %444, %447 : vector<16x128xf32>
    %449 = arith.addf %421, %448 : vector<16x128xf32>
    %450 = arith.addf %449, %428 : vector<16x128xf32>
    %451 = arith.addf %450, %435 : vector<16x128xf32>
    %452 = arith.addf %451, %442 : vector<16x128xf32>
    %c0_116 = arith.constant 0 : index
    %c0_117 = arith.constant 0 : index
    %453 = vector.load %arg6[%c0_116, %c0_117] : memref<16x16xf32, #tpu.memory_space<vmem>>, vector<16x16xf32>
    %cst_118 = arith.constant dense<0.000000e+00> : vector<16x128xf32>
    %454 = tpu.matmul %453, %452, %cst_118 {dimension_numbers = #tpu.dot_dimension_numbers<[1], [0], [0], [1], [0, 0, 1, 1], [], []>} : vector<16x16xf32>, vector<16x128xf32>, vector<16x128xf32> -> vector<16x128xf32>
    %cst_119 = arith.constant dense<0.000000e+00> : vector<16xf32>
    %455 = vector.multi_reduction <add>, %454, %cst_119 [1] : vector<16x128xf32> to vector<16xf32>
    %456 = vector.shape_cast %455 : vector<16xf32> to vector<16x1xf32>
    %457 = arith.mulf %454, %454 : vector<16x128xf32>
    %cst_120 = arith.constant dense<0.000000e+00> : vector<16xf32>
    %458 = vector.multi_reduction <add>, %457, %cst_120 [1] : vector<16x128xf32> to vector<16xf32>
    %459 = vector.shape_cast %458 : vector<16xf32> to vector<16x1xf32>
    %cst_121 = arith.constant 7.812500e-03 : f32
    %460 = vector.broadcast %cst_121 : f32 to vector<16x1xf32>
    %461 = arith.mulf %456, %460 : vector<16x1xf32>
    %cst_122 = arith.constant 7.812500e-03 : f32
    %462 = vector.broadcast %cst_122 : f32 to vector<16x1xf32>
    %463 = arith.mulf %459, %462 : vector<16x1xf32>
    %464 = arith.mulf %461, %461 : vector<16x1xf32>
    %465 = arith.subf %463, %464 : vector<16x1xf32>
    %cst_123 = arith.constant 0.000000e+00 : f32
    %466 = vector.broadcast %cst_123 : f32 to vector<16x1xf32>
    %467 = arith.maximumf %465, %466 : vector<16x1xf32>
    %468 = vector.broadcast %461 : vector<16x1xf32> to vector<16x128xf32>
    %469 = arith.subf %454, %468 : vector<16x128xf32>
    %cst_124 = arith.constant 9.99999974E-6 : f32
    %470 = vector.broadcast %cst_124 : f32 to vector<16x1xf32>
    %471 = arith.addf %467, %470 : vector<16x1xf32>
    %472 = math.rsqrt %471 : vector<16x1xf32>
    %473 = vector.broadcast %472 : vector<16x1xf32> to vector<16x128xf32>
    %474 = arith.mulf %469, %473 : vector<16x128xf32>
    %475 = vector.extract_strided_slice %474 {offsets = [0, 0], sizes = [8, 128], strides = [1, 1]} : vector<16x128xf32> to vector<8x128xf32>
    %cst_125 = arith.constant 0.000000e+00 : f32
    %476 = vector.broadcast %cst_125 : f32 to vector<8x128xf32>
    %477 = arith.maximumf %475, %476 : vector<8x128xf32>
    %c0_126 = arith.constant 0 : index
    %c0_127 = arith.constant 0 : index
    %c0_128 = arith.constant 0 : index
    %478 = vector.load %arg7[%c0_126, %c0_127, %c0_128] : memref<25x8x128xf32, #tpu.memory_space<vmem>>, vector<1x8x128xf32>
    %479 = vector.shape_cast %478 : vector<1x8x128xf32> to vector<8x128xf32>
    %480 = vector.extract_strided_slice %477 {offsets = [0, 119], sizes = [8, 9], strides = [1, 1]} : vector<8x128xf32> to vector<8x9xf32>
    %481 = vector.extract_strided_slice %477 {offsets = [0, 0], sizes = [8, 119], strides = [1, 1]} : vector<8x128xf32> to vector<8x119xf32>
    %482 = tpu.concatenate %480, %481 in 1 : vector<8x9xf32>, vector<8x119xf32> -> vector<8x128xf32>
    %483 = arith.mulf %479, %482 : vector<8x128xf32>
    %c1_129 = arith.constant 1 : index
    %c0_130 = arith.constant 0 : index
    %c0_131 = arith.constant 0 : index
    %484 = vector.load %arg7[%c1_129, %c0_130, %c0_131] : memref<25x8x128xf32, #tpu.memory_space<vmem>>, vector<1x8x128xf32>
    %485 = vector.shape_cast %484 : vector<1x8x128xf32> to vector<8x128xf32>
    %486 = vector.extract_strided_slice %477 {offsets = [0, 120], sizes = [8, 8], strides = [1, 1]} : vector<8x128xf32> to vector<8x8xf32>
    %487 = vector.extract_strided_slice %477 {offsets = [0, 0], sizes = [8, 120], strides = [1, 1]} : vector<8x128xf32> to vector<8x120xf32>
    %488 = tpu.concatenate %486, %487 in 1 : vector<8x8xf32>, vector<8x120xf32> -> vector<8x128xf32>
    %489 = arith.mulf %485, %488 : vector<8x128xf32>
    %c2_132 = arith.constant 2 : index
    %c0_133 = arith.constant 0 : index
    %c0_134 = arith.constant 0 : index
    %490 = vector.load %arg7[%c2_132, %c0_133, %c0_134] : memref<25x8x128xf32, #tpu.memory_space<vmem>>, vector<1x8x128xf32>
    %491 = vector.shape_cast %490 : vector<1x8x128xf32> to vector<8x128xf32>
    %492 = vector.extract_strided_slice %477 {offsets = [0, 121], sizes = [8, 7], strides = [1, 1]} : vector<8x128xf32> to vector<8x7xf32>
    %493 = vector.extract_strided_slice %477 {offsets = [0, 0], sizes = [8, 121], strides = [1, 1]} : vector<8x128xf32> to vector<8x121xf32>
    %494 = tpu.concatenate %492, %493 in 1 : vector<8x7xf32>, vector<8x121xf32> -> vector<8x128xf32>
    %495 = arith.mulf %491, %494 : vector<8x128xf32>
    %c3_135 = arith.constant 3 : index
    %c0_136 = arith.constant 0 : index
    %c0_137 = arith.constant 0 : index
    %496 = vector.load %arg7[%c3_135, %c0_136, %c0_137] : memref<25x8x128xf32, #tpu.memory_space<vmem>>, vector<1x8x128xf32>
    %497 = vector.shape_cast %496 : vector<1x8x128xf32> to vector<8x128xf32>
    %498 = vector.extract_strided_slice %477 {offsets = [0, 127], sizes = [8, 1], strides = [1, 1]} : vector<8x128xf32> to vector<8x1xf32>
    %499 = vector.extract_strided_slice %477 {offsets = [0, 0], sizes = [8, 127], strides = [1, 1]} : vector<8x128xf32> to vector<8x127xf32>
    %500 = tpu.concatenate %498, %499 in 1 : vector<8x1xf32>, vector<8x127xf32> -> vector<8x128xf32>
    %501 = arith.mulf %497, %500 : vector<8x128xf32>
    %c4_138 = arith.constant 4 : index
    %c0_139 = arith.constant 0 : index
    %c0_140 = arith.constant 0 : index
    %502 = vector.load %arg7[%c4_138, %c0_139, %c0_140] : memref<25x8x128xf32, #tpu.memory_space<vmem>>, vector<1x8x128xf32>
    %503 = vector.shape_cast %502 : vector<1x8x128xf32> to vector<8x128xf32>
    %504 = arith.mulf %503, %477 : vector<8x128xf32>
    %505 = arith.addf %483, %504 : vector<8x128xf32>
    %c5_141 = arith.constant 5 : index
    %c0_142 = arith.constant 0 : index
    %c0_143 = arith.constant 0 : index
    %506 = vector.load %arg7[%c5_141, %c0_142, %c0_143] : memref<25x8x128xf32, #tpu.memory_space<vmem>>, vector<1x8x128xf32>
    %507 = vector.shape_cast %506 : vector<1x8x128xf32> to vector<8x128xf32>
    %508 = vector.extract_strided_slice %477 {offsets = [0, 1], sizes = [8, 127], strides = [1, 1]} : vector<8x128xf32> to vector<8x127xf32>
    %509 = vector.extract_strided_slice %477 {offsets = [0, 0], sizes = [8, 1], strides = [1, 1]} : vector<8x128xf32> to vector<8x1xf32>
    %510 = tpu.concatenate %508, %509 in 1 : vector<8x127xf32>, vector<8x1xf32> -> vector<8x128xf32>
    %511 = arith.mulf %507, %510 : vector<8x128xf32>
    %512 = arith.addf %489, %511 : vector<8x128xf32>
    %c6_144 = arith.constant 6 : index
    %c0_145 = arith.constant 0 : index
    %c0_146 = arith.constant 0 : index
    %513 = vector.load %arg7[%c6_144, %c0_145, %c0_146] : memref<25x8x128xf32, #tpu.memory_space<vmem>>, vector<1x8x128xf32>
    %514 = vector.shape_cast %513 : vector<1x8x128xf32> to vector<8x128xf32>
    %515 = vector.extract_strided_slice %477 {offsets = [0, 7], sizes = [8, 121], strides = [1, 1]} : vector<8x128xf32> to vector<8x121xf32>
    %516 = vector.extract_strided_slice %477 {offsets = [0, 0], sizes = [8, 7], strides = [1, 1]} : vector<8x128xf32> to vector<8x7xf32>
    %517 = tpu.concatenate %515, %516 in 1 : vector<8x121xf32>, vector<8x7xf32> -> vector<8x128xf32>
    %518 = arith.mulf %514, %517 : vector<8x128xf32>
    %519 = arith.addf %495, %518 : vector<8x128xf32>
    %c7_147 = arith.constant 7 : index
    %c0_148 = arith.constant 0 : index
    %c0_149 = arith.constant 0 : index
    %520 = vector.load %arg7[%c7_147, %c0_148, %c0_149] : memref<25x8x128xf32, #tpu.memory_space<vmem>>, vector<1x8x128xf32>
    %521 = vector.shape_cast %520 : vector<1x8x128xf32> to vector<8x128xf32>
    %522 = vector.extract_strided_slice %477 {offsets = [0, 8], sizes = [8, 120], strides = [1, 1]} : vector<8x128xf32> to vector<8x120xf32>
    %523 = vector.extract_strided_slice %477 {offsets = [0, 0], sizes = [8, 8], strides = [1, 1]} : vector<8x128xf32> to vector<8x8xf32>
    %524 = tpu.concatenate %522, %523 in 1 : vector<8x120xf32>, vector<8x8xf32> -> vector<8x128xf32>
    %525 = arith.mulf %521, %524 : vector<8x128xf32>
    %526 = arith.addf %501, %525 : vector<8x128xf32>
    %c8_150 = arith.constant 8 : index
    %c0_151 = arith.constant 0 : index
    %c0_152 = arith.constant 0 : index
    %527 = vector.load %arg7[%c8_150, %c0_151, %c0_152] : memref<25x8x128xf32, #tpu.memory_space<vmem>>, vector<1x8x128xf32>
    %528 = vector.shape_cast %527 : vector<1x8x128xf32> to vector<8x128xf32>
    %529 = vector.extract_strided_slice %477 {offsets = [0, 9], sizes = [8, 119], strides = [1, 1]} : vector<8x128xf32> to vector<8x119xf32>
    %530 = vector.extract_strided_slice %477 {offsets = [0, 0], sizes = [8, 9], strides = [1, 1]} : vector<8x128xf32> to vector<8x9xf32>
    %531 = tpu.concatenate %529, %530 in 1 : vector<8x119xf32>, vector<8x9xf32> -> vector<8x128xf32>
    %532 = arith.mulf %528, %531 : vector<8x128xf32>
    %533 = arith.addf %505, %532 : vector<8x128xf32>
    %c9_153 = arith.constant 9 : index
    %c0_154 = arith.constant 0 : index
    %c0_155 = arith.constant 0 : index
    %534 = vector.load %arg7[%c9_153, %c0_154, %c0_155] : memref<25x8x128xf32, #tpu.memory_space<vmem>>, vector<1x8x128xf32>
    %535 = vector.shape_cast %534 : vector<1x8x128xf32> to vector<8x128xf32>
    %536 = vector.extract_strided_slice %477 {offsets = [0, 110], sizes = [8, 18], strides = [1, 1]} : vector<8x128xf32> to vector<8x18xf32>
    %537 = vector.extract_strided_slice %477 {offsets = [0, 0], sizes = [8, 110], strides = [1, 1]} : vector<8x128xf32> to vector<8x110xf32>
    %538 = tpu.concatenate %536, %537 in 1 : vector<8x18xf32>, vector<8x110xf32> -> vector<8x128xf32>
    %539 = arith.mulf %535, %538 : vector<8x128xf32>
    %540 = arith.addf %512, %539 : vector<8x128xf32>
    %c10_156 = arith.constant 10 : index
    %c0_157 = arith.constant 0 : index
    %c0_158 = arith.constant 0 : index
    %541 = vector.load %arg7[%c10_156, %c0_157, %c0_158] : memref<25x8x128xf32, #tpu.memory_space<vmem>>, vector<1x8x128xf32>
    %542 = vector.shape_cast %541 : vector<1x8x128xf32> to vector<8x128xf32>
    %543 = vector.extract_strided_slice %477 {offsets = [0, 111], sizes = [8, 17], strides = [1, 1]} : vector<8x128xf32> to vector<8x17xf32>
    %544 = vector.extract_strided_slice %477 {offsets = [0, 0], sizes = [8, 111], strides = [1, 1]} : vector<8x128xf32> to vector<8x111xf32>
    %545 = tpu.concatenate %543, %544 in 1 : vector<8x17xf32>, vector<8x111xf32> -> vector<8x128xf32>
    %546 = arith.mulf %542, %545 : vector<8x128xf32>
    %547 = arith.addf %519, %546 : vector<8x128xf32>
    %c11_159 = arith.constant 11 : index
    %c0_160 = arith.constant 0 : index
    %c0_161 = arith.constant 0 : index
    %548 = vector.load %arg7[%c11_159, %c0_160, %c0_161] : memref<25x8x128xf32, #tpu.memory_space<vmem>>, vector<1x8x128xf32>
    %549 = vector.shape_cast %548 : vector<1x8x128xf32> to vector<8x128xf32>
    %550 = vector.extract_strided_slice %477 {offsets = [0, 112], sizes = [8, 16], strides = [1, 1]} : vector<8x128xf32> to vector<8x16xf32>
    %551 = vector.extract_strided_slice %477 {offsets = [0, 0], sizes = [8, 112], strides = [1, 1]} : vector<8x128xf32> to vector<8x112xf32>
    %552 = tpu.concatenate %550, %551 in 1 : vector<8x16xf32>, vector<8x112xf32> -> vector<8x128xf32>
    %553 = arith.mulf %549, %552 : vector<8x128xf32>
    %554 = arith.addf %526, %553 : vector<8x128xf32>
    %c12_162 = arith.constant 12 : index
    %c0_163 = arith.constant 0 : index
    %c0_164 = arith.constant 0 : index
    %555 = vector.load %arg7[%c12_162, %c0_163, %c0_164] : memref<25x8x128xf32, #tpu.memory_space<vmem>>, vector<1x8x128xf32>
    %556 = vector.shape_cast %555 : vector<1x8x128xf32> to vector<8x128xf32>
    %557 = vector.extract_strided_slice %477 {offsets = [0, 113], sizes = [8, 15], strides = [1, 1]} : vector<8x128xf32> to vector<8x15xf32>
    %558 = vector.extract_strided_slice %477 {offsets = [0, 0], sizes = [8, 113], strides = [1, 1]} : vector<8x128xf32> to vector<8x113xf32>
    %559 = tpu.concatenate %557, %558 in 1 : vector<8x15xf32>, vector<8x113xf32> -> vector<8x128xf32>
    %560 = arith.mulf %556, %559 : vector<8x128xf32>
    %561 = arith.addf %533, %560 : vector<8x128xf32>
    %c13_165 = arith.constant 13 : index
    %c0_166 = arith.constant 0 : index
    %c0_167 = arith.constant 0 : index
    %562 = vector.load %arg7[%c13_165, %c0_166, %c0_167] : memref<25x8x128xf32, #tpu.memory_space<vmem>>, vector<1x8x128xf32>
    %563 = vector.shape_cast %562 : vector<1x8x128xf32> to vector<8x128xf32>
    %564 = vector.extract_strided_slice %477 {offsets = [0, 114], sizes = [8, 14], strides = [1, 1]} : vector<8x128xf32> to vector<8x14xf32>
    %565 = vector.extract_strided_slice %477 {offsets = [0, 0], sizes = [8, 114], strides = [1, 1]} : vector<8x128xf32> to vector<8x114xf32>
    %566 = tpu.concatenate %564, %565 in 1 : vector<8x14xf32>, vector<8x114xf32> -> vector<8x128xf32>
    %567 = arith.mulf %563, %566 : vector<8x128xf32>
    %568 = arith.addf %540, %567 : vector<8x128xf32>
    %c14_168 = arith.constant 14 : index
    %c0_169 = arith.constant 0 : index
    %c0_170 = arith.constant 0 : index
    %569 = vector.load %arg7[%c14_168, %c0_169, %c0_170] : memref<25x8x128xf32, #tpu.memory_space<vmem>>, vector<1x8x128xf32>
    %570 = vector.shape_cast %569 : vector<1x8x128xf32> to vector<8x128xf32>
    %571 = vector.extract_strided_slice %477 {offsets = [0, 118], sizes = [8, 10], strides = [1, 1]} : vector<8x128xf32> to vector<8x10xf32>
    %572 = vector.extract_strided_slice %477 {offsets = [0, 0], sizes = [8, 118], strides = [1, 1]} : vector<8x128xf32> to vector<8x118xf32>
    %573 = tpu.concatenate %571, %572 in 1 : vector<8x10xf32>, vector<8x118xf32> -> vector<8x128xf32>
    %574 = arith.mulf %570, %573 : vector<8x128xf32>
    %575 = arith.addf %547, %574 : vector<8x128xf32>
    %c15_171 = arith.constant 15 : index
    %c0_172 = arith.constant 0 : index
    %c0_173 = arith.constant 0 : index
    %576 = vector.load %arg7[%c15_171, %c0_172, %c0_173] : memref<25x8x128xf32, #tpu.memory_space<vmem>>, vector<1x8x128xf32>
    %577 = vector.shape_cast %576 : vector<1x8x128xf32> to vector<8x128xf32>
    %578 = vector.extract_strided_slice %477 {offsets = [0, 122], sizes = [8, 6], strides = [1, 1]} : vector<8x128xf32> to vector<8x6xf32>
    %579 = vector.extract_strided_slice %477 {offsets = [0, 0], sizes = [8, 122], strides = [1, 1]} : vector<8x128xf32> to vector<8x122xf32>
    %580 = tpu.concatenate %578, %579 in 1 : vector<8x6xf32>, vector<8x122xf32> -> vector<8x128xf32>
    %581 = arith.mulf %577, %580 : vector<8x128xf32>
    %582 = arith.addf %554, %581 : vector<8x128xf32>
    %c16_174 = arith.constant 16 : index
    %c0_175 = arith.constant 0 : index
    %c0_176 = arith.constant 0 : index
    %583 = vector.load %arg7[%c16_174, %c0_175, %c0_176] : memref<25x8x128xf32, #tpu.memory_space<vmem>>, vector<1x8x128xf32>
    %584 = vector.shape_cast %583 : vector<1x8x128xf32> to vector<8x128xf32>
    %585 = vector.extract_strided_slice %477 {offsets = [0, 126], sizes = [8, 2], strides = [1, 1]} : vector<8x128xf32> to vector<8x2xf32>
    %586 = vector.extract_strided_slice %477 {offsets = [0, 0], sizes = [8, 126], strides = [1, 1]} : vector<8x128xf32> to vector<8x126xf32>
    %587 = tpu.concatenate %585, %586 in 1 : vector<8x2xf32>, vector<8x126xf32> -> vector<8x128xf32>
    %588 = arith.mulf %584, %587 : vector<8x128xf32>
    %589 = arith.addf %561, %588 : vector<8x128xf32>
    %c17_177 = arith.constant 17 : index
    %c0_178 = arith.constant 0 : index
    %c0_179 = arith.constant 0 : index
    %590 = vector.load %arg7[%c17_177, %c0_178, %c0_179] : memref<25x8x128xf32, #tpu.memory_space<vmem>>, vector<1x8x128xf32>
    %591 = vector.shape_cast %590 : vector<1x8x128xf32> to vector<8x128xf32>
    %592 = vector.extract_strided_slice %477 {offsets = [0, 2], sizes = [8, 126], strides = [1, 1]} : vector<8x128xf32> to vector<8x126xf32>
    %593 = vector.extract_strided_slice %477 {offsets = [0, 0], sizes = [8, 2], strides = [1, 1]} : vector<8x128xf32> to vector<8x2xf32>
    %594 = tpu.concatenate %592, %593 in 1 : vector<8x126xf32>, vector<8x2xf32> -> vector<8x128xf32>
    %595 = arith.mulf %591, %594 : vector<8x128xf32>
    %596 = arith.addf %568, %595 : vector<8x128xf32>
    %c18_180 = arith.constant 18 : index
    %c0_181 = arith.constant 0 : index
    %c0_182 = arith.constant 0 : index
    %597 = vector.load %arg7[%c18_180, %c0_181, %c0_182] : memref<25x8x128xf32, #tpu.memory_space<vmem>>, vector<1x8x128xf32>
    %598 = vector.shape_cast %597 : vector<1x8x128xf32> to vector<8x128xf32>
    %599 = vector.extract_strided_slice %477 {offsets = [0, 6], sizes = [8, 122], strides = [1, 1]} : vector<8x128xf32> to vector<8x122xf32>
    %600 = vector.extract_strided_slice %477 {offsets = [0, 0], sizes = [8, 6], strides = [1, 1]} : vector<8x128xf32> to vector<8x6xf32>
    %601 = tpu.concatenate %599, %600 in 1 : vector<8x122xf32>, vector<8x6xf32> -> vector<8x128xf32>
    %602 = arith.mulf %598, %601 : vector<8x128xf32>
    %603 = arith.addf %575, %602 : vector<8x128xf32>
    %c19_183 = arith.constant 19 : index
    %c0_184 = arith.constant 0 : index
    %c0_185 = arith.constant 0 : index
    %604 = vector.load %arg7[%c19_183, %c0_184, %c0_185] : memref<25x8x128xf32, #tpu.memory_space<vmem>>, vector<1x8x128xf32>
    %605 = vector.shape_cast %604 : vector<1x8x128xf32> to vector<8x128xf32>
    %606 = vector.extract_strided_slice %477 {offsets = [0, 10], sizes = [8, 118], strides = [1, 1]} : vector<8x128xf32> to vector<8x118xf32>
    %607 = vector.extract_strided_slice %477 {offsets = [0, 0], sizes = [8, 10], strides = [1, 1]} : vector<8x128xf32> to vector<8x10xf32>
    %608 = tpu.concatenate %606, %607 in 1 : vector<8x118xf32>, vector<8x10xf32> -> vector<8x128xf32>
    %609 = arith.mulf %605, %608 : vector<8x128xf32>
    %610 = arith.addf %582, %609 : vector<8x128xf32>
    %c20_186 = arith.constant 20 : index
    %c0_187 = arith.constant 0 : index
    %c0_188 = arith.constant 0 : index
    %611 = vector.load %arg7[%c20_186, %c0_187, %c0_188] : memref<25x8x128xf32, #tpu.memory_space<vmem>>, vector<1x8x128xf32>
    %612 = vector.shape_cast %611 : vector<1x8x128xf32> to vector<8x128xf32>
    %613 = vector.extract_strided_slice %477 {offsets = [0, 14], sizes = [8, 114], strides = [1, 1]} : vector<8x128xf32> to vector<8x114xf32>
    %614 = vector.extract_strided_slice %477 {offsets = [0, 0], sizes = [8, 14], strides = [1, 1]} : vector<8x128xf32> to vector<8x14xf32>
    %615 = tpu.concatenate %613, %614 in 1 : vector<8x114xf32>, vector<8x14xf32> -> vector<8x128xf32>
    %616 = arith.mulf %612, %615 : vector<8x128xf32>
    %617 = arith.addf %589, %616 : vector<8x128xf32>
    %c21_189 = arith.constant 21 : index
    %c0_190 = arith.constant 0 : index
    %c0_191 = arith.constant 0 : index
    %618 = vector.load %arg7[%c21_189, %c0_190, %c0_191] : memref<25x8x128xf32, #tpu.memory_space<vmem>>, vector<1x8x128xf32>
    %619 = vector.shape_cast %618 : vector<1x8x128xf32> to vector<8x128xf32>
    %620 = vector.extract_strided_slice %477 {offsets = [0, 15], sizes = [8, 113], strides = [1, 1]} : vector<8x128xf32> to vector<8x113xf32>
    %621 = vector.extract_strided_slice %477 {offsets = [0, 0], sizes = [8, 15], strides = [1, 1]} : vector<8x128xf32> to vector<8x15xf32>
    %622 = tpu.concatenate %620, %621 in 1 : vector<8x113xf32>, vector<8x15xf32> -> vector<8x128xf32>
    %623 = arith.mulf %619, %622 : vector<8x128xf32>
    %624 = arith.addf %596, %623 : vector<8x128xf32>
    %c22_192 = arith.constant 22 : index
    %c0_193 = arith.constant 0 : index
    %c0_194 = arith.constant 0 : index
    %625 = vector.load %arg7[%c22_192, %c0_193, %c0_194] : memref<25x8x128xf32, #tpu.memory_space<vmem>>, vector<1x8x128xf32>
    %626 = vector.shape_cast %625 : vector<1x8x128xf32> to vector<8x128xf32>
    %627 = vector.extract_strided_slice %477 {offsets = [0, 16], sizes = [8, 112], strides = [1, 1]} : vector<8x128xf32> to vector<8x112xf32>
    %628 = vector.extract_strided_slice %477 {offsets = [0, 0], sizes = [8, 16], strides = [1, 1]} : vector<8x128xf32> to vector<8x16xf32>
    %629 = tpu.concatenate %627, %628 in 1 : vector<8x112xf32>, vector<8x16xf32> -> vector<8x128xf32>
    %630 = arith.mulf %626, %629 : vector<8x128xf32>
    %631 = arith.addf %603, %630 : vector<8x128xf32>
    %c23_195 = arith.constant 23 : index
    %c0_196 = arith.constant 0 : index
    %c0_197 = arith.constant 0 : index
    %632 = vector.load %arg7[%c23_195, %c0_196, %c0_197] : memref<25x8x128xf32, #tpu.memory_space<vmem>>, vector<1x8x128xf32>
    %633 = vector.shape_cast %632 : vector<1x8x128xf32> to vector<8x128xf32>
    %634 = vector.extract_strided_slice %477 {offsets = [0, 17], sizes = [8, 111], strides = [1, 1]} : vector<8x128xf32> to vector<8x111xf32>
    %635 = vector.extract_strided_slice %477 {offsets = [0, 0], sizes = [8, 17], strides = [1, 1]} : vector<8x128xf32> to vector<8x17xf32>
    %636 = tpu.concatenate %634, %635 in 1 : vector<8x111xf32>, vector<8x17xf32> -> vector<8x128xf32>
    %637 = arith.mulf %633, %636 : vector<8x128xf32>
    %638 = arith.addf %610, %637 : vector<8x128xf32>
    %c24_198 = arith.constant 24 : index
    %c0_199 = arith.constant 0 : index
    %c0_200 = arith.constant 0 : index
    %639 = vector.load %arg7[%c24_198, %c0_199, %c0_200] : memref<25x8x128xf32, #tpu.memory_space<vmem>>, vector<1x8x128xf32>
    %640 = vector.shape_cast %639 : vector<1x8x128xf32> to vector<8x128xf32>
    %641 = vector.extract_strided_slice %477 {offsets = [0, 18], sizes = [8, 110], strides = [1, 1]} : vector<8x128xf32> to vector<8x110xf32>
    %642 = vector.extract_strided_slice %477 {offsets = [0, 0], sizes = [8, 18], strides = [1, 1]} : vector<8x128xf32> to vector<8x18xf32>
    %643 = tpu.concatenate %641, %642 in 1 : vector<8x110xf32>, vector<8x18xf32> -> vector<8x128xf32>
    %644 = arith.mulf %640, %643 : vector<8x128xf32>
    %645 = arith.addf %617, %644 : vector<8x128xf32>
    %646 = arith.addf %645, %624 : vector<8x128xf32>
    %647 = arith.addf %646, %631 : vector<8x128xf32>
    %648 = arith.addf %647, %638 : vector<8x128xf32>
    %c0_201 = arith.constant 0 : index
    %c0_202 = arith.constant 0 : index
    %649 = vector.load %arg8[%c0_201, %c0_202] : memref<8x8xf32, #tpu.memory_space<vmem>>, vector<8x8xf32>
    %cst_203 = arith.constant dense<0.000000e+00> : vector<8x128xf32>
    %650 = tpu.matmul %649, %648, %cst_203 {dimension_numbers = #tpu.dot_dimension_numbers<[1], [0], [0], [1], [0, 0, 1, 1], [], []>} : vector<8x8xf32>, vector<8x128xf32>, vector<8x128xf32> -> vector<8x128xf32>
    %cst_204 = arith.constant dense<0.000000e+00> : vector<8xf32>
    %651 = vector.multi_reduction <add>, %650, %cst_204 [1] : vector<8x128xf32> to vector<8xf32>
    %652 = vector.shape_cast %651 : vector<8xf32> to vector<8x1xf32>
    %653 = arith.mulf %650, %650 : vector<8x128xf32>
    %cst_205 = arith.constant dense<0.000000e+00> : vector<8xf32>
    %654 = vector.multi_reduction <add>, %653, %cst_205 [1] : vector<8x128xf32> to vector<8xf32>
    %655 = vector.shape_cast %654 : vector<8xf32> to vector<8x1xf32>
    %cst_206 = arith.constant 7.812500e-03 : f32
    %656 = vector.broadcast %cst_206 : f32 to vector<8x1xf32>
    %657 = arith.mulf %652, %656 : vector<8x1xf32>
    %cst_207 = arith.constant 7.812500e-03 : f32
    %658 = vector.broadcast %cst_207 : f32 to vector<8x1xf32>
    %659 = arith.mulf %655, %658 : vector<8x1xf32>
    %660 = arith.mulf %657, %657 : vector<8x1xf32>
    %661 = arith.subf %659, %660 : vector<8x1xf32>
    %cst_208 = arith.constant 0.000000e+00 : f32
    %662 = vector.broadcast %cst_208 : f32 to vector<8x1xf32>
    %663 = arith.maximumf %661, %662 : vector<8x1xf32>
    %664 = vector.broadcast %657 : vector<8x1xf32> to vector<8x128xf32>
    %665 = arith.subf %650, %664 : vector<8x128xf32>
    %cst_209 = arith.constant 9.99999974E-6 : f32
    %666 = vector.broadcast %cst_209 : f32 to vector<8x1xf32>
    %667 = arith.addf %663, %666 : vector<8x1xf32>
    %668 = math.rsqrt %667 : vector<8x1xf32>
    %669 = vector.broadcast %668 : vector<8x1xf32> to vector<8x128xf32>
    %670 = arith.mulf %665, %669 : vector<8x128xf32>
    %671 = vector.extract_strided_slice %474 {offsets = [8, 0], sizes = [8, 128], strides = [1, 1]} : vector<16x128xf32> to vector<8x128xf32>
    %c0_210 = arith.constant 0 : index
    %c1_211 = arith.constant 1 : index
    %672 = memref.load %arg0[%c0_210, %c1_211] : memref<3x8xf32, #tpu.memory_space<smem>>
    %673 = vector.broadcast %672 : f32 to vector<2x128xf32>
    %674 = arith.mulf %673, %165 : vector<2x128xf32>
    %c0_212 = arith.constant 0 : index
    %c2_213 = arith.constant 2 : index
    %675 = memref.load %arg0[%c0_212, %c2_213] : memref<3x8xf32, #tpu.memory_space<smem>>
    %676 = vector.broadcast %675 : f32 to vector<2x128xf32>
    %677 = arith.mulf %676, %166 : vector<2x128xf32>
    %678 = arith.addf %674, %677 : vector<2x128xf32>
    %c0_214 = arith.constant 0 : index
    %c3_215 = arith.constant 3 : index
    %679 = memref.load %arg0[%c0_214, %c3_215] : memref<3x8xf32, #tpu.memory_space<smem>>
    %680 = vector.broadcast %679 : f32 to vector<2x128xf32>
    %681 = arith.mulf %680, %29 : vector<2x128xf32>
    %682 = arith.addf %678, %681 : vector<2x128xf32>
    %c1_216 = arith.constant 1 : index
    %c1_217 = arith.constant 1 : index
    %683 = memref.load %arg0[%c1_216, %c1_217] : memref<3x8xf32, #tpu.memory_space<smem>>
    %684 = vector.broadcast %683 : f32 to vector<2x128xf32>
    %685 = arith.mulf %684, %165 : vector<2x128xf32>
    %c1_218 = arith.constant 1 : index
    %c2_219 = arith.constant 2 : index
    %686 = memref.load %arg0[%c1_218, %c2_219] : memref<3x8xf32, #tpu.memory_space<smem>>
    %687 = vector.broadcast %686 : f32 to vector<2x128xf32>
    %688 = arith.mulf %687, %166 : vector<2x128xf32>
    %689 = arith.addf %685, %688 : vector<2x128xf32>
    %c1_220 = arith.constant 1 : index
    %c3_221 = arith.constant 3 : index
    %690 = memref.load %arg0[%c1_220, %c3_221] : memref<3x8xf32, #tpu.memory_space<smem>>
    %691 = vector.broadcast %690 : f32 to vector<2x128xf32>
    %692 = arith.mulf %691, %29 : vector<2x128xf32>
    %693 = arith.addf %689, %692 : vector<2x128xf32>
    %694 = tpu.concatenate %682, %693 in 0 : vector<2x128xf32>, vector<2x128xf32> -> vector<4x128xf32>
    %c0_222 = arith.constant 0 : index
    %c0_223 = arith.constant 0 : index
    %695 = vector.load %arg17[%c0_222, %c0_223] : memref<4x8xf32, #tpu.memory_space<vmem>>, vector<4x8xf32>
    %cst_224 = arith.constant dense<0.000000e+00> : vector<4x128xf32>
    %696 = tpu.matmul %695, %670, %cst_224 {dimension_numbers = #tpu.dot_dimension_numbers<[1], [0], [0], [1], [0, 0, 1, 1], [], []>} : vector<4x8xf32>, vector<8x128xf32>, vector<4x128xf32> -> vector<4x128xf32>
    %697 = arith.addf %694, %696 : vector<4x128xf32>
    %c0_225 = arith.constant 0 : index
    %c0_226 = arith.constant 0 : index
    %698 = vector.load %arg18[%c0_225, %c0_226] : memref<4x8xf32, #tpu.memory_space<vmem>>, vector<4x8xf32>
    %cst_227 = arith.constant dense<0.000000e+00> : vector<4x128xf32>
    %699 = tpu.matmul %698, %671, %cst_227 {dimension_numbers = #tpu.dot_dimension_numbers<[1], [0], [0], [1], [0, 0, 1, 1], [], []>} : vector<4x8xf32>, vector<8x128xf32>, vector<4x128xf32> -> vector<4x128xf32>
    %700 = arith.addf %697, %699 : vector<4x128xf32>
    %c0_228 = arith.constant 0 : index
    %701 = memref.load %arg1[%c0_228] : memref<3xf32, #tpu.memory_space<smem>>
    %c1_229 = arith.constant 1 : index
    %702 = memref.load %arg1[%c1_229] : memref<3xf32, #tpu.memory_space<smem>>
    %c2_230 = arith.constant 2 : index
    %703 = memref.load %arg1[%c2_230] : memref<3xf32, #tpu.memory_space<smem>>
    %c0_231 = arith.constant 0 : index
    %c0_232 = arith.constant 0 : index
    %704 = vector.load %arg15[%c0_231, %c0_232] : memref<16x16xf32, #tpu.memory_space<vmem>>, vector<16x16xf32>
    %cst_233 = arith.constant dense<0.000000e+00> : vector<16x128xf32>
    %705 = tpu.matmul %704, %26, %cst_233 {dimension_numbers = #tpu.dot_dimension_numbers<[1], [0], [0], [1], [0, 0, 1, 1], [], []>} : vector<16x16xf32>, vector<16x128xf32>, vector<16x128xf32> -> vector<16x128xf32>
    %c0_234 = arith.constant 0 : index
    %c0_235 = arith.constant 0 : index
    %706 = vector.load %arg16[%c0_234, %c0_235] : memref<16x2xf32, #tpu.memory_space<vmem>>, vector<16x2xf32>
    %707 = vector.extract_strided_slice %700 {offsets = [0, 0], sizes = [2, 128], strides = [1, 1]} : vector<4x128xf32> to vector<2x128xf32>
    %cst_236 = arith.constant dense<0.000000e+00> : vector<16x128xf32>
    %708 = tpu.matmul %706, %707, %cst_236 {dimension_numbers = #tpu.dot_dimension_numbers<[1], [0], [0], [1], [0, 0, 1, 1], [], []>} : vector<16x2xf32>, vector<2x128xf32>, vector<16x128xf32> -> vector<16x128xf32>
    %709 = arith.addf %705, %708 : vector<16x128xf32>
    %710 = vector.broadcast %701 : f32 to vector<16x128xf32>
    %711 = arith.mulf %710, %709 : vector<16x128xf32>
    %712 = vector.extract_strided_slice %711 {offsets = [0, 0], sizes = [2, 128], strides = [1, 1]} : vector<16x128xf32> to vector<2x128xf32>
    %713 = vector.extract_strided_slice %712 {offsets = [0, 119], sizes = [2, 9], strides = [1, 1]} : vector<2x128xf32> to vector<2x9xf32>
    %714 = vector.extract_strided_slice %712 {offsets = [0, 0], sizes = [2, 119], strides = [1, 1]} : vector<2x128xf32> to vector<2x119xf32>
    %715 = tpu.concatenate %713, %714 in 1 : vector<2x9xf32>, vector<2x119xf32> -> vector<2x128xf32>
    %716 = vector.extract_strided_slice %27 {offsets = [0, 0], sizes = [1, 128], strides = [1, 1]} : vector<9x128xf32> to vector<1x128xf32>
    %cst_237 = arith.constant 5.000000e-01 : f32
    %717 = vector.broadcast %cst_237 : f32 to vector<1x128xf32>
    %718 = arith.cmpf ogt, %716, %717 : vector<1x128xf32>
    %719 = vector.shape_cast %718 : vector<1x128xi1> to vector<1x128xi1>
    %720 = vector.broadcast %719 : vector<1x128xi1> to vector<2x128xi1>
    %721 = arith.select %720, %715, %712 : vector<2x128xi1>, vector<2x128xf32>
    %722 = vector.broadcast %716 : vector<1x128xf32> to vector<2x128xf32>
    %723 = arith.mulf %722, %715 : vector<2x128xf32>
    %724 = vector.extract_strided_slice %712 {offsets = [0, 120], sizes = [2, 8], strides = [1, 1]} : vector<2x128xf32> to vector<2x8xf32>
    %725 = vector.extract_strided_slice %712 {offsets = [0, 0], sizes = [2, 120], strides = [1, 1]} : vector<2x128xf32> to vector<2x120xf32>
    %726 = tpu.concatenate %724, %725 in 1 : vector<2x8xf32>, vector<2x120xf32> -> vector<2x128xf32>
    %727 = vector.extract_strided_slice %27 {offsets = [1, 0], sizes = [1, 128], strides = [1, 1]} : vector<9x128xf32> to vector<1x128xf32>
    %cst_238 = arith.constant 5.000000e-01 : f32
    %728 = vector.broadcast %cst_238 : f32 to vector<1x128xf32>
    %729 = arith.cmpf ogt, %727, %728 : vector<1x128xf32>
    %730 = vector.shape_cast %729 : vector<1x128xi1> to vector<1x128xi1>
    %731 = vector.broadcast %730 : vector<1x128xi1> to vector<2x128xi1>
    %732 = arith.select %731, %726, %712 : vector<2x128xi1>, vector<2x128xf32>
    %733 = arith.maximumf %721, %732 : vector<2x128xf32>
    %734 = vector.broadcast %727 : vector<1x128xf32> to vector<2x128xf32>
    %735 = arith.mulf %734, %726 : vector<2x128xf32>
    %736 = arith.addf %723, %735 : vector<2x128xf32>
    %737 = vector.extract_strided_slice %712 {offsets = [0, 121], sizes = [2, 7], strides = [1, 1]} : vector<2x128xf32> to vector<2x7xf32>
    %738 = vector.extract_strided_slice %712 {offsets = [0, 0], sizes = [2, 121], strides = [1, 1]} : vector<2x128xf32> to vector<2x121xf32>
    %739 = tpu.concatenate %737, %738 in 1 : vector<2x7xf32>, vector<2x121xf32> -> vector<2x128xf32>
    %740 = vector.extract_strided_slice %27 {offsets = [2, 0], sizes = [1, 128], strides = [1, 1]} : vector<9x128xf32> to vector<1x128xf32>
    %cst_239 = arith.constant 5.000000e-01 : f32
    %741 = vector.broadcast %cst_239 : f32 to vector<1x128xf32>
    %742 = arith.cmpf ogt, %740, %741 : vector<1x128xf32>
    %743 = vector.shape_cast %742 : vector<1x128xi1> to vector<1x128xi1>
    %744 = vector.broadcast %743 : vector<1x128xi1> to vector<2x128xi1>
    %745 = arith.select %744, %739, %712 : vector<2x128xi1>, vector<2x128xf32>
    %746 = arith.maximumf %733, %745 : vector<2x128xf32>
    %747 = vector.broadcast %740 : vector<1x128xf32> to vector<2x128xf32>
    %748 = arith.mulf %747, %739 : vector<2x128xf32>
    %749 = arith.addf %736, %748 : vector<2x128xf32>
    %750 = vector.extract_strided_slice %712 {offsets = [0, 127], sizes = [2, 1], strides = [1, 1]} : vector<2x128xf32> to vector<2x1xf32>
    %751 = vector.extract_strided_slice %712 {offsets = [0, 0], sizes = [2, 127], strides = [1, 1]} : vector<2x128xf32> to vector<2x127xf32>
    %752 = tpu.concatenate %750, %751 in 1 : vector<2x1xf32>, vector<2x127xf32> -> vector<2x128xf32>
    %753 = vector.extract_strided_slice %27 {offsets = [3, 0], sizes = [1, 128], strides = [1, 1]} : vector<9x128xf32> to vector<1x128xf32>
    %cst_240 = arith.constant 5.000000e-01 : f32
    %754 = vector.broadcast %cst_240 : f32 to vector<1x128xf32>
    %755 = arith.cmpf ogt, %753, %754 : vector<1x128xf32>
    %756 = vector.shape_cast %755 : vector<1x128xi1> to vector<1x128xi1>
    %757 = vector.broadcast %756 : vector<1x128xi1> to vector<2x128xi1>
    %758 = arith.select %757, %752, %712 : vector<2x128xi1>, vector<2x128xf32>
    %759 = arith.maximumf %746, %758 : vector<2x128xf32>
    %760 = vector.broadcast %753 : vector<1x128xf32> to vector<2x128xf32>
    %761 = arith.mulf %760, %752 : vector<2x128xf32>
    %762 = arith.addf %749, %761 : vector<2x128xf32>
    %763 = vector.extract_strided_slice %27 {offsets = [4, 0], sizes = [1, 128], strides = [1, 1]} : vector<9x128xf32> to vector<1x128xf32>
    %cst_241 = arith.constant 5.000000e-01 : f32
    %764 = vector.broadcast %cst_241 : f32 to vector<1x128xf32>
    %765 = arith.cmpf ogt, %763, %764 : vector<1x128xf32>
    %766 = vector.shape_cast %765 : vector<1x128xi1> to vector<1x128xi1>
    %767 = vector.broadcast %766 : vector<1x128xi1> to vector<2x128xi1>
    %768 = arith.select %767, %712, %712 : vector<2x128xi1>, vector<2x128xf32>
    %769 = arith.maximumf %759, %768 : vector<2x128xf32>
    %770 = vector.broadcast %763 : vector<1x128xf32> to vector<2x128xf32>
    %771 = arith.mulf %770, %712 : vector<2x128xf32>
    %772 = arith.addf %762, %771 : vector<2x128xf32>
    %773 = vector.extract_strided_slice %712 {offsets = [0, 1], sizes = [2, 127], strides = [1, 1]} : vector<2x128xf32> to vector<2x127xf32>
    %774 = vector.extract_strided_slice %712 {offsets = [0, 0], sizes = [2, 1], strides = [1, 1]} : vector<2x128xf32> to vector<2x1xf32>
    %775 = tpu.concatenate %773, %774 in 1 : vector<2x127xf32>, vector<2x1xf32> -> vector<2x128xf32>
    %776 = vector.extract_strided_slice %27 {offsets = [5, 0], sizes = [1, 128], strides = [1, 1]} : vector<9x128xf32> to vector<1x128xf32>
    %cst_242 = arith.constant 5.000000e-01 : f32
    %777 = vector.broadcast %cst_242 : f32 to vector<1x128xf32>
    %778 = arith.cmpf ogt, %776, %777 : vector<1x128xf32>
    %779 = vector.shape_cast %778 : vector<1x128xi1> to vector<1x128xi1>
    %780 = vector.broadcast %779 : vector<1x128xi1> to vector<2x128xi1>
    %781 = arith.select %780, %775, %712 : vector<2x128xi1>, vector<2x128xf32>
    %782 = arith.maximumf %769, %781 : vector<2x128xf32>
    %783 = vector.broadcast %776 : vector<1x128xf32> to vector<2x128xf32>
    %784 = arith.mulf %783, %775 : vector<2x128xf32>
    %785 = arith.addf %772, %784 : vector<2x128xf32>
    %786 = vector.extract_strided_slice %712 {offsets = [0, 7], sizes = [2, 121], strides = [1, 1]} : vector<2x128xf32> to vector<2x121xf32>
    %787 = vector.extract_strided_slice %712 {offsets = [0, 0], sizes = [2, 7], strides = [1, 1]} : vector<2x128xf32> to vector<2x7xf32>
    %788 = tpu.concatenate %786, %787 in 1 : vector<2x121xf32>, vector<2x7xf32> -> vector<2x128xf32>
    %789 = vector.extract_strided_slice %27 {offsets = [6, 0], sizes = [1, 128], strides = [1, 1]} : vector<9x128xf32> to vector<1x128xf32>
    %cst_243 = arith.constant 5.000000e-01 : f32
    %790 = vector.broadcast %cst_243 : f32 to vector<1x128xf32>
    %791 = arith.cmpf ogt, %789, %790 : vector<1x128xf32>
    %792 = vector.shape_cast %791 : vector<1x128xi1> to vector<1x128xi1>
    %793 = vector.broadcast %792 : vector<1x128xi1> to vector<2x128xi1>
    %794 = arith.select %793, %788, %712 : vector<2x128xi1>, vector<2x128xf32>
    %795 = arith.maximumf %782, %794 : vector<2x128xf32>
    %796 = vector.broadcast %789 : vector<1x128xf32> to vector<2x128xf32>
    %797 = arith.mulf %796, %788 : vector<2x128xf32>
    %798 = arith.addf %785, %797 : vector<2x128xf32>
    %799 = vector.extract_strided_slice %712 {offsets = [0, 8], sizes = [2, 120], strides = [1, 1]} : vector<2x128xf32> to vector<2x120xf32>
    %800 = vector.extract_strided_slice %712 {offsets = [0, 0], sizes = [2, 8], strides = [1, 1]} : vector<2x128xf32> to vector<2x8xf32>
    %801 = tpu.concatenate %799, %800 in 1 : vector<2x120xf32>, vector<2x8xf32> -> vector<2x128xf32>
    %802 = vector.extract_strided_slice %27 {offsets = [7, 0], sizes = [1, 128], strides = [1, 1]} : vector<9x128xf32> to vector<1x128xf32>
    %cst_244 = arith.constant 5.000000e-01 : f32
    %803 = vector.broadcast %cst_244 : f32 to vector<1x128xf32>
    %804 = arith.cmpf ogt, %802, %803 : vector<1x128xf32>
    %805 = vector.shape_cast %804 : vector<1x128xi1> to vector<1x128xi1>
    %806 = vector.broadcast %805 : vector<1x128xi1> to vector<2x128xi1>
    %807 = arith.select %806, %801, %712 : vector<2x128xi1>, vector<2x128xf32>
    %808 = arith.maximumf %795, %807 : vector<2x128xf32>
    %809 = vector.broadcast %802 : vector<1x128xf32> to vector<2x128xf32>
    %810 = arith.mulf %809, %801 : vector<2x128xf32>
    %811 = arith.addf %798, %810 : vector<2x128xf32>
    %812 = vector.extract_strided_slice %712 {offsets = [0, 9], sizes = [2, 119], strides = [1, 1]} : vector<2x128xf32> to vector<2x119xf32>
    %813 = vector.extract_strided_slice %712 {offsets = [0, 0], sizes = [2, 9], strides = [1, 1]} : vector<2x128xf32> to vector<2x9xf32>
    %814 = tpu.concatenate %812, %813 in 1 : vector<2x119xf32>, vector<2x9xf32> -> vector<2x128xf32>
    %815 = vector.extract_strided_slice %27 {offsets = [8, 0], sizes = [1, 128], strides = [1, 1]} : vector<9x128xf32> to vector<1x128xf32>
    %cst_245 = arith.constant 5.000000e-01 : f32
    %816 = vector.broadcast %cst_245 : f32 to vector<1x128xf32>
    %817 = arith.cmpf ogt, %815, %816 : vector<1x128xf32>
    %818 = vector.shape_cast %817 : vector<1x128xi1> to vector<1x128xi1>
    %819 = vector.broadcast %818 : vector<1x128xi1> to vector<2x128xi1>
    %820 = arith.select %819, %814, %712 : vector<2x128xi1>, vector<2x128xf32>
    %821 = arith.maximumf %808, %820 : vector<2x128xf32>
    %822 = vector.broadcast %815 : vector<1x128xf32> to vector<2x128xf32>
    %823 = arith.mulf %822, %814 : vector<2x128xf32>
    %824 = arith.addf %811, %823 : vector<2x128xf32>
    %825 = vector.broadcast %28 : vector<1x128xf32> to vector<2x128xf32>
    %826 = arith.mulf %824, %825 : vector<2x128xf32>
    %827 = tpu.concatenate %821, %826 in 0 : vector<2x128xf32>, vector<2x128xf32> -> vector<4x128xf32>
    %cst_246 = arith.constant dense<0.000000e+00> : vector<4xf32>
    %828 = vector.multi_reduction <add>, %827, %cst_246 [1] : vector<4x128xf32> to vector<4xf32>
    %829 = vector.shape_cast %828 : vector<4xf32> to vector<4x1xf32>
    %830 = arith.mulf %827, %827 : vector<4x128xf32>
    %cst_247 = arith.constant dense<0.000000e+00> : vector<4xf32>
    %831 = vector.multi_reduction <add>, %830, %cst_247 [1] : vector<4x128xf32> to vector<4xf32>
    %832 = vector.shape_cast %831 : vector<4xf32> to vector<4x1xf32>
    %cst_248 = arith.constant 7.812500e-03 : f32
    %833 = vector.broadcast %cst_248 : f32 to vector<4x1xf32>
    %834 = arith.mulf %829, %833 : vector<4x1xf32>
    %cst_249 = arith.constant 7.812500e-03 : f32
    %835 = vector.broadcast %cst_249 : f32 to vector<4x1xf32>
    %836 = arith.mulf %832, %835 : vector<4x1xf32>
    %837 = arith.mulf %834, %834 : vector<4x1xf32>
    %838 = arith.subf %836, %837 : vector<4x1xf32>
    %cst_250 = arith.constant 0.000000e+00 : f32
    %839 = vector.broadcast %cst_250 : f32 to vector<4x1xf32>
    %840 = arith.maximumf %838, %839 : vector<4x1xf32>
    %841 = vector.broadcast %834 : vector<4x1xf32> to vector<4x128xf32>
    %842 = arith.subf %827, %841 : vector<4x128xf32>
    %cst_251 = arith.constant 9.99999974E-6 : f32
    %843 = vector.broadcast %cst_251 : f32 to vector<4x1xf32>
    %844 = arith.addf %840, %843 : vector<4x1xf32>
    %845 = math.rsqrt %844 : vector<4x1xf32>
    %846 = vector.broadcast %845 : vector<4x1xf32> to vector<4x128xf32>
    %847 = arith.mulf %842, %846 : vector<4x128xf32>
    %848 = vector.extract_strided_slice %847 {offsets = [0, 0], sizes = [2, 128], strides = [1, 1]} : vector<4x128xf32> to vector<2x128xf32>
    %849 = vector.extract_strided_slice %847 {offsets = [2, 0], sizes = [2, 128], strides = [1, 1]} : vector<4x128xf32> to vector<2x128xf32>
    %cst_252 = arith.constant 0.000000e+00 : f32
    %850 = vector.broadcast %cst_252 : f32 to vector<2x128xf32>
    %851 = arith.maximumf %712, %850 : vector<2x128xf32>
    %852 = tpu.concatenate %851, %851, %851, %851 in 0 : vector<2x128xf32>, vector<2x128xf32>, vector<2x128xf32>, vector<2x128xf32> -> vector<8x128xf32>
    %c0_253 = arith.constant 0 : index
    %c0_254 = arith.constant 0 : index
    %c0_255 = arith.constant 0 : index
    %853 = vector.load %arg9[%c0_253, %c0_254, %c0_255] : memref<41x8x128xf32, #tpu.memory_space<vmem>>, vector<1x8x128xf32>
    %854 = vector.shape_cast %853 : vector<1x8x128xf32> to vector<8x128xf32>
    %855 = vector.extract_strided_slice %852 {offsets = [0, 119], sizes = [8, 9], strides = [1, 1]} : vector<8x128xf32> to vector<8x9xf32>
    %856 = vector.extract_strided_slice %852 {offsets = [0, 0], sizes = [8, 119], strides = [1, 1]} : vector<8x128xf32> to vector<8x119xf32>
    %857 = tpu.concatenate %855, %856 in 1 : vector<8x9xf32>, vector<8x119xf32> -> vector<8x128xf32>
    %858 = arith.mulf %854, %857 : vector<8x128xf32>
    %c1_256 = arith.constant 1 : index
    %c0_257 = arith.constant 0 : index
    %c0_258 = arith.constant 0 : index
    %859 = vector.load %arg9[%c1_256, %c0_257, %c0_258] : memref<41x8x128xf32, #tpu.memory_space<vmem>>, vector<1x8x128xf32>
    %860 = vector.shape_cast %859 : vector<1x8x128xf32> to vector<8x128xf32>
    %861 = vector.extract_strided_slice %852 {offsets = [0, 120], sizes = [8, 8], strides = [1, 1]} : vector<8x128xf32> to vector<8x8xf32>
    %862 = vector.extract_strided_slice %852 {offsets = [0, 0], sizes = [8, 120], strides = [1, 1]} : vector<8x128xf32> to vector<8x120xf32>
    %863 = tpu.concatenate %861, %862 in 1 : vector<8x8xf32>, vector<8x120xf32> -> vector<8x128xf32>
    %864 = arith.mulf %860, %863 : vector<8x128xf32>
    %c2_259 = arith.constant 2 : index
    %c0_260 = arith.constant 0 : index
    %c0_261 = arith.constant 0 : index
    %865 = vector.load %arg9[%c2_259, %c0_260, %c0_261] : memref<41x8x128xf32, #tpu.memory_space<vmem>>, vector<1x8x128xf32>
    %866 = vector.shape_cast %865 : vector<1x8x128xf32> to vector<8x128xf32>
    %867 = vector.extract_strided_slice %852 {offsets = [0, 121], sizes = [8, 7], strides = [1, 1]} : vector<8x128xf32> to vector<8x7xf32>
    %868 = vector.extract_strided_slice %852 {offsets = [0, 0], sizes = [8, 121], strides = [1, 1]} : vector<8x128xf32> to vector<8x121xf32>
    %869 = tpu.concatenate %867, %868 in 1 : vector<8x7xf32>, vector<8x121xf32> -> vector<8x128xf32>
    %870 = arith.mulf %866, %869 : vector<8x128xf32>
    %c3_262 = arith.constant 3 : index
    %c0_263 = arith.constant 0 : index
    %c0_264 = arith.constant 0 : index
    %871 = vector.load %arg9[%c3_262, %c0_263, %c0_264] : memref<41x8x128xf32, #tpu.memory_space<vmem>>, vector<1x8x128xf32>
    %872 = vector.shape_cast %871 : vector<1x8x128xf32> to vector<8x128xf32>
    %873 = vector.extract_strided_slice %852 {offsets = [0, 127], sizes = [8, 1], strides = [1, 1]} : vector<8x128xf32> to vector<8x1xf32>
    %874 = vector.extract_strided_slice %852 {offsets = [0, 0], sizes = [8, 127], strides = [1, 1]} : vector<8x128xf32> to vector<8x127xf32>
    %875 = tpu.concatenate %873, %874 in 1 : vector<8x1xf32>, vector<8x127xf32> -> vector<8x128xf32>
    %876 = arith.mulf %872, %875 : vector<8x128xf32>
    %c4_265 = arith.constant 4 : index
    %c0_266 = arith.constant 0 : index
    %c0_267 = arith.constant 0 : index
    %877 = vector.load %arg9[%c4_265, %c0_266, %c0_267] : memref<41x8x128xf32, #tpu.memory_space<vmem>>, vector<1x8x128xf32>
    %878 = vector.shape_cast %877 : vector<1x8x128xf32> to vector<8x128xf32>
    %879 = arith.mulf %878, %852 : vector<8x128xf32>
    %880 = arith.addf %858, %879 : vector<8x128xf32>
    %c5_268 = arith.constant 5 : index
    %c0_269 = arith.constant 0 : index
    %c0_270 = arith.constant 0 : index
    %881 = vector.load %arg9[%c5_268, %c0_269, %c0_270] : memref<41x8x128xf32, #tpu.memory_space<vmem>>, vector<1x8x128xf32>
    %882 = vector.shape_cast %881 : vector<1x8x128xf32> to vector<8x128xf32>
    %883 = vector.extract_strided_slice %852 {offsets = [0, 1], sizes = [8, 127], strides = [1, 1]} : vector<8x128xf32> to vector<8x127xf32>
    %884 = vector.extract_strided_slice %852 {offsets = [0, 0], sizes = [8, 1], strides = [1, 1]} : vector<8x128xf32> to vector<8x1xf32>
    %885 = tpu.concatenate %883, %884 in 1 : vector<8x127xf32>, vector<8x1xf32> -> vector<8x128xf32>
    %886 = arith.mulf %882, %885 : vector<8x128xf32>
    %887 = arith.addf %864, %886 : vector<8x128xf32>
    %c6_271 = arith.constant 6 : index
    %c0_272 = arith.constant 0 : index
    %c0_273 = arith.constant 0 : index
    %888 = vector.load %arg9[%c6_271, %c0_272, %c0_273] : memref<41x8x128xf32, #tpu.memory_space<vmem>>, vector<1x8x128xf32>
    %889 = vector.shape_cast %888 : vector<1x8x128xf32> to vector<8x128xf32>
    %890 = vector.extract_strided_slice %852 {offsets = [0, 7], sizes = [8, 121], strides = [1, 1]} : vector<8x128xf32> to vector<8x121xf32>
    %891 = vector.extract_strided_slice %852 {offsets = [0, 0], sizes = [8, 7], strides = [1, 1]} : vector<8x128xf32> to vector<8x7xf32>
    %892 = tpu.concatenate %890, %891 in 1 : vector<8x121xf32>, vector<8x7xf32> -> vector<8x128xf32>
    %893 = arith.mulf %889, %892 : vector<8x128xf32>
    %894 = arith.addf %870, %893 : vector<8x128xf32>
    %c7_274 = arith.constant 7 : index
    %c0_275 = arith.constant 0 : index
    %c0_276 = arith.constant 0 : index
    %895 = vector.load %arg9[%c7_274, %c0_275, %c0_276] : memref<41x8x128xf32, #tpu.memory_space<vmem>>, vector<1x8x128xf32>
    %896 = vector.shape_cast %895 : vector<1x8x128xf32> to vector<8x128xf32>
    %897 = vector.extract_strided_slice %852 {offsets = [0, 8], sizes = [8, 120], strides = [1, 1]} : vector<8x128xf32> to vector<8x120xf32>
    %898 = vector.extract_strided_slice %852 {offsets = [0, 0], sizes = [8, 8], strides = [1, 1]} : vector<8x128xf32> to vector<8x8xf32>
    %899 = tpu.concatenate %897, %898 in 1 : vector<8x120xf32>, vector<8x8xf32> -> vector<8x128xf32>
    %900 = arith.mulf %896, %899 : vector<8x128xf32>
    %901 = arith.addf %876, %900 : vector<8x128xf32>
    %c8_277 = arith.constant 8 : index
    %c0_278 = arith.constant 0 : index
    %c0_279 = arith.constant 0 : index
    %902 = vector.load %arg9[%c8_277, %c0_278, %c0_279] : memref<41x8x128xf32, #tpu.memory_space<vmem>>, vector<1x8x128xf32>
    %903 = vector.shape_cast %902 : vector<1x8x128xf32> to vector<8x128xf32>
    %904 = vector.extract_strided_slice %852 {offsets = [0, 9], sizes = [8, 119], strides = [1, 1]} : vector<8x128xf32> to vector<8x119xf32>
    %905 = vector.extract_strided_slice %852 {offsets = [0, 0], sizes = [8, 9], strides = [1, 1]} : vector<8x128xf32> to vector<8x9xf32>
    %906 = tpu.concatenate %904, %905 in 1 : vector<8x119xf32>, vector<8x9xf32> -> vector<8x128xf32>
    %907 = arith.mulf %903, %906 : vector<8x128xf32>
    %908 = arith.addf %880, %907 : vector<8x128xf32>
    %c9_280 = arith.constant 9 : index
    %c0_281 = arith.constant 0 : index
    %c0_282 = arith.constant 0 : index
    %909 = vector.load %arg9[%c9_280, %c0_281, %c0_282] : memref<41x8x128xf32, #tpu.memory_space<vmem>>, vector<1x8x128xf32>
    %910 = vector.shape_cast %909 : vector<1x8x128xf32> to vector<8x128xf32>
    %911 = vector.extract_strided_slice %852 {offsets = [0, 110], sizes = [8, 18], strides = [1, 1]} : vector<8x128xf32> to vector<8x18xf32>
    %912 = vector.extract_strided_slice %852 {offsets = [0, 0], sizes = [8, 110], strides = [1, 1]} : vector<8x128xf32> to vector<8x110xf32>
    %913 = tpu.concatenate %911, %912 in 1 : vector<8x18xf32>, vector<8x110xf32> -> vector<8x128xf32>
    %914 = arith.mulf %910, %913 : vector<8x128xf32>
    %915 = arith.addf %887, %914 : vector<8x128xf32>
    %c10_283 = arith.constant 10 : index
    %c0_284 = arith.constant 0 : index
    %c0_285 = arith.constant 0 : index
    %916 = vector.load %arg9[%c10_283, %c0_284, %c0_285] : memref<41x8x128xf32, #tpu.memory_space<vmem>>, vector<1x8x128xf32>
    %917 = vector.shape_cast %916 : vector<1x8x128xf32> to vector<8x128xf32>
    %918 = vector.extract_strided_slice %852 {offsets = [0, 111], sizes = [8, 17], strides = [1, 1]} : vector<8x128xf32> to vector<8x17xf32>
    %919 = vector.extract_strided_slice %852 {offsets = [0, 0], sizes = [8, 111], strides = [1, 1]} : vector<8x128xf32> to vector<8x111xf32>
    %920 = tpu.concatenate %918, %919 in 1 : vector<8x17xf32>, vector<8x111xf32> -> vector<8x128xf32>
    %921 = arith.mulf %917, %920 : vector<8x128xf32>
    %922 = arith.addf %894, %921 : vector<8x128xf32>
    %c11_286 = arith.constant 11 : index
    %c0_287 = arith.constant 0 : index
    %c0_288 = arith.constant 0 : index
    %923 = vector.load %arg9[%c11_286, %c0_287, %c0_288] : memref<41x8x128xf32, #tpu.memory_space<vmem>>, vector<1x8x128xf32>
    %924 = vector.shape_cast %923 : vector<1x8x128xf32> to vector<8x128xf32>
    %925 = vector.extract_strided_slice %852 {offsets = [0, 112], sizes = [8, 16], strides = [1, 1]} : vector<8x128xf32> to vector<8x16xf32>
    %926 = vector.extract_strided_slice %852 {offsets = [0, 0], sizes = [8, 112], strides = [1, 1]} : vector<8x128xf32> to vector<8x112xf32>
    %927 = tpu.concatenate %925, %926 in 1 : vector<8x16xf32>, vector<8x112xf32> -> vector<8x128xf32>
    %928 = arith.mulf %924, %927 : vector<8x128xf32>
    %929 = arith.addf %901, %928 : vector<8x128xf32>
    %c12_289 = arith.constant 12 : index
    %c0_290 = arith.constant 0 : index
    %c0_291 = arith.constant 0 : index
    %930 = vector.load %arg9[%c12_289, %c0_290, %c0_291] : memref<41x8x128xf32, #tpu.memory_space<vmem>>, vector<1x8x128xf32>
    %931 = vector.shape_cast %930 : vector<1x8x128xf32> to vector<8x128xf32>
    %932 = vector.extract_strided_slice %852 {offsets = [0, 113], sizes = [8, 15], strides = [1, 1]} : vector<8x128xf32> to vector<8x15xf32>
    %933 = vector.extract_strided_slice %852 {offsets = [0, 0], sizes = [8, 113], strides = [1, 1]} : vector<8x128xf32> to vector<8x113xf32>
    %934 = tpu.concatenate %932, %933 in 1 : vector<8x15xf32>, vector<8x113xf32> -> vector<8x128xf32>
    %935 = arith.mulf %931, %934 : vector<8x128xf32>
    %936 = arith.addf %908, %935 : vector<8x128xf32>
    %c13_292 = arith.constant 13 : index
    %c0_293 = arith.constant 0 : index
    %c0_294 = arith.constant 0 : index
    %937 = vector.load %arg9[%c13_292, %c0_293, %c0_294] : memref<41x8x128xf32, #tpu.memory_space<vmem>>, vector<1x8x128xf32>
    %938 = vector.shape_cast %937 : vector<1x8x128xf32> to vector<8x128xf32>
    %939 = vector.extract_strided_slice %852 {offsets = [0, 114], sizes = [8, 14], strides = [1, 1]} : vector<8x128xf32> to vector<8x14xf32>
    %940 = vector.extract_strided_slice %852 {offsets = [0, 0], sizes = [8, 114], strides = [1, 1]} : vector<8x128xf32> to vector<8x114xf32>
    %941 = tpu.concatenate %939, %940 in 1 : vector<8x14xf32>, vector<8x114xf32> -> vector<8x128xf32>
    %942 = arith.mulf %938, %941 : vector<8x128xf32>
    %943 = arith.addf %915, %942 : vector<8x128xf32>
    %c14_295 = arith.constant 14 : index
    %c0_296 = arith.constant 0 : index
    %c0_297 = arith.constant 0 : index
    %944 = vector.load %arg9[%c14_295, %c0_296, %c0_297] : memref<41x8x128xf32, #tpu.memory_space<vmem>>, vector<1x8x128xf32>
    %945 = vector.shape_cast %944 : vector<1x8x128xf32> to vector<8x128xf32>
    %946 = vector.extract_strided_slice %852 {offsets = [0, 118], sizes = [8, 10], strides = [1, 1]} : vector<8x128xf32> to vector<8x10xf32>
    %947 = vector.extract_strided_slice %852 {offsets = [0, 0], sizes = [8, 118], strides = [1, 1]} : vector<8x128xf32> to vector<8x118xf32>
    %948 = tpu.concatenate %946, %947 in 1 : vector<8x10xf32>, vector<8x118xf32> -> vector<8x128xf32>
    %949 = arith.mulf %945, %948 : vector<8x128xf32>
    %950 = arith.addf %922, %949 : vector<8x128xf32>
    %c15_298 = arith.constant 15 : index
    %c0_299 = arith.constant 0 : index
    %c0_300 = arith.constant 0 : index
    %951 = vector.load %arg9[%c15_298, %c0_299, %c0_300] : memref<41x8x128xf32, #tpu.memory_space<vmem>>, vector<1x8x128xf32>
    %952 = vector.shape_cast %951 : vector<1x8x128xf32> to vector<8x128xf32>
    %953 = vector.extract_strided_slice %852 {offsets = [0, 122], sizes = [8, 6], strides = [1, 1]} : vector<8x128xf32> to vector<8x6xf32>
    %954 = vector.extract_strided_slice %852 {offsets = [0, 0], sizes = [8, 122], strides = [1, 1]} : vector<8x128xf32> to vector<8x122xf32>
    %955 = tpu.concatenate %953, %954 in 1 : vector<8x6xf32>, vector<8x122xf32> -> vector<8x128xf32>
    %956 = arith.mulf %952, %955 : vector<8x128xf32>
    %957 = arith.addf %929, %956 : vector<8x128xf32>
    %c16_301 = arith.constant 16 : index
    %c0_302 = arith.constant 0 : index
    %c0_303 = arith.constant 0 : index
    %958 = vector.load %arg9[%c16_301, %c0_302, %c0_303] : memref<41x8x128xf32, #tpu.memory_space<vmem>>, vector<1x8x128xf32>
    %959 = vector.shape_cast %958 : vector<1x8x128xf32> to vector<8x128xf32>
    %960 = vector.extract_strided_slice %852 {offsets = [0, 126], sizes = [8, 2], strides = [1, 1]} : vector<8x128xf32> to vector<8x2xf32>
    %961 = vector.extract_strided_slice %852 {offsets = [0, 0], sizes = [8, 126], strides = [1, 1]} : vector<8x128xf32> to vector<8x126xf32>
    %962 = tpu.concatenate %960, %961 in 1 : vector<8x2xf32>, vector<8x126xf32> -> vector<8x128xf32>
    %963 = arith.mulf %959, %962 : vector<8x128xf32>
    %964 = arith.addf %936, %963 : vector<8x128xf32>
    %c17_304 = arith.constant 17 : index
    %c0_305 = arith.constant 0 : index
    %c0_306 = arith.constant 0 : index
    %965 = vector.load %arg9[%c17_304, %c0_305, %c0_306] : memref<41x8x128xf32, #tpu.memory_space<vmem>>, vector<1x8x128xf32>
    %966 = vector.shape_cast %965 : vector<1x8x128xf32> to vector<8x128xf32>
    %967 = vector.extract_strided_slice %852 {offsets = [0, 2], sizes = [8, 126], strides = [1, 1]} : vector<8x128xf32> to vector<8x126xf32>
    %968 = vector.extract_strided_slice %852 {offsets = [0, 0], sizes = [8, 2], strides = [1, 1]} : vector<8x128xf32> to vector<8x2xf32>
    %969 = tpu.concatenate %967, %968 in 1 : vector<8x126xf32>, vector<8x2xf32> -> vector<8x128xf32>
    %970 = arith.mulf %966, %969 : vector<8x128xf32>
    %971 = arith.addf %943, %970 : vector<8x128xf32>
    %c18_307 = arith.constant 18 : index
    %c0_308 = arith.constant 0 : index
    %c0_309 = arith.constant 0 : index
    %972 = vector.load %arg9[%c18_307, %c0_308, %c0_309] : memref<41x8x128xf32, #tpu.memory_space<vmem>>, vector<1x8x128xf32>
    %973 = vector.shape_cast %972 : vector<1x8x128xf32> to vector<8x128xf32>
    %974 = vector.extract_strided_slice %852 {offsets = [0, 6], sizes = [8, 122], strides = [1, 1]} : vector<8x128xf32> to vector<8x122xf32>
    %975 = vector.extract_strided_slice %852 {offsets = [0, 0], sizes = [8, 6], strides = [1, 1]} : vector<8x128xf32> to vector<8x6xf32>
    %976 = tpu.concatenate %974, %975 in 1 : vector<8x122xf32>, vector<8x6xf32> -> vector<8x128xf32>
    %977 = arith.mulf %973, %976 : vector<8x128xf32>
    %978 = arith.addf %950, %977 : vector<8x128xf32>
    %c19_310 = arith.constant 19 : index
    %c0_311 = arith.constant 0 : index
    %c0_312 = arith.constant 0 : index
    %979 = vector.load %arg9[%c19_310, %c0_311, %c0_312] : memref<41x8x128xf32, #tpu.memory_space<vmem>>, vector<1x8x128xf32>
    %980 = vector.shape_cast %979 : vector<1x8x128xf32> to vector<8x128xf32>
    %981 = vector.extract_strided_slice %852 {offsets = [0, 10], sizes = [8, 118], strides = [1, 1]} : vector<8x128xf32> to vector<8x118xf32>
    %982 = vector.extract_strided_slice %852 {offsets = [0, 0], sizes = [8, 10], strides = [1, 1]} : vector<8x128xf32> to vector<8x10xf32>
    %983 = tpu.concatenate %981, %982 in 1 : vector<8x118xf32>, vector<8x10xf32> -> vector<8x128xf32>
    %984 = arith.mulf %980, %983 : vector<8x128xf32>
    %985 = arith.addf %957, %984 : vector<8x128xf32>
    %c20_313 = arith.constant 20 : index
    %c0_314 = arith.constant 0 : index
    %c0_315 = arith.constant 0 : index
    %986 = vector.load %arg9[%c20_313, %c0_314, %c0_315] : memref<41x8x128xf32, #tpu.memory_space<vmem>>, vector<1x8x128xf32>
    %987 = vector.shape_cast %986 : vector<1x8x128xf32> to vector<8x128xf32>
    %988 = vector.extract_strided_slice %852 {offsets = [0, 14], sizes = [8, 114], strides = [1, 1]} : vector<8x128xf32> to vector<8x114xf32>
    %989 = vector.extract_strided_slice %852 {offsets = [0, 0], sizes = [8, 14], strides = [1, 1]} : vector<8x128xf32> to vector<8x14xf32>
    %990 = tpu.concatenate %988, %989 in 1 : vector<8x114xf32>, vector<8x14xf32> -> vector<8x128xf32>
    %991 = arith.mulf %987, %990 : vector<8x128xf32>
    %992 = arith.addf %964, %991 : vector<8x128xf32>
    %c21_316 = arith.constant 21 : index
    %c0_317 = arith.constant 0 : index
    %c0_318 = arith.constant 0 : index
    %993 = vector.load %arg9[%c21_316, %c0_317, %c0_318] : memref<41x8x128xf32, #tpu.memory_space<vmem>>, vector<1x8x128xf32>
    %994 = vector.shape_cast %993 : vector<1x8x128xf32> to vector<8x128xf32>
    %995 = vector.extract_strided_slice %852 {offsets = [0, 15], sizes = [8, 113], strides = [1, 1]} : vector<8x128xf32> to vector<8x113xf32>
    %996 = vector.extract_strided_slice %852 {offsets = [0, 0], sizes = [8, 15], strides = [1, 1]} : vector<8x128xf32> to vector<8x15xf32>
    %997 = tpu.concatenate %995, %996 in 1 : vector<8x113xf32>, vector<8x15xf32> -> vector<8x128xf32>
    %998 = arith.mulf %994, %997 : vector<8x128xf32>
    %999 = arith.addf %971, %998 : vector<8x128xf32>
    %c22_319 = arith.constant 22 : index
    %c0_320 = arith.constant 0 : index
    %c0_321 = arith.constant 0 : index
    %1000 = vector.load %arg9[%c22_319, %c0_320, %c0_321] : memref<41x8x128xf32, #tpu.memory_space<vmem>>, vector<1x8x128xf32>
    %1001 = vector.shape_cast %1000 : vector<1x8x128xf32> to vector<8x128xf32>
    %1002 = vector.extract_strided_slice %852 {offsets = [0, 16], sizes = [8, 112], strides = [1, 1]} : vector<8x128xf32> to vector<8x112xf32>
    %1003 = vector.extract_strided_slice %852 {offsets = [0, 0], sizes = [8, 16], strides = [1, 1]} : vector<8x128xf32> to vector<8x16xf32>
    %1004 = tpu.concatenate %1002, %1003 in 1 : vector<8x112xf32>, vector<8x16xf32> -> vector<8x128xf32>
    %1005 = arith.mulf %1001, %1004 : vector<8x128xf32>
    %1006 = arith.addf %978, %1005 : vector<8x128xf32>
    %c23_322 = arith.constant 23 : index
    %c0_323 = arith.constant 0 : index
    %c0_324 = arith.constant 0 : index
    %1007 = vector.load %arg9[%c23_322, %c0_323, %c0_324] : memref<41x8x128xf32, #tpu.memory_space<vmem>>, vector<1x8x128xf32>
    %1008 = vector.shape_cast %1007 : vector<1x8x128xf32> to vector<8x128xf32>
    %1009 = vector.extract_strided_slice %852 {offsets = [0, 17], sizes = [8, 111], strides = [1, 1]} : vector<8x128xf32> to vector<8x111xf32>
    %1010 = vector.extract_strided_slice %852 {offsets = [0, 0], sizes = [8, 17], strides = [1, 1]} : vector<8x128xf32> to vector<8x17xf32>
    %1011 = tpu.concatenate %1009, %1010 in 1 : vector<8x111xf32>, vector<8x17xf32> -> vector<8x128xf32>
    %1012 = arith.mulf %1008, %1011 : vector<8x128xf32>
    %1013 = arith.addf %985, %1012 : vector<8x128xf32>
    %c24_325 = arith.constant 24 : index
    %c0_326 = arith.constant 0 : index
    %c0_327 = arith.constant 0 : index
    %1014 = vector.load %arg9[%c24_325, %c0_326, %c0_327] : memref<41x8x128xf32, #tpu.memory_space<vmem>>, vector<1x8x128xf32>
    %1015 = vector.shape_cast %1014 : vector<1x8x128xf32> to vector<8x128xf32>
    %1016 = vector.extract_strided_slice %852 {offsets = [0, 18], sizes = [8, 110], strides = [1, 1]} : vector<8x128xf32> to vector<8x110xf32>
    %1017 = vector.extract_strided_slice %852 {offsets = [0, 0], sizes = [8, 18], strides = [1, 1]} : vector<8x128xf32> to vector<8x18xf32>
    %1018 = tpu.concatenate %1016, %1017 in 1 : vector<8x110xf32>, vector<8x18xf32> -> vector<8x128xf32>
    %1019 = arith.mulf %1015, %1018 : vector<8x128xf32>
    %1020 = arith.addf %992, %1019 : vector<8x128xf32>
    %c25_328 = arith.constant 25 : index
    %c0_329 = arith.constant 0 : index
    %c0_330 = arith.constant 0 : index
    %1021 = vector.load %arg9[%c25_328, %c0_329, %c0_330] : memref<41x8x128xf32, #tpu.memory_space<vmem>>, vector<1x8x128xf32>
    %1022 = vector.shape_cast %1021 : vector<1x8x128xf32> to vector<8x128xf32>
    %1023 = vector.extract_strided_slice %852 {offsets = [0, 92], sizes = [8, 36], strides = [1, 1]} : vector<8x128xf32> to vector<8x36xf32>
    %1024 = vector.extract_strided_slice %852 {offsets = [0, 0], sizes = [8, 92], strides = [1, 1]} : vector<8x128xf32> to vector<8x92xf32>
    %1025 = tpu.concatenate %1023, %1024 in 1 : vector<8x36xf32>, vector<8x92xf32> -> vector<8x128xf32>
    %1026 = arith.mulf %1022, %1025 : vector<8x128xf32>
    %1027 = arith.addf %999, %1026 : vector<8x128xf32>
    %c26_331 = arith.constant 26 : index
    %c0_332 = arith.constant 0 : index
    %c0_333 = arith.constant 0 : index
    %1028 = vector.load %arg9[%c26_331, %c0_332, %c0_333] : memref<41x8x128xf32, #tpu.memory_space<vmem>>, vector<1x8x128xf32>
    %1029 = vector.shape_cast %1028 : vector<1x8x128xf32> to vector<8x128xf32>
    %1030 = vector.extract_strided_slice %852 {offsets = [0, 94], sizes = [8, 34], strides = [1, 1]} : vector<8x128xf32> to vector<8x34xf32>
    %1031 = vector.extract_strided_slice %852 {offsets = [0, 0], sizes = [8, 94], strides = [1, 1]} : vector<8x128xf32> to vector<8x94xf32>
    %1032 = tpu.concatenate %1030, %1031 in 1 : vector<8x34xf32>, vector<8x94xf32> -> vector<8x128xf32>
    %1033 = arith.mulf %1029, %1032 : vector<8x128xf32>
    %1034 = arith.addf %1006, %1033 : vector<8x128xf32>
    %c27_334 = arith.constant 27 : index
    %c0_335 = arith.constant 0 : index
    %c0_336 = arith.constant 0 : index
    %1035 = vector.load %arg9[%c27_334, %c0_335, %c0_336] : memref<41x8x128xf32, #tpu.memory_space<vmem>>, vector<1x8x128xf32>
    %1036 = vector.shape_cast %1035 : vector<1x8x128xf32> to vector<8x128xf32>
    %1037 = vector.extract_strided_slice %852 {offsets = [0, 96], sizes = [8, 32], strides = [1, 1]} : vector<8x128xf32> to vector<8x32xf32>
    %1038 = vector.extract_strided_slice %852 {offsets = [0, 0], sizes = [8, 96], strides = [1, 1]} : vector<8x128xf32> to vector<8x96xf32>
    %1039 = tpu.concatenate %1037, %1038 in 1 : vector<8x32xf32>, vector<8x96xf32> -> vector<8x128xf32>
    %1040 = arith.mulf %1036, %1039 : vector<8x128xf32>
    %1041 = arith.addf %1013, %1040 : vector<8x128xf32>
    %c28_337 = arith.constant 28 : index
    %c0_338 = arith.constant 0 : index
    %c0_339 = arith.constant 0 : index
    %1042 = vector.load %arg9[%c28_337, %c0_338, %c0_339] : memref<41x8x128xf32, #tpu.memory_space<vmem>>, vector<1x8x128xf32>
    %1043 = vector.shape_cast %1042 : vector<1x8x128xf32> to vector<8x128xf32>
    %1044 = vector.extract_strided_slice %852 {offsets = [0, 98], sizes = [8, 30], strides = [1, 1]} : vector<8x128xf32> to vector<8x30xf32>
    %1045 = vector.extract_strided_slice %852 {offsets = [0, 0], sizes = [8, 98], strides = [1, 1]} : vector<8x128xf32> to vector<8x98xf32>
    %1046 = tpu.concatenate %1044, %1045 in 1 : vector<8x30xf32>, vector<8x98xf32> -> vector<8x128xf32>
    %1047 = arith.mulf %1043, %1046 : vector<8x128xf32>
    %1048 = arith.addf %1020, %1047 : vector<8x128xf32>
    %c29_340 = arith.constant 29 : index
    %c0_341 = arith.constant 0 : index
    %c0_342 = arith.constant 0 : index
    %1049 = vector.load %arg9[%c29_340, %c0_341, %c0_342] : memref<41x8x128xf32, #tpu.memory_space<vmem>>, vector<1x8x128xf32>
    %1050 = vector.shape_cast %1049 : vector<1x8x128xf32> to vector<8x128xf32>
    %1051 = vector.extract_strided_slice %852 {offsets = [0, 100], sizes = [8, 28], strides = [1, 1]} : vector<8x128xf32> to vector<8x28xf32>
    %1052 = vector.extract_strided_slice %852 {offsets = [0, 0], sizes = [8, 100], strides = [1, 1]} : vector<8x128xf32> to vector<8x100xf32>
    %1053 = tpu.concatenate %1051, %1052 in 1 : vector<8x28xf32>, vector<8x100xf32> -> vector<8x128xf32>
    %1054 = arith.mulf %1050, %1053 : vector<8x128xf32>
    %1055 = arith.addf %1027, %1054 : vector<8x128xf32>
    %c30_343 = arith.constant 30 : index
    %c0_344 = arith.constant 0 : index
    %c0_345 = arith.constant 0 : index
    %1056 = vector.load %arg9[%c30_343, %c0_344, %c0_345] : memref<41x8x128xf32, #tpu.memory_space<vmem>>, vector<1x8x128xf32>
    %1057 = vector.shape_cast %1056 : vector<1x8x128xf32> to vector<8x128xf32>
    %1058 = vector.extract_strided_slice %852 {offsets = [0, 108], sizes = [8, 20], strides = [1, 1]} : vector<8x128xf32> to vector<8x20xf32>
    %1059 = vector.extract_strided_slice %852 {offsets = [0, 0], sizes = [8, 108], strides = [1, 1]} : vector<8x128xf32> to vector<8x108xf32>
    %1060 = tpu.concatenate %1058, %1059 in 1 : vector<8x20xf32>, vector<8x108xf32> -> vector<8x128xf32>
    %1061 = arith.mulf %1057, %1060 : vector<8x128xf32>
    %1062 = arith.addf %1034, %1061 : vector<8x128xf32>
    %c31_346 = arith.constant 31 : index
    %c0_347 = arith.constant 0 : index
    %c0_348 = arith.constant 0 : index
    %1063 = vector.load %arg9[%c31_346, %c0_347, %c0_348] : memref<41x8x128xf32, #tpu.memory_space<vmem>>, vector<1x8x128xf32>
    %1064 = vector.shape_cast %1063 : vector<1x8x128xf32> to vector<8x128xf32>
    %1065 = vector.extract_strided_slice %852 {offsets = [0, 116], sizes = [8, 12], strides = [1, 1]} : vector<8x128xf32> to vector<8x12xf32>
    %1066 = vector.extract_strided_slice %852 {offsets = [0, 0], sizes = [8, 116], strides = [1, 1]} : vector<8x128xf32> to vector<8x116xf32>
    %1067 = tpu.concatenate %1065, %1066 in 1 : vector<8x12xf32>, vector<8x116xf32> -> vector<8x128xf32>
    %1068 = arith.mulf %1064, %1067 : vector<8x128xf32>
    %1069 = arith.addf %1041, %1068 : vector<8x128xf32>
    %c32_349 = arith.constant 32 : index
    %c0_350 = arith.constant 0 : index
    %c0_351 = arith.constant 0 : index
    %1070 = vector.load %arg9[%c32_349, %c0_350, %c0_351] : memref<41x8x128xf32, #tpu.memory_space<vmem>>, vector<1x8x128xf32>
    %1071 = vector.shape_cast %1070 : vector<1x8x128xf32> to vector<8x128xf32>
    %1072 = vector.extract_strided_slice %852 {offsets = [0, 124], sizes = [8, 4], strides = [1, 1]} : vector<8x128xf32> to vector<8x4xf32>
    %1073 = vector.extract_strided_slice %852 {offsets = [0, 0], sizes = [8, 124], strides = [1, 1]} : vector<8x128xf32> to vector<8x124xf32>
    %1074 = tpu.concatenate %1072, %1073 in 1 : vector<8x4xf32>, vector<8x124xf32> -> vector<8x128xf32>
    %1075 = arith.mulf %1071, %1074 : vector<8x128xf32>
    %1076 = arith.addf %1048, %1075 : vector<8x128xf32>
    %c33_352 = arith.constant 33 : index
    %c0_353 = arith.constant 0 : index
    %c0_354 = arith.constant 0 : index
    %1077 = vector.load %arg9[%c33_352, %c0_353, %c0_354] : memref<41x8x128xf32, #tpu.memory_space<vmem>>, vector<1x8x128xf32>
    %1078 = vector.shape_cast %1077 : vector<1x8x128xf32> to vector<8x128xf32>
    %1079 = vector.extract_strided_slice %852 {offsets = [0, 4], sizes = [8, 124], strides = [1, 1]} : vector<8x128xf32> to vector<8x124xf32>
    %1080 = vector.extract_strided_slice %852 {offsets = [0, 0], sizes = [8, 4], strides = [1, 1]} : vector<8x128xf32> to vector<8x4xf32>
    %1081 = tpu.concatenate %1079, %1080 in 1 : vector<8x124xf32>, vector<8x4xf32> -> vector<8x128xf32>
    %1082 = arith.mulf %1078, %1081 : vector<8x128xf32>
    %1083 = arith.addf %1055, %1082 : vector<8x128xf32>
    %c34_355 = arith.constant 34 : index
    %c0_356 = arith.constant 0 : index
    %c0_357 = arith.constant 0 : index
    %1084 = vector.load %arg9[%c34_355, %c0_356, %c0_357] : memref<41x8x128xf32, #tpu.memory_space<vmem>>, vector<1x8x128xf32>
    %1085 = vector.shape_cast %1084 : vector<1x8x128xf32> to vector<8x128xf32>
    %1086 = vector.extract_strided_slice %852 {offsets = [0, 12], sizes = [8, 116], strides = [1, 1]} : vector<8x128xf32> to vector<8x116xf32>
    %1087 = vector.extract_strided_slice %852 {offsets = [0, 0], sizes = [8, 12], strides = [1, 1]} : vector<8x128xf32> to vector<8x12xf32>
    %1088 = tpu.concatenate %1086, %1087 in 1 : vector<8x116xf32>, vector<8x12xf32> -> vector<8x128xf32>
    %1089 = arith.mulf %1085, %1088 : vector<8x128xf32>
    %1090 = arith.addf %1062, %1089 : vector<8x128xf32>
    %c35_358 = arith.constant 35 : index
    %c0_359 = arith.constant 0 : index
    %c0_360 = arith.constant 0 : index
    %1091 = vector.load %arg9[%c35_358, %c0_359, %c0_360] : memref<41x8x128xf32, #tpu.memory_space<vmem>>, vector<1x8x128xf32>
    %1092 = vector.shape_cast %1091 : vector<1x8x128xf32> to vector<8x128xf32>
    %1093 = vector.extract_strided_slice %852 {offsets = [0, 20], sizes = [8, 108], strides = [1, 1]} : vector<8x128xf32> to vector<8x108xf32>
    %1094 = vector.extract_strided_slice %852 {offsets = [0, 0], sizes = [8, 20], strides = [1, 1]} : vector<8x128xf32> to vector<8x20xf32>
    %1095 = tpu.concatenate %1093, %1094 in 1 : vector<8x108xf32>, vector<8x20xf32> -> vector<8x128xf32>
    %1096 = arith.mulf %1092, %1095 : vector<8x128xf32>
    %1097 = arith.addf %1069, %1096 : vector<8x128xf32>
    %c36_361 = arith.constant 36 : index
    %c0_362 = arith.constant 0 : index
    %c0_363 = arith.constant 0 : index
    %1098 = vector.load %arg9[%c36_361, %c0_362, %c0_363] : memref<41x8x128xf32, #tpu.memory_space<vmem>>, vector<1x8x128xf32>
    %1099 = vector.shape_cast %1098 : vector<1x8x128xf32> to vector<8x128xf32>
    %1100 = vector.extract_strided_slice %852 {offsets = [0, 28], sizes = [8, 100], strides = [1, 1]} : vector<8x128xf32> to vector<8x100xf32>
    %1101 = vector.extract_strided_slice %852 {offsets = [0, 0], sizes = [8, 28], strides = [1, 1]} : vector<8x128xf32> to vector<8x28xf32>
    %1102 = tpu.concatenate %1100, %1101 in 1 : vector<8x100xf32>, vector<8x28xf32> -> vector<8x128xf32>
    %1103 = arith.mulf %1099, %1102 : vector<8x128xf32>
    %1104 = arith.addf %1076, %1103 : vector<8x128xf32>
    %c37_364 = arith.constant 37 : index
    %c0_365 = arith.constant 0 : index
    %c0_366 = arith.constant 0 : index
    %1105 = vector.load %arg9[%c37_364, %c0_365, %c0_366] : memref<41x8x128xf32, #tpu.memory_space<vmem>>, vector<1x8x128xf32>
    %1106 = vector.shape_cast %1105 : vector<1x8x128xf32> to vector<8x128xf32>
    %1107 = vector.extract_strided_slice %852 {offsets = [0, 30], sizes = [8, 98], strides = [1, 1]} : vector<8x128xf32> to vector<8x98xf32>
    %1108 = vector.extract_strided_slice %852 {offsets = [0, 0], sizes = [8, 30], strides = [1, 1]} : vector<8x128xf32> to vector<8x30xf32>
    %1109 = tpu.concatenate %1107, %1108 in 1 : vector<8x98xf32>, vector<8x30xf32> -> vector<8x128xf32>
    %1110 = arith.mulf %1106, %1109 : vector<8x128xf32>
    %1111 = arith.addf %1083, %1110 : vector<8x128xf32>
    %c38_367 = arith.constant 38 : index
    %c0_368 = arith.constant 0 : index
    %c0_369 = arith.constant 0 : index
    %1112 = vector.load %arg9[%c38_367, %c0_368, %c0_369] : memref<41x8x128xf32, #tpu.memory_space<vmem>>, vector<1x8x128xf32>
    %1113 = vector.shape_cast %1112 : vector<1x8x128xf32> to vector<8x128xf32>
    %1114 = vector.extract_strided_slice %852 {offsets = [0, 32], sizes = [8, 96], strides = [1, 1]} : vector<8x128xf32> to vector<8x96xf32>
    %1115 = vector.extract_strided_slice %852 {offsets = [0, 0], sizes = [8, 32], strides = [1, 1]} : vector<8x128xf32> to vector<8x32xf32>
    %1116 = tpu.concatenate %1114, %1115 in 1 : vector<8x96xf32>, vector<8x32xf32> -> vector<8x128xf32>
    %1117 = arith.mulf %1113, %1116 : vector<8x128xf32>
    %1118 = arith.addf %1090, %1117 : vector<8x128xf32>
    %c39_370 = arith.constant 39 : index
    %c0_371 = arith.constant 0 : index
    %c0_372 = arith.constant 0 : index
    %1119 = vector.load %arg9[%c39_370, %c0_371, %c0_372] : memref<41x8x128xf32, #tpu.memory_space<vmem>>, vector<1x8x128xf32>
    %1120 = vector.shape_cast %1119 : vector<1x8x128xf32> to vector<8x128xf32>
    %1121 = vector.extract_strided_slice %852 {offsets = [0, 34], sizes = [8, 94], strides = [1, 1]} : vector<8x128xf32> to vector<8x94xf32>
    %1122 = vector.extract_strided_slice %852 {offsets = [0, 0], sizes = [8, 34], strides = [1, 1]} : vector<8x128xf32> to vector<8x34xf32>
    %1123 = tpu.concatenate %1121, %1122 in 1 : vector<8x94xf32>, vector<8x34xf32> -> vector<8x128xf32>
    %1124 = arith.mulf %1120, %1123 : vector<8x128xf32>
    %1125 = arith.addf %1097, %1124 : vector<8x128xf32>
    %c40_373 = arith.constant 40 : index
    %c0_374 = arith.constant 0 : index
    %c0_375 = arith.constant 0 : index
    %1126 = vector.load %arg9[%c40_373, %c0_374, %c0_375] : memref<41x8x128xf32, #tpu.memory_space<vmem>>, vector<1x8x128xf32>
    %1127 = vector.shape_cast %1126 : vector<1x8x128xf32> to vector<8x128xf32>
    %1128 = vector.extract_strided_slice %852 {offsets = [0, 36], sizes = [8, 92], strides = [1, 1]} : vector<8x128xf32> to vector<8x92xf32>
    %1129 = vector.extract_strided_slice %852 {offsets = [0, 0], sizes = [8, 36], strides = [1, 1]} : vector<8x128xf32> to vector<8x36xf32>
    %1130 = tpu.concatenate %1128, %1129 in 1 : vector<8x92xf32>, vector<8x36xf32> -> vector<8x128xf32>
    %1131 = arith.mulf %1127, %1130 : vector<8x128xf32>
    %1132 = arith.addf %1104, %1131 : vector<8x128xf32>
    %1133 = arith.addf %1132, %1111 : vector<8x128xf32>
    %1134 = arith.addf %1133, %1118 : vector<8x128xf32>
    %1135 = arith.addf %1134, %1125 : vector<8x128xf32>
    %c0_376 = arith.constant 0 : index
    %c0_377 = arith.constant 0 : index
    %1136 = vector.load %arg10[%c0_376, %c0_377] : memref<8x8xf32, #tpu.memory_space<vmem>>, vector<8x8xf32>
    %cst_378 = arith.constant dense<0.000000e+00> : vector<8x128xf32>
    %1137 = tpu.matmul %1136, %1135, %cst_378 {dimension_numbers = #tpu.dot_dimension_numbers<[1], [0], [0], [1], [0, 0, 1, 1], [], []>} : vector<8x8xf32>, vector<8x128xf32>, vector<8x128xf32> -> vector<8x128xf32>
    %cst_379 = arith.constant dense<0.000000e+00> : vector<8xf32>
    %1138 = vector.multi_reduction <add>, %1137, %cst_379 [1] : vector<8x128xf32> to vector<8xf32>
    %1139 = vector.shape_cast %1138 : vector<8xf32> to vector<8x1xf32>
    %1140 = arith.mulf %1137, %1137 : vector<8x128xf32>
    %cst_380 = arith.constant dense<0.000000e+00> : vector<8xf32>
    %1141 = vector.multi_reduction <add>, %1140, %cst_380 [1] : vector<8x128xf32> to vector<8xf32>
    %1142 = vector.shape_cast %1141 : vector<8xf32> to vector<8x1xf32>
    %cst_381 = arith.constant 7.812500e-03 : f32
    %1143 = vector.broadcast %cst_381 : f32 to vector<8x1xf32>
    %1144 = arith.mulf %1139, %1143 : vector<8x1xf32>
    %cst_382 = arith.constant 7.812500e-03 : f32
    %1145 = vector.broadcast %cst_382 : f32 to vector<8x1xf32>
    %1146 = arith.mulf %1142, %1145 : vector<8x1xf32>
    %1147 = arith.mulf %1144, %1144 : vector<8x1xf32>
    %1148 = arith.subf %1146, %1147 : vector<8x1xf32>
    %cst_383 = arith.constant 0.000000e+00 : f32
    %1149 = vector.broadcast %cst_383 : f32 to vector<8x1xf32>
    %1150 = arith.maximumf %1148, %1149 : vector<8x1xf32>
    %1151 = vector.broadcast %1144 : vector<8x1xf32> to vector<8x128xf32>
    %1152 = arith.subf %1137, %1151 : vector<8x128xf32>
    %cst_384 = arith.constant 9.99999974E-6 : f32
    %1153 = vector.broadcast %cst_384 : f32 to vector<8x1xf32>
    %1154 = arith.addf %1150, %1153 : vector<8x1xf32>
    %1155 = math.rsqrt %1154 : vector<8x1xf32>
    %1156 = vector.broadcast %1155 : vector<8x1xf32> to vector<8x128xf32>
    %1157 = arith.mulf %1152, %1156 : vector<8x128xf32>
    %1158 = vector.extract_strided_slice %1157 {offsets = [0, 0], sizes = [4, 128], strides = [1, 1]} : vector<8x128xf32> to vector<4x128xf32>
    %cst_385 = arith.constant 0.000000e+00 : f32
    %1159 = vector.broadcast %cst_385 : f32 to vector<4x128xf32>
    %1160 = arith.maximumf %1158, %1159 : vector<4x128xf32>
    %c0_386 = arith.constant 0 : index
    %c0_387 = arith.constant 0 : index
    %c0_388 = arith.constant 0 : index
    %1161 = vector.load %arg11[%c0_386, %c0_387, %c0_388] : memref<25x4x128xf32, #tpu.memory_space<vmem>>, vector<1x4x128xf32>
    %1162 = vector.shape_cast %1161 : vector<1x4x128xf32> to vector<4x128xf32>
    %1163 = vector.extract_strided_slice %1160 {offsets = [0, 119], sizes = [4, 9], strides = [1, 1]} : vector<4x128xf32> to vector<4x9xf32>
    %1164 = vector.extract_strided_slice %1160 {offsets = [0, 0], sizes = [4, 119], strides = [1, 1]} : vector<4x128xf32> to vector<4x119xf32>
    %1165 = tpu.concatenate %1163, %1164 in 1 : vector<4x9xf32>, vector<4x119xf32> -> vector<4x128xf32>
    %1166 = arith.mulf %1162, %1165 : vector<4x128xf32>
    %c1_389 = arith.constant 1 : index
    %c0_390 = arith.constant 0 : index
    %c0_391 = arith.constant 0 : index
    %1167 = vector.load %arg11[%c1_389, %c0_390, %c0_391] : memref<25x4x128xf32, #tpu.memory_space<vmem>>, vector<1x4x128xf32>
    %1168 = vector.shape_cast %1167 : vector<1x4x128xf32> to vector<4x128xf32>
    %1169 = vector.extract_strided_slice %1160 {offsets = [0, 120], sizes = [4, 8], strides = [1, 1]} : vector<4x128xf32> to vector<4x8xf32>
    %1170 = vector.extract_strided_slice %1160 {offsets = [0, 0], sizes = [4, 120], strides = [1, 1]} : vector<4x128xf32> to vector<4x120xf32>
    %1171 = tpu.concatenate %1169, %1170 in 1 : vector<4x8xf32>, vector<4x120xf32> -> vector<4x128xf32>
    %1172 = arith.mulf %1168, %1171 : vector<4x128xf32>
    %c2_392 = arith.constant 2 : index
    %c0_393 = arith.constant 0 : index
    %c0_394 = arith.constant 0 : index
    %1173 = vector.load %arg11[%c2_392, %c0_393, %c0_394] : memref<25x4x128xf32, #tpu.memory_space<vmem>>, vector<1x4x128xf32>
    %1174 = vector.shape_cast %1173 : vector<1x4x128xf32> to vector<4x128xf32>
    %1175 = vector.extract_strided_slice %1160 {offsets = [0, 121], sizes = [4, 7], strides = [1, 1]} : vector<4x128xf32> to vector<4x7xf32>
    %1176 = vector.extract_strided_slice %1160 {offsets = [0, 0], sizes = [4, 121], strides = [1, 1]} : vector<4x128xf32> to vector<4x121xf32>
    %1177 = tpu.concatenate %1175, %1176 in 1 : vector<4x7xf32>, vector<4x121xf32> -> vector<4x128xf32>
    %1178 = arith.mulf %1174, %1177 : vector<4x128xf32>
    %c3_395 = arith.constant 3 : index
    %c0_396 = arith.constant 0 : index
    %c0_397 = arith.constant 0 : index
    %1179 = vector.load %arg11[%c3_395, %c0_396, %c0_397] : memref<25x4x128xf32, #tpu.memory_space<vmem>>, vector<1x4x128xf32>
    %1180 = vector.shape_cast %1179 : vector<1x4x128xf32> to vector<4x128xf32>
    %1181 = vector.extract_strided_slice %1160 {offsets = [0, 127], sizes = [4, 1], strides = [1, 1]} : vector<4x128xf32> to vector<4x1xf32>
    %1182 = vector.extract_strided_slice %1160 {offsets = [0, 0], sizes = [4, 127], strides = [1, 1]} : vector<4x128xf32> to vector<4x127xf32>
    %1183 = tpu.concatenate %1181, %1182 in 1 : vector<4x1xf32>, vector<4x127xf32> -> vector<4x128xf32>
    %1184 = arith.mulf %1180, %1183 : vector<4x128xf32>
    %c4_398 = arith.constant 4 : index
    %c0_399 = arith.constant 0 : index
    %c0_400 = arith.constant 0 : index
    %1185 = vector.load %arg11[%c4_398, %c0_399, %c0_400] : memref<25x4x128xf32, #tpu.memory_space<vmem>>, vector<1x4x128xf32>
    %1186 = vector.shape_cast %1185 : vector<1x4x128xf32> to vector<4x128xf32>
    %1187 = arith.mulf %1186, %1160 : vector<4x128xf32>
    %1188 = arith.addf %1166, %1187 : vector<4x128xf32>
    %c5_401 = arith.constant 5 : index
    %c0_402 = arith.constant 0 : index
    %c0_403 = arith.constant 0 : index
    %1189 = vector.load %arg11[%c5_401, %c0_402, %c0_403] : memref<25x4x128xf32, #tpu.memory_space<vmem>>, vector<1x4x128xf32>
    %1190 = vector.shape_cast %1189 : vector<1x4x128xf32> to vector<4x128xf32>
    %1191 = vector.extract_strided_slice %1160 {offsets = [0, 1], sizes = [4, 127], strides = [1, 1]} : vector<4x128xf32> to vector<4x127xf32>
    %1192 = vector.extract_strided_slice %1160 {offsets = [0, 0], sizes = [4, 1], strides = [1, 1]} : vector<4x128xf32> to vector<4x1xf32>
    %1193 = tpu.concatenate %1191, %1192 in 1 : vector<4x127xf32>, vector<4x1xf32> -> vector<4x128xf32>
    %1194 = arith.mulf %1190, %1193 : vector<4x128xf32>
    %1195 = arith.addf %1172, %1194 : vector<4x128xf32>
    %c6_404 = arith.constant 6 : index
    %c0_405 = arith.constant 0 : index
    %c0_406 = arith.constant 0 : index
    %1196 = vector.load %arg11[%c6_404, %c0_405, %c0_406] : memref<25x4x128xf32, #tpu.memory_space<vmem>>, vector<1x4x128xf32>
    %1197 = vector.shape_cast %1196 : vector<1x4x128xf32> to vector<4x128xf32>
    %1198 = vector.extract_strided_slice %1160 {offsets = [0, 7], sizes = [4, 121], strides = [1, 1]} : vector<4x128xf32> to vector<4x121xf32>
    %1199 = vector.extract_strided_slice %1160 {offsets = [0, 0], sizes = [4, 7], strides = [1, 1]} : vector<4x128xf32> to vector<4x7xf32>
    %1200 = tpu.concatenate %1198, %1199 in 1 : vector<4x121xf32>, vector<4x7xf32> -> vector<4x128xf32>
    %1201 = arith.mulf %1197, %1200 : vector<4x128xf32>
    %1202 = arith.addf %1178, %1201 : vector<4x128xf32>
    %c7_407 = arith.constant 7 : index
    %c0_408 = arith.constant 0 : index
    %c0_409 = arith.constant 0 : index
    %1203 = vector.load %arg11[%c7_407, %c0_408, %c0_409] : memref<25x4x128xf32, #tpu.memory_space<vmem>>, vector<1x4x128xf32>
    %1204 = vector.shape_cast %1203 : vector<1x4x128xf32> to vector<4x128xf32>
    %1205 = vector.extract_strided_slice %1160 {offsets = [0, 8], sizes = [4, 120], strides = [1, 1]} : vector<4x128xf32> to vector<4x120xf32>
    %1206 = vector.extract_strided_slice %1160 {offsets = [0, 0], sizes = [4, 8], strides = [1, 1]} : vector<4x128xf32> to vector<4x8xf32>
    %1207 = tpu.concatenate %1205, %1206 in 1 : vector<4x120xf32>, vector<4x8xf32> -> vector<4x128xf32>
    %1208 = arith.mulf %1204, %1207 : vector<4x128xf32>
    %1209 = arith.addf %1184, %1208 : vector<4x128xf32>
    %c8_410 = arith.constant 8 : index
    %c0_411 = arith.constant 0 : index
    %c0_412 = arith.constant 0 : index
    %1210 = vector.load %arg11[%c8_410, %c0_411, %c0_412] : memref<25x4x128xf32, #tpu.memory_space<vmem>>, vector<1x4x128xf32>
    %1211 = vector.shape_cast %1210 : vector<1x4x128xf32> to vector<4x128xf32>
    %1212 = vector.extract_strided_slice %1160 {offsets = [0, 9], sizes = [4, 119], strides = [1, 1]} : vector<4x128xf32> to vector<4x119xf32>
    %1213 = vector.extract_strided_slice %1160 {offsets = [0, 0], sizes = [4, 9], strides = [1, 1]} : vector<4x128xf32> to vector<4x9xf32>
    %1214 = tpu.concatenate %1212, %1213 in 1 : vector<4x119xf32>, vector<4x9xf32> -> vector<4x128xf32>
    %1215 = arith.mulf %1211, %1214 : vector<4x128xf32>
    %1216 = arith.addf %1188, %1215 : vector<4x128xf32>
    %c9_413 = arith.constant 9 : index
    %c0_414 = arith.constant 0 : index
    %c0_415 = arith.constant 0 : index
    %1217 = vector.load %arg11[%c9_413, %c0_414, %c0_415] : memref<25x4x128xf32, #tpu.memory_space<vmem>>, vector<1x4x128xf32>
    %1218 = vector.shape_cast %1217 : vector<1x4x128xf32> to vector<4x128xf32>
    %1219 = vector.extract_strided_slice %1160 {offsets = [0, 110], sizes = [4, 18], strides = [1, 1]} : vector<4x128xf32> to vector<4x18xf32>
    %1220 = vector.extract_strided_slice %1160 {offsets = [0, 0], sizes = [4, 110], strides = [1, 1]} : vector<4x128xf32> to vector<4x110xf32>
    %1221 = tpu.concatenate %1219, %1220 in 1 : vector<4x18xf32>, vector<4x110xf32> -> vector<4x128xf32>
    %1222 = arith.mulf %1218, %1221 : vector<4x128xf32>
    %1223 = arith.addf %1195, %1222 : vector<4x128xf32>
    %c10_416 = arith.constant 10 : index
    %c0_417 = arith.constant 0 : index
    %c0_418 = arith.constant 0 : index
    %1224 = vector.load %arg11[%c10_416, %c0_417, %c0_418] : memref<25x4x128xf32, #tpu.memory_space<vmem>>, vector<1x4x128xf32>
    %1225 = vector.shape_cast %1224 : vector<1x4x128xf32> to vector<4x128xf32>
    %1226 = vector.extract_strided_slice %1160 {offsets = [0, 111], sizes = [4, 17], strides = [1, 1]} : vector<4x128xf32> to vector<4x17xf32>
    %1227 = vector.extract_strided_slice %1160 {offsets = [0, 0], sizes = [4, 111], strides = [1, 1]} : vector<4x128xf32> to vector<4x111xf32>
    %1228 = tpu.concatenate %1226, %1227 in 1 : vector<4x17xf32>, vector<4x111xf32> -> vector<4x128xf32>
    %1229 = arith.mulf %1225, %1228 : vector<4x128xf32>
    %1230 = arith.addf %1202, %1229 : vector<4x128xf32>
    %c11_419 = arith.constant 11 : index
    %c0_420 = arith.constant 0 : index
    %c0_421 = arith.constant 0 : index
    %1231 = vector.load %arg11[%c11_419, %c0_420, %c0_421] : memref<25x4x128xf32, #tpu.memory_space<vmem>>, vector<1x4x128xf32>
    %1232 = vector.shape_cast %1231 : vector<1x4x128xf32> to vector<4x128xf32>
    %1233 = vector.extract_strided_slice %1160 {offsets = [0, 112], sizes = [4, 16], strides = [1, 1]} : vector<4x128xf32> to vector<4x16xf32>
    %1234 = vector.extract_strided_slice %1160 {offsets = [0, 0], sizes = [4, 112], strides = [1, 1]} : vector<4x128xf32> to vector<4x112xf32>
    %1235 = tpu.concatenate %1233, %1234 in 1 : vector<4x16xf32>, vector<4x112xf32> -> vector<4x128xf32>
    %1236 = arith.mulf %1232, %1235 : vector<4x128xf32>
    %1237 = arith.addf %1209, %1236 : vector<4x128xf32>
    %c12_422 = arith.constant 12 : index
    %c0_423 = arith.constant 0 : index
    %c0_424 = arith.constant 0 : index
    %1238 = vector.load %arg11[%c12_422, %c0_423, %c0_424] : memref<25x4x128xf32, #tpu.memory_space<vmem>>, vector<1x4x128xf32>
    %1239 = vector.shape_cast %1238 : vector<1x4x128xf32> to vector<4x128xf32>
    %1240 = vector.extract_strided_slice %1160 {offsets = [0, 113], sizes = [4, 15], strides = [1, 1]} : vector<4x128xf32> to vector<4x15xf32>
    %1241 = vector.extract_strided_slice %1160 {offsets = [0, 0], sizes = [4, 113], strides = [1, 1]} : vector<4x128xf32> to vector<4x113xf32>
    %1242 = tpu.concatenate %1240, %1241 in 1 : vector<4x15xf32>, vector<4x113xf32> -> vector<4x128xf32>
    %1243 = arith.mulf %1239, %1242 : vector<4x128xf32>
    %1244 = arith.addf %1216, %1243 : vector<4x128xf32>
    %c13_425 = arith.constant 13 : index
    %c0_426 = arith.constant 0 : index
    %c0_427 = arith.constant 0 : index
    %1245 = vector.load %arg11[%c13_425, %c0_426, %c0_427] : memref<25x4x128xf32, #tpu.memory_space<vmem>>, vector<1x4x128xf32>
    %1246 = vector.shape_cast %1245 : vector<1x4x128xf32> to vector<4x128xf32>
    %1247 = vector.extract_strided_slice %1160 {offsets = [0, 114], sizes = [4, 14], strides = [1, 1]} : vector<4x128xf32> to vector<4x14xf32>
    %1248 = vector.extract_strided_slice %1160 {offsets = [0, 0], sizes = [4, 114], strides = [1, 1]} : vector<4x128xf32> to vector<4x114xf32>
    %1249 = tpu.concatenate %1247, %1248 in 1 : vector<4x14xf32>, vector<4x114xf32> -> vector<4x128xf32>
    %1250 = arith.mulf %1246, %1249 : vector<4x128xf32>
    %1251 = arith.addf %1223, %1250 : vector<4x128xf32>
    %c14_428 = arith.constant 14 : index
    %c0_429 = arith.constant 0 : index
    %c0_430 = arith.constant 0 : index
    %1252 = vector.load %arg11[%c14_428, %c0_429, %c0_430] : memref<25x4x128xf32, #tpu.memory_space<vmem>>, vector<1x4x128xf32>
    %1253 = vector.shape_cast %1252 : vector<1x4x128xf32> to vector<4x128xf32>
    %1254 = vector.extract_strided_slice %1160 {offsets = [0, 118], sizes = [4, 10], strides = [1, 1]} : vector<4x128xf32> to vector<4x10xf32>
    %1255 = vector.extract_strided_slice %1160 {offsets = [0, 0], sizes = [4, 118], strides = [1, 1]} : vector<4x128xf32> to vector<4x118xf32>
    %1256 = tpu.concatenate %1254, %1255 in 1 : vector<4x10xf32>, vector<4x118xf32> -> vector<4x128xf32>
    %1257 = arith.mulf %1253, %1256 : vector<4x128xf32>
    %1258 = arith.addf %1230, %1257 : vector<4x128xf32>
    %c15_431 = arith.constant 15 : index
    %c0_432 = arith.constant 0 : index
    %c0_433 = arith.constant 0 : index
    %1259 = vector.load %arg11[%c15_431, %c0_432, %c0_433] : memref<25x4x128xf32, #tpu.memory_space<vmem>>, vector<1x4x128xf32>
    %1260 = vector.shape_cast %1259 : vector<1x4x128xf32> to vector<4x128xf32>
    %1261 = vector.extract_strided_slice %1160 {offsets = [0, 122], sizes = [4, 6], strides = [1, 1]} : vector<4x128xf32> to vector<4x6xf32>
    %1262 = vector.extract_strided_slice %1160 {offsets = [0, 0], sizes = [4, 122], strides = [1, 1]} : vector<4x128xf32> to vector<4x122xf32>
    %1263 = tpu.concatenate %1261, %1262 in 1 : vector<4x6xf32>, vector<4x122xf32> -> vector<4x128xf32>
    %1264 = arith.mulf %1260, %1263 : vector<4x128xf32>
    %1265 = arith.addf %1237, %1264 : vector<4x128xf32>
    %c16_434 = arith.constant 16 : index
    %c0_435 = arith.constant 0 : index
    %c0_436 = arith.constant 0 : index
    %1266 = vector.load %arg11[%c16_434, %c0_435, %c0_436] : memref<25x4x128xf32, #tpu.memory_space<vmem>>, vector<1x4x128xf32>
    %1267 = vector.shape_cast %1266 : vector<1x4x128xf32> to vector<4x128xf32>
    %1268 = vector.extract_strided_slice %1160 {offsets = [0, 126], sizes = [4, 2], strides = [1, 1]} : vector<4x128xf32> to vector<4x2xf32>
    %1269 = vector.extract_strided_slice %1160 {offsets = [0, 0], sizes = [4, 126], strides = [1, 1]} : vector<4x128xf32> to vector<4x126xf32>
    %1270 = tpu.concatenate %1268, %1269 in 1 : vector<4x2xf32>, vector<4x126xf32> -> vector<4x128xf32>
    %1271 = arith.mulf %1267, %1270 : vector<4x128xf32>
    %1272 = arith.addf %1244, %1271 : vector<4x128xf32>
    %c17_437 = arith.constant 17 : index
    %c0_438 = arith.constant 0 : index
    %c0_439 = arith.constant 0 : index
    %1273 = vector.load %arg11[%c17_437, %c0_438, %c0_439] : memref<25x4x128xf32, #tpu.memory_space<vmem>>, vector<1x4x128xf32>
    %1274 = vector.shape_cast %1273 : vector<1x4x128xf32> to vector<4x128xf32>
    %1275 = vector.extract_strided_slice %1160 {offsets = [0, 2], sizes = [4, 126], strides = [1, 1]} : vector<4x128xf32> to vector<4x126xf32>
    %1276 = vector.extract_strided_slice %1160 {offsets = [0, 0], sizes = [4, 2], strides = [1, 1]} : vector<4x128xf32> to vector<4x2xf32>
    %1277 = tpu.concatenate %1275, %1276 in 1 : vector<4x126xf32>, vector<4x2xf32> -> vector<4x128xf32>
    %1278 = arith.mulf %1274, %1277 : vector<4x128xf32>
    %1279 = arith.addf %1251, %1278 : vector<4x128xf32>
    %c18_440 = arith.constant 18 : index
    %c0_441 = arith.constant 0 : index
    %c0_442 = arith.constant 0 : index
    %1280 = vector.load %arg11[%c18_440, %c0_441, %c0_442] : memref<25x4x128xf32, #tpu.memory_space<vmem>>, vector<1x4x128xf32>
    %1281 = vector.shape_cast %1280 : vector<1x4x128xf32> to vector<4x128xf32>
    %1282 = vector.extract_strided_slice %1160 {offsets = [0, 6], sizes = [4, 122], strides = [1, 1]} : vector<4x128xf32> to vector<4x122xf32>
    %1283 = vector.extract_strided_slice %1160 {offsets = [0, 0], sizes = [4, 6], strides = [1, 1]} : vector<4x128xf32> to vector<4x6xf32>
    %1284 = tpu.concatenate %1282, %1283 in 1 : vector<4x122xf32>, vector<4x6xf32> -> vector<4x128xf32>
    %1285 = arith.mulf %1281, %1284 : vector<4x128xf32>
    %1286 = arith.addf %1258, %1285 : vector<4x128xf32>
    %c19_443 = arith.constant 19 : index
    %c0_444 = arith.constant 0 : index
    %c0_445 = arith.constant 0 : index
    %1287 = vector.load %arg11[%c19_443, %c0_444, %c0_445] : memref<25x4x128xf32, #tpu.memory_space<vmem>>, vector<1x4x128xf32>
    %1288 = vector.shape_cast %1287 : vector<1x4x128xf32> to vector<4x128xf32>
    %1289 = vector.extract_strided_slice %1160 {offsets = [0, 10], sizes = [4, 118], strides = [1, 1]} : vector<4x128xf32> to vector<4x118xf32>
    %1290 = vector.extract_strided_slice %1160 {offsets = [0, 0], sizes = [4, 10], strides = [1, 1]} : vector<4x128xf32> to vector<4x10xf32>
    %1291 = tpu.concatenate %1289, %1290 in 1 : vector<4x118xf32>, vector<4x10xf32> -> vector<4x128xf32>
    %1292 = arith.mulf %1288, %1291 : vector<4x128xf32>
    %1293 = arith.addf %1265, %1292 : vector<4x128xf32>
    %c20_446 = arith.constant 20 : index
    %c0_447 = arith.constant 0 : index
    %c0_448 = arith.constant 0 : index
    %1294 = vector.load %arg11[%c20_446, %c0_447, %c0_448] : memref<25x4x128xf32, #tpu.memory_space<vmem>>, vector<1x4x128xf32>
    %1295 = vector.shape_cast %1294 : vector<1x4x128xf32> to vector<4x128xf32>
    %1296 = vector.extract_strided_slice %1160 {offsets = [0, 14], sizes = [4, 114], strides = [1, 1]} : vector<4x128xf32> to vector<4x114xf32>
    %1297 = vector.extract_strided_slice %1160 {offsets = [0, 0], sizes = [4, 14], strides = [1, 1]} : vector<4x128xf32> to vector<4x14xf32>
    %1298 = tpu.concatenate %1296, %1297 in 1 : vector<4x114xf32>, vector<4x14xf32> -> vector<4x128xf32>
    %1299 = arith.mulf %1295, %1298 : vector<4x128xf32>
    %1300 = arith.addf %1272, %1299 : vector<4x128xf32>
    %c21_449 = arith.constant 21 : index
    %c0_450 = arith.constant 0 : index
    %c0_451 = arith.constant 0 : index
    %1301 = vector.load %arg11[%c21_449, %c0_450, %c0_451] : memref<25x4x128xf32, #tpu.memory_space<vmem>>, vector<1x4x128xf32>
    %1302 = vector.shape_cast %1301 : vector<1x4x128xf32> to vector<4x128xf32>
    %1303 = vector.extract_strided_slice %1160 {offsets = [0, 15], sizes = [4, 113], strides = [1, 1]} : vector<4x128xf32> to vector<4x113xf32>
    %1304 = vector.extract_strided_slice %1160 {offsets = [0, 0], sizes = [4, 15], strides = [1, 1]} : vector<4x128xf32> to vector<4x15xf32>
    %1305 = tpu.concatenate %1303, %1304 in 1 : vector<4x113xf32>, vector<4x15xf32> -> vector<4x128xf32>
    %1306 = arith.mulf %1302, %1305 : vector<4x128xf32>
    %1307 = arith.addf %1279, %1306 : vector<4x128xf32>
    %c22_452 = arith.constant 22 : index
    %c0_453 = arith.constant 0 : index
    %c0_454 = arith.constant 0 : index
    %1308 = vector.load %arg11[%c22_452, %c0_453, %c0_454] : memref<25x4x128xf32, #tpu.memory_space<vmem>>, vector<1x4x128xf32>
    %1309 = vector.shape_cast %1308 : vector<1x4x128xf32> to vector<4x128xf32>
    %1310 = vector.extract_strided_slice %1160 {offsets = [0, 16], sizes = [4, 112], strides = [1, 1]} : vector<4x128xf32> to vector<4x112xf32>
    %1311 = vector.extract_strided_slice %1160 {offsets = [0, 0], sizes = [4, 16], strides = [1, 1]} : vector<4x128xf32> to vector<4x16xf32>
    %1312 = tpu.concatenate %1310, %1311 in 1 : vector<4x112xf32>, vector<4x16xf32> -> vector<4x128xf32>
    %1313 = arith.mulf %1309, %1312 : vector<4x128xf32>
    %1314 = arith.addf %1286, %1313 : vector<4x128xf32>
    %c23_455 = arith.constant 23 : index
    %c0_456 = arith.constant 0 : index
    %c0_457 = arith.constant 0 : index
    %1315 = vector.load %arg11[%c23_455, %c0_456, %c0_457] : memref<25x4x128xf32, #tpu.memory_space<vmem>>, vector<1x4x128xf32>
    %1316 = vector.shape_cast %1315 : vector<1x4x128xf32> to vector<4x128xf32>
    %1317 = vector.extract_strided_slice %1160 {offsets = [0, 17], sizes = [4, 111], strides = [1, 1]} : vector<4x128xf32> to vector<4x111xf32>
    %1318 = vector.extract_strided_slice %1160 {offsets = [0, 0], sizes = [4, 17], strides = [1, 1]} : vector<4x128xf32> to vector<4x17xf32>
    %1319 = tpu.concatenate %1317, %1318 in 1 : vector<4x111xf32>, vector<4x17xf32> -> vector<4x128xf32>
    %1320 = arith.mulf %1316, %1319 : vector<4x128xf32>
    %1321 = arith.addf %1293, %1320 : vector<4x128xf32>
    %c24_458 = arith.constant 24 : index
    %c0_459 = arith.constant 0 : index
    %c0_460 = arith.constant 0 : index
    %1322 = vector.load %arg11[%c24_458, %c0_459, %c0_460] : memref<25x4x128xf32, #tpu.memory_space<vmem>>, vector<1x4x128xf32>
    %1323 = vector.shape_cast %1322 : vector<1x4x128xf32> to vector<4x128xf32>
    %1324 = vector.extract_strided_slice %1160 {offsets = [0, 18], sizes = [4, 110], strides = [1, 1]} : vector<4x128xf32> to vector<4x110xf32>
    %1325 = vector.extract_strided_slice %1160 {offsets = [0, 0], sizes = [4, 18], strides = [1, 1]} : vector<4x128xf32> to vector<4x18xf32>
    %1326 = tpu.concatenate %1324, %1325 in 1 : vector<4x110xf32>, vector<4x18xf32> -> vector<4x128xf32>
    %1327 = arith.mulf %1323, %1326 : vector<4x128xf32>
    %1328 = arith.addf %1300, %1327 : vector<4x128xf32>
    %1329 = arith.addf %1328, %1307 : vector<4x128xf32>
    %1330 = arith.addf %1329, %1314 : vector<4x128xf32>
    %1331 = arith.addf %1330, %1321 : vector<4x128xf32>
    %c0_461 = arith.constant 0 : index
    %c0_462 = arith.constant 0 : index
    %1332 = vector.load %arg12[%c0_461, %c0_462] : memref<4x4xf32, #tpu.memory_space<vmem>>, vector<4x4xf32>
    %cst_463 = arith.constant dense<0.000000e+00> : vector<4x128xf32>
    %1333 = tpu.matmul %1332, %1331, %cst_463 {dimension_numbers = #tpu.dot_dimension_numbers<[1], [0], [0], [1], [0, 0, 1, 1], [], []>} : vector<4x4xf32>, vector<4x128xf32>, vector<4x128xf32> -> vector<4x128xf32>
    %cst_464 = arith.constant dense<0.000000e+00> : vector<4xf32>
    %1334 = vector.multi_reduction <add>, %1333, %cst_464 [1] : vector<4x128xf32> to vector<4xf32>
    %1335 = vector.shape_cast %1334 : vector<4xf32> to vector<4x1xf32>
    %1336 = arith.mulf %1333, %1333 : vector<4x128xf32>
    %cst_465 = arith.constant dense<0.000000e+00> : vector<4xf32>
    %1337 = vector.multi_reduction <add>, %1336, %cst_465 [1] : vector<4x128xf32> to vector<4xf32>
    %1338 = vector.shape_cast %1337 : vector<4xf32> to vector<4x1xf32>
    %cst_466 = arith.constant 7.812500e-03 : f32
    %1339 = vector.broadcast %cst_466 : f32 to vector<4x1xf32>
    %1340 = arith.mulf %1335, %1339 : vector<4x1xf32>
    %cst_467 = arith.constant 7.812500e-03 : f32
    %1341 = vector.broadcast %cst_467 : f32 to vector<4x1xf32>
    %1342 = arith.mulf %1338, %1341 : vector<4x1xf32>
    %1343 = arith.mulf %1340, %1340 : vector<4x1xf32>
    %1344 = arith.subf %1342, %1343 : vector<4x1xf32>
    %cst_468 = arith.constant 0.000000e+00 : f32
    %1345 = vector.broadcast %cst_468 : f32 to vector<4x1xf32>
    %1346 = arith.maximumf %1344, %1345 : vector<4x1xf32>
    %1347 = vector.broadcast %1340 : vector<4x1xf32> to vector<4x128xf32>
    %1348 = arith.subf %1333, %1347 : vector<4x128xf32>
    %cst_469 = arith.constant 9.99999974E-6 : f32
    %1349 = vector.broadcast %cst_469 : f32 to vector<4x1xf32>
    %1350 = arith.addf %1346, %1349 : vector<4x1xf32>
    %1351 = math.rsqrt %1350 : vector<4x1xf32>
    %1352 = vector.broadcast %1351 : vector<4x1xf32> to vector<4x128xf32>
    %1353 = arith.mulf %1348, %1352 : vector<4x128xf32>
    %1354 = vector.extract_strided_slice %1157 {offsets = [4, 0], sizes = [4, 128], strides = [1, 1]} : vector<8x128xf32> to vector<4x128xf32>
    %c2_470 = arith.constant 2 : index
    %c1_471 = arith.constant 1 : index
    %1355 = memref.load %arg0[%c2_470, %c1_471] : memref<3x8xf32, #tpu.memory_space<smem>>
    %1356 = vector.broadcast %1355 : f32 to vector<2x128xf32>
    %1357 = arith.mulf %1356, %848 : vector<2x128xf32>
    %c2_472 = arith.constant 2 : index
    %c2_473 = arith.constant 2 : index
    %1358 = memref.load %arg0[%c2_472, %c2_473] : memref<3x8xf32, #tpu.memory_space<smem>>
    %1359 = vector.broadcast %1358 : f32 to vector<2x128xf32>
    %1360 = arith.mulf %1359, %849 : vector<2x128xf32>
    %1361 = arith.addf %1357, %1360 : vector<2x128xf32>
    %c2_474 = arith.constant 2 : index
    %c3_475 = arith.constant 3 : index
    %1362 = memref.load %arg0[%c2_474, %c3_475] : memref<3x8xf32, #tpu.memory_space<smem>>
    %1363 = vector.broadcast %1362 : f32 to vector<2x128xf32>
    %1364 = arith.mulf %1363, %712 : vector<2x128xf32>
    %1365 = arith.addf %1361, %1364 : vector<2x128xf32>
    %c0_476 = arith.constant 0 : index
    %c0_477 = arith.constant 0 : index
    %1366 = vector.load %arg19[%c0_476, %c0_477] : memref<2x4xf32, #tpu.memory_space<vmem>>, vector<2x4xf32>
    %cst_478 = arith.constant dense<0.000000e+00> : vector<2x128xf32>
    %1367 = tpu.matmul %1366, %1353, %cst_478 {dimension_numbers = #tpu.dot_dimension_numbers<[1], [0], [0], [1], [0, 0, 1, 1], [], []>} : vector<2x4xf32>, vector<4x128xf32>, vector<2x128xf32> -> vector<2x128xf32>
    %1368 = arith.addf %1365, %1367 : vector<2x128xf32>
    %c0_479 = arith.constant 0 : index
    %c0_480 = arith.constant 0 : index
    %1369 = vector.load %arg20[%c0_479, %c0_480] : memref<2x4xf32, #tpu.memory_space<vmem>>, vector<2x4xf32>
    %cst_481 = arith.constant dense<0.000000e+00> : vector<2x128xf32>
    %1370 = tpu.matmul %1369, %1354, %cst_481 {dimension_numbers = #tpu.dot_dimension_numbers<[1], [0], [0], [1], [0, 0, 1, 1], [], []>} : vector<2x4xf32>, vector<4x128xf32>, vector<2x128xf32> -> vector<2x128xf32>
    %1371 = arith.addf %1368, %1370 : vector<2x128xf32>
    %c0_482 = arith.constant 0 : index
    %c0_483 = arith.constant 0 : index
    %1372 = vector.load %arg16[%c0_482, %c0_483] : memref<16x2xf32, #tpu.memory_space<vmem>>, vector<16x2xf32>
    %1373 = vector.extract_strided_slice %700 {offsets = [2, 0], sizes = [2, 128], strides = [1, 1]} : vector<4x128xf32> to vector<2x128xf32>
    %cst_484 = arith.constant dense<0.000000e+00> : vector<16x128xf32>
    %1374 = tpu.matmul %1372, %1373, %cst_484 {dimension_numbers = #tpu.dot_dimension_numbers<[1], [0], [0], [1], [0, 0, 1, 1], [], []>} : vector<16x2xf32>, vector<2x128xf32>, vector<16x128xf32> -> vector<16x128xf32>
    %1375 = arith.addf %705, %1374 : vector<16x128xf32>
    %1376 = vector.broadcast %702 : f32 to vector<16x128xf32>
    %1377 = arith.mulf %1376, %1375 : vector<16x128xf32>
    %c0_485 = arith.constant 0 : index
    %c0_486 = arith.constant 0 : index
    %1378 = vector.load %arg15[%c0_485, %c0_486] : memref<16x16xf32, #tpu.memory_space<vmem>>, vector<16x16xf32>
    %cst_487 = arith.constant dense<0.000000e+00> : vector<16x128xf32>
    %1379 = tpu.matmul %1378, %711, %cst_487 {dimension_numbers = #tpu.dot_dimension_numbers<[1], [0], [0], [1], [0, 0, 1, 1], [], []>} : vector<16x16xf32>, vector<16x128xf32>, vector<16x128xf32> -> vector<16x128xf32>
    %c0_488 = arith.constant 0 : index
    %c0_489 = arith.constant 0 : index
    %1380 = vector.load %arg16[%c0_488, %c0_489] : memref<16x2xf32, #tpu.memory_space<vmem>>, vector<16x2xf32>
    %cst_490 = arith.constant dense<0.000000e+00> : vector<16x128xf32>
    %1381 = tpu.matmul %1380, %1371, %cst_490 {dimension_numbers = #tpu.dot_dimension_numbers<[1], [0], [0], [1], [0, 0, 1, 1], [], []>} : vector<16x2xf32>, vector<2x128xf32>, vector<16x128xf32> -> vector<16x128xf32>
    %1382 = arith.addf %1379, %1381 : vector<16x128xf32>
    %1383 = vector.broadcast %703 : f32 to vector<16x128xf32>
    %1384 = arith.mulf %1383, %1382 : vector<16x128xf32>
    %1385 = arith.addf %1377, %1384 : vector<16x128xf32>
    %1386 = tpu.concatenate %711, %1385 in 0 : vector<16x128xf32>, vector<16x128xf32> -> vector<32x128xf32>
    %c0_491 = arith.constant 0 : index
    %c0_492 = arith.constant 0 : index
    %1387 = vector.load %arg21[%c0_491, %c0_492] : memref<32x128xf32, #tpu.memory_space<vmem>>, vector<32x128xf32>
    tpu.vector_store %arg21[%c0_491, %c0_492], %1386 {strides = array<i32>} : memref<32x128xf32, #tpu.memory_space<vmem>>, vector<32x128xf32>,
    return
  }
}

</mosaic_0001>

<bundles_post_ra>
// kernel: down_cell_forward.1
= control target key start
LH: loop header
LB: loop body
LE: loop exit
PB: predicated region body
PF: predicated region fallthrough
CT: control target
= control target key end

     0   :  { %s3999_s0 = inlined_call_operand.vmem [shape: f32[3,8], index: 0, kind: input, shape index: {}]   ;;  %s4000_s1 = inlined_call_operand.vmem [shape: f32[3], index: 1, kind: input, shape index: {}]   ;;  %s4001_s2 = inlined_call_operand.vmem [shape: f32[16,512], index: 2, kind: input, shape index: {}]   ;;  %s4002_s3 = inlined_call_operand.vmem [shape: f32[512,128], index: 3, kind: input, shape index: {}]   ;;  %s4003_s4 = inlined_call_operand.vmem [shape: f32[16,16], index: 4, kind: input, shape index: {}]   ;;  %s4004_s5 = inlined_call_operand.vmem [shape: f32[41,16,128], index: 5, kind: input, shape index: {}]   ;;  %s4005_s6 = inlined_call_operand.vmem [shape: f32[16,16], index: 6, kind: input, shape index: {}]   ;;  %s4006_s7 = inlined_call_operand.hbm [shape: f32[25,8,128], index: 7, kind: input, shape index: {}]   ;;  %s4007_s8 = inlined_call_operand.vmem [shape: f32[8,8], index: 8, kind: input, shape index: {}]   ;;  %s4008_s9 = inlined_call_operand.vmem [shape: f32[41,8,128], index: 9, kind: input, shape index: {}]   ;;  %s4009_s10 = inlined_call_operand.vmem [shape: f32[8,8], index: 10, kind: input, shape index: {}]   ;;  %s4010_s11 = inlined_call_operand.vmem [shape: f32[25,4,128], index: 11, kind: input, shape index: {}]   ;;  %s4011_s12 = inlined_call_operand.vmem [shape: f32[4,4], index: 12, kind: input, shape index: {}]   ;;  %s4012_s13 = inlined_call_operand.vmem [shape: f32[9,128], index: 13, kind: input, shape index: {}]   ;;  %s4013_s14 = inlined_call_operand.vmem [shape: f32[1,128], index: 14, kind: input, shape index: {}]   ;;  %s4014_s15 = inlined_call_operand.vmem [shape: f32[16,16], index: 15, kind: input, shape index: {}]   ;;  %s4015_s16 = inlined_call_operand.vmem [shape: f32[16,2], index: 16, kind: input, shape index: {}]   ;;  %s4016_s17 = inlined_call_operand.vmem [shape: f32[4,8], index: 17, kind: input, shape index: {}]   ;;  %s4017_s18 = inlined_call_operand.vmem [shape: f32[4,8], index: 18, kind: input, shape index: {}]   ;;  %s4018_s19 = inlined_call_operand.vmem [shape: f32[2,4], index: 19, kind: input, shape index: {}]   ;;  %s4019_s20 = inlined_call_operand.vmem [shape: f32[2,4], index: 20, kind: input, shape index: {}]   ;;  %s4020_s21 = inlined_call_operand.vmem [shape: f32[32,128], index: 21, kind: output, shape index: {}]  }
   0x1   :  { %4105 = sst [smem:[#allocation12_spill]] %s3999_s0 }
   0x2   :  { %4106 = sst [smem:[#allocation13_spill]] %s4000_s1 }
   0x3   :  { %4107 = sst [smem:[#allocation14_spill]] %s4001_s2 }
   0x4   :  { %4108 = sst [smem:[#allocation15_spill]] %s4002_s3 }
   0x5   :  { %4109 = sst [smem:[#allocation16_spill]] %s4003_s4 }
   0x6   :  { %4110 = sst [smem:[#allocation17_spill]] %s4004_s5 }
   0x7   :  { %4111 = sst [smem:[#allocation18_spill]] %s4008_s9 }
   0x8   :  { %4112 = sst [smem:[#allocation19_spill]] %s4009_s10 }
   0x9   :  { %4113 = sst [smem:[#allocation20_spill]] %s4010_s11 }
   0xa   :  { %4114 = sst [smem:[#allocation21_spill]] %s4011_s12 }
   0xb   :  { %4115 = sst [smem:[#allocation22_spill]] %s4012_s13 }
   0xc   :  { %4116 = sst [smem:[#allocation23_spill]] %s4013_s14 }
   0xd   :  { %4117 = sst [smem:[#allocation24_spill]] %s4015_s16 }
   0xe   :  { %4118 = sst [smem:[#allocation25_spill]] %s4018_s19 }
   0xf   :  { %4119 = sst [smem:[#allocation26_spill]] %s4019_s20 }
  0x10   :  { %4120 = sst [smem:[#allocation27_spill]] %s4020_s21 }
  0x11   :  { %26 = vsyncpa [#allocation4], 0 }
  0x12   :  { %27 = vsyncpa [#allocation6], 0  ;;  %s4121_s26 = sld [smem:[#allocation12_spill]] }
  0x18   :  { %s34_s27 = sshll.u32 %s4121_s26, 4  ;;  %s35_s27 = int_to_ptr.vmem [resolvable:$true] %s34_s27 }
  0x19   :  { %28 = vsyncpa [#allocation3], 0  ;;  %s4122_s29 = sld [smem:[#allocation13_spill]]  ;;  %s2475_s4 = smov [#allocation2]  }
  0x1a   :  { %37 = dma.vmem_to_smem %s35_s27, 64, %s2475_s4, [#allocation4]  }
  0x1b   :  { %s2476_s30 = smov [#allocation5]   ;;  %s61_s23 = sshll.u32 %s4006_s7, 4  ;;  %s62_s23 = int_to_ptr.hbm [resolvable:$true] %s61_s23 }
  0x1c   :  { %s2477_s1 = smov [#allocation7]   ;;  %s2478_s2 = smov 128  }
  0x1d   :  { %s63_s24 = sshll.u32 %s2477_s1, 4  ;;  %s4077_s25 = smov 8   ;;  %s64_s24 = int_to_ptr.vmem [resolvable:$true] %s63_s24 }
  0x1e   :  { %69 = dma.hbm_to_vmem [thread:$0]  %s62_s23, 3200, %s64_s24, [#allocation3], %s2478_s2, %s2478_s2, %s4077_s25  }
  0x1f   :  { %s43_s0 = sshll.u32 %s4122_s29, 4  ;;  %s44_s0 = int_to_ptr.vmem [resolvable:$true] %s43_s0 }
  0x20   :  { %46 = dma.vmem_to_smem %s44_s0, 16, %s2476_s30, [#allocation6]  }
  0x21   :  { %2469 = dma.done.wait [#allocation4], 64  }
  0x22   :  { %2470 = vsyncadd [#allocation4], 4294967232 }
  0x23   :  { %2471 = dma.done.wait [#allocation6], 16  }
  0x24   :  { %2472 = vsyncadd [#allocation6], 4294967280 }
  0x25   :  { %2473 = dma.done.wait [#allocation3], 3200  }
  0x26   :  { %2474 = vsyncadd [#allocation3], 4294964096 }
  0x27   :  { %108 = sfence }
  0x28   :  { %s4123_s3 = sld [smem:[#allocation15_spill]]  ;;  %vm277_vm0 = vcmask 130048   ;;  %vm451_vm4 = vcmask 1041408   ;;  %vm4094_vm5 = vcmask 1043456   ;;  %vm4093_vm6 = vcmask 1045504   ;;  %s4025_s30 = smov 7  }
  0x29   :  { %s4124_s26 = sld [smem:[#allocation14_spill]]  ;;  %s4071_s5 = smov 127   ;;  %vm4092_vm10 = vcmask 64512  }
  0x2a   :  { %s4125_s4 = sld [smem:[#allocation16_spill]]  ;;  %s4083_s22 = smov 9  }
  0x2b   :  { %s4081_s23 = smov 14   ;;  %s4033_s1 = smov 119  }
  0x2c   :  { %s4075_s24 = smov 10   ;;  %s4087_s2 = smov 121  }
  0x2d   :  { %s4038_s27 = smov 6   ;;  %s4027_s7 = smov 1  }
  0x2e   :  { %v164_v0 = vld [vmem:[%s4123_s3 + $0x178] sm:$0xff]  ;;  %v163_v1 = vld [vmem:[%s4123_s3 + $0x170] sm:$0xff]  ;;  %v162_v5 = vld [vmem:[%s4123_s3 + $0x168] sm:$0xff]  ;;  %s4029_s28 = smov 15   ;;  %s4031_s29 = smov 110  }
  0x2f   :  { %v180_v2 = vld [vmem:[%s4123_s3 + $0x1f8] sm:$0xff]  ;;  %227 = vmatpush.msra.mxu2 %v164_v0  ;;  %v179_v6 = vld [vmem:[%s4123_s3 + $0x1f0] sm:$0xff]  ;;  %v178_v9 = vld [vmem:[%s4123_s3 + $0x1e8] sm:$0xff]  ;;  %s4035_s0 = smov 120   ;;  %s4143_s19 = smov 1  }
  0x30   :  { %250 = vmatpush.msra.mxu3 %v180_v2  ;;  %v132_v3 = vld [vmem:[%s4123_s3 + $0x78] sm:$0xff]  ;;  %v131_v7 = vld [vmem:[%s4123_s3 + $0x70] sm:$0xff]  ;;  %v130_v10 = vld [vmem:[%s4123_s3 + $0x68] sm:$0xff]  ;;  %s4144_s20 = smov 120   ;;  %s4145_s12 = smov 2  }
  0x31   :  { %v148_v4 = vld [vmem:[%s4123_s3 + $0xf8] sm:$0xff]  ;;  %181 = vmatpush.msra.mxu0 %v132_v3  ;;  %v147_v8 = vld [vmem:[%s4123_s3 + $0xf0] sm:$0xff]  ;;  %228 = vmatpush.msra.mxu2 %v163_v1  ;;  %v161_v11 = vld [vmem:[%s4123_s3 + $0x160] sm:$0xff]  ;;  %s4146_s11 = smov 126   ;;  %s4147_s10 = smov 122  }
  0x32   :  { %204 = vmatpush.msra.mxu1 %v148_v4  ;;  %251 = vmatpush.msra.mxu3 %v179_v6  ;;  %v146_v12 = vld [vmem:[%s4123_s3 + $0xe8] sm:$0xff]  ;;  %v177_v13 = vld [vmem:[%s4123_s3 + $0x1e0] sm:$0xff]  ;;  %v160_v16 = vld [vmem:[%s4123_s3 + $0x158] sm:$0xff]  ;;  %s4148_s9 = smov 118  }
  0x33   :  { %182 = vmatpush.msra.mxu0 %v131_v7  ;;  %229 = vmatpush.msra.mxu2 %v162_v5  ;;  %v129_v14 = vld [vmem:[%s4123_s3 + $0x60] sm:$0xff]  ;;  %v176_v17 = vld [vmem:[%s4123_s3 + $0x1d8] sm:$0xff]  ;;  %v159_v20 = vld [vmem:[%s4123_s3 + $0x150] sm:$0xff] }
  0x34   :  { %205 = vmatpush.msra.mxu1 %v147_v8  ;;  %252 = vmatpush.msra.mxu3 %v178_v9  ;;  %v145_v15 = vld [vmem:[%s4123_s3 + $0xe0] sm:$0xff]  ;;  %v128_v18 = vld [vmem:[%s4123_s3 + $0x58] sm:$0xff]  ;;  %v175_v21 = vld [vmem:[%s4123_s3 + $0x1d0] sm:$0xff] }
  0x35   :  { %183 = vmatpush.msra.mxu0 %v130_v10  ;;  %230 = vmatpush.msra.mxu2 %v161_v11  ;;  %v144_v19 = vld [vmem:[%s4123_s3 + $0xd8] sm:$0xff]  ;;  %v127_v22 = vld [vmem:[%s4123_s3 + $0x50] sm:$0xff]  ;;  %v158_v24 = vld [vmem:[%s4123_s3 + $0x148] sm:$0xff] }
  0x36   :  { %206 = vmatpush.msra.mxu1 %v146_v12  ;;  %253 = vmatpush.msra.mxu3 %v177_v13  ;;  %v143_v23 = vld [vmem:[%s4123_s3 + $0xd0] sm:$0xff]  ;;  %v174_v25 = vld [vmem:[%s4123_s3 + $0x1c8] sm:$0xff]  ;;  %v157_v28 = vld [vmem:[%s4123_s3 + $0x140] sm:$0xff] }
  0x37   :  { %184 = vmatpush.msra.mxu0 %v129_v14  ;;  %231 = vmatpush.msra.mxu2 %v160_v16  ;;  %v126_v26 = vld [vmem:[%s4123_s3 + $0x48] sm:$0xff]  ;;  %v173_v29 = vld [vmem:[%s4123_s3 + $0x1c0] sm:$0xff]  ;;  %v156_v32 = vld [vmem:[%s4123_s3 + $0x138] sm:$0xff] }
  0x38   :  { %207 = vmatpush.msra.mxu1 %v145_v15  ;;  %254 = vmatpush.msra.mxu3 %v176_v17  ;;  %v142_v27 = vld [vmem:[%s4123_s3 + $0xc8] sm:$0xff]  ;;  %v125_v30 = vld [vmem:[%s4123_s3 + $0x40] sm:$0xff]  ;;  %v172_v33 = vld [vmem:[%s4123_s3 + $0x1b8] sm:$0xff] }
  0x39   :  { %185 = vmatpush.msra.mxu0 %v128_v18  ;;  %232 = vmatpush.msra.mxu2 %v159_v20  ;;  %v141_v31 = vld [vmem:[%s4123_s3 + $0xc0] sm:$0xff]  ;;  %v124_v34 = vld [vmem:[%s4123_s3 + $0x38] sm:$0xff]  ;;  %v155_v36 = vld [vmem:[%s4123_s3 + $0x130] sm:$0xff] }
  0x3a   :  { %208 = vmatpush.msra.mxu1 %v144_v19  ;;  %255 = vmatpush.msra.mxu3 %v175_v21  ;;  %v140_v35 = vld [vmem:[%s4123_s3 + $0xb8] sm:$0xff]  ;;  %v171_v37 = vld [vmem:[%s4123_s3 + $0x1b0] sm:$0xff]  ;;  %v154_v40 = vld [vmem:[%s4123_s3 + $0x128] sm:$0xff] }
  0x3b   :  { %186 = vmatpush.msra.mxu0 %v127_v22  ;;  %233 = vmatpush.msra.mxu2 %v158_v24  ;;  %v123_v38 = vld [vmem:[%s4123_s3 + $0x30] sm:$0xff]  ;;  %v170_v41 = vld [vmem:[%s4123_s3 + $0x1a8] sm:$0xff]  ;;  %v153_v44 = vld [vmem:[%s4123_s3 + $0x120] sm:$0xff] }
  0x3c   :  { %209 = vmatpush.msra.mxu1 %v143_v23  ;;  %256 = vmatpush.msra.mxu3 %v174_v25  ;;  %v139_v39 = vld [vmem:[%s4123_s3 + $0xb0] sm:$0xff]  ;;  %v122_v42 = vld [vmem:[%s4123_s3 + $0x28] sm:$0xff]  ;;  %v169_v45 = vld [vmem:[%s4123_s3 + $0x1a0] sm:$0xff] }
  0x3d   :  { %187 = vmatpush.msra.mxu0 %v126_v26  ;;  %234 = vmatpush.msra.mxu2 %v157_v28  ;;  %v138_v43 = vld [vmem:[%s4123_s3 + $0xa8] sm:$0xff]  ;;  %v121_v46 = vld [vmem:[%s4123_s3 + $0x20] sm:$0xff]  ;;  %v152_v48 = vld [vmem:[%s4123_s3 + $0x118] sm:$0xff] }
  0x3e   :  { %210 = vmatpush.msra.mxu1 %v142_v27  ;;  %257 = vmatpush.msra.mxu3 %v173_v29  ;;  %v137_v47 = vld [vmem:[%s4123_s3 + $0xa0] sm:$0xff]  ;;  %v168_v49 = vld [vmem:[%s4123_s3 + $0x198] sm:$0xff]  ;;  %v151_v52 = vld [vmem:[%s4123_s3 + $0x110] sm:$0xff] }
  0x3f   :  { %188 = vmatpush.msra.mxu0 %v125_v30  ;;  %235 = vmatpush.msra.mxu2 %v156_v32  ;;  %v120_v50 = vld [vmem:[%s4123_s3 + $0x18] sm:$0xff]  ;;  %v167_v53 = vld [vmem:[%s4123_s3 + $0x190] sm:$0xff]  ;;  %v150_v56 = vld [vmem:[%s4123_s3 + $0x108] sm:$0xff] }
  0x40   :  { %211 = vmatpush.msra.mxu1 %v141_v31  ;;  %258 = vmatpush.msra.mxu3 %v172_v33  ;;  %v136_v51 = vld [vmem:[%s4123_s3 + $0x98] sm:$0xff]  ;;  %v119_v54 = vld [vmem:[%s4123_s3 + $0x10] sm:$0xff]  ;;  %v166_v57 = vld [vmem:[%s4123_s3 + $0x188] sm:$0xff] }
  0x41   :  { %189 = vmatpush.msra.mxu0 %v124_v34  ;;  %236 = vmatpush.msra.mxu2 %v155_v36  ;;  %v135_v55 = vld [vmem:[%s4123_s3 + $0x90] sm:$0xff]  ;;  %v118_v58 = vld [vmem:[%s4123_s3 + $0x8] sm:$0xff]  ;;  %v149_v60 = vld [vmem:[%s4123_s3 + $0x100] sm:$0xff] }
  0x42   :  { %212 = vmatpush.msra.mxu1 %v140_v35  ;;  %259 = vmatpush.msra.mxu3 %v171_v37  ;;  %v134_v59 = vld [vmem:[%s4123_s3 + $0x88] sm:$0xff]  ;;  %v165_v61 = vld [vmem:[%s4123_s3 + $0x180] sm:$0xff]  ;;  %v111_v62 = vld [vmem:[%s4124_s26 + $0x10] sm:$0xff] }
  0x43   :  { %190 = vmatpush.msra.mxu0 %v123_v38  ;;  %237 = vmatpush.msra.mxu2 %v154_v40  ;;  %v112_v63 = vld [vmem:[%s4124_s26 + $0x18] sm:$0xff]  ;;  %v117_v0 = vld [vmem:[%s4123_s3] sm:$0xff]  ;;  %v110_v3 = vld [vmem:[%s4124_s26 + $0x8] sm:$0xff] }
  0x44   :  { %213 = vmatpush.msra.mxu1 %v139_v39  ;;  %260 = vmatpush.msra.mxu3 %v170_v41  ;;  %v133_v1 = vld [vmem:[%s4123_s3 + $0x80] sm:$0xff]  ;;  %v115_v4 = vld [vmem:[%s4124_s26 + $0x30] sm:$0xff]  ;;  %v116_v5 = vld [vmem:[%s4124_s26 + $0x38] sm:$0xff]  ;;  %s4085_s3 = smov 18  }
  0x45   :  { %191 = vmatpush.msra.mxu0 %v122_v42  ;;  %238 = vmatpush.msra.mxu2 %v153_v44  ;;  %v109_v2 = vld [vmem:[%s4124_s26] sm:$0xff]  ;;  %v114_v7 = vld [vmem:[%s4124_s26 + $0x28] sm:$0xff] }
  0x46   :  { %214 = vmatpush.msra.mxu1 %v138_v43  ;;  %261 = vmatpush.msra.mxu3 %v169_v45  ;;  %v113_v6 = vld [vmem:[%s4124_s26 + $0x20] sm:$0xff]  ;;  %s4079_s26 = smov 17  }
  0x47   :  { %192 = vmatpush.msra.mxu0 %v121_v46  ;;  %239 = vmatpush.msra.mxu2 %v152_v48  ;;  %v275_v24 = vld [vmem:[%s4125_s4] sm:$0xff] }
  0x48   :  { %215 = vmatpush.msra.mxu1 %v137_v47  ;;  %262 = vmatpush.msra.mxu3 %v168_v49 }
  0x49   :  { %193 = vmatpush.msra.mxu0 %v120_v50  ;;  %240 = vmatpush.msra.mxu2 %v151_v52 }
  0x4a   :  { %216 = vmatpush.msra.mxu1 %v136_v51  ;;  %263 = vmatpush.msra.mxu3 %v167_v53 }
  0x4b   :  { %194 = vmatpush.msra.mxu0 %v119_v54  ;;  %241 = vmatpush.msra.mxu2 %v150_v56 }
  0x4c   :  { %217 = vmatpush.msra.mxu1 %v135_v55  ;;  %264 = vmatpush.msra.mxu3 %v166_v57 }
  0x4d   :  { %195 = vmatpush.msra.mxu0 %v118_v58  ;;  %242 = vmatpush.msra.mxu2 %v149_v60 }
  0x4e   :  { %218 = vmatpush.msra.mxu1 %v134_v59  ;;  %265 = vmatpush.msra.mxu3 %v165_v61 }
  0x4f   :  { %243 = vmatmul.f32.vlgmr.msra.gmra.mxu2 %v111_v62  ;;  %266 = vmatmul.f32.vlgmr.msra.gmra.mxu3 %v112_v63 }
  0x50   :  { %196 = vmatpush.msra.mxu0 %v117_v0  ;;  %219 = vmatpush.msra.mxu1 %v133_v1 }
  0x51   :  { %197 = vmatmul.f32.vlgmr.msra.gmra.mxu0 %v109_v2  ;;  %220 = vmatmul.f32.vlgmr.msra.gmra.mxu1 %v110_v3 }
  0x57   :  { %246 = vmatmul.f32.gmra.mxu2 %v115_v4  ;;  %269 = vmatmul.f32.gmra.mxu3 %v116_v5 }
  0x59   :  { %200 = vmatmul.f32.gmra.mxu0 %v113_v6  ;;  %223 = vmatmul.f32.gmra.mxu1 %v114_v7 }
  0xce   :  { %v198_v8 = vpop.f32.mrf.mxu0  ;;  %v221_v9 = vpop.f32.mrf.mxu1 }
  0xcf   :  { %v222_v12 = vadd.f32 %v221_v9, %v198_v8 }
  0xd2   :  { %v244_v10 = vpop.f32.mrf.mxu2  ;;  %v267_v11 = vpop.f32.mrf.mxu3 }
  0xd3   :  { %v245_v16 = vadd.f32 %v244_v10, %v222_v12 }
  0xd5   :  { %v268_v20 = vadd.f32 %v267_v11, %v245_v16 }
  0xd6   :  { %v201_v13 = vpop.f32.mrf.mxu0  ;;  %v224_v14 = vpop.f32.mrf.mxu1 }
  0xd7   :  { %v225_v15 = vadd.f32 %v224_v14, %v201_v13  ;;  %v273_v23 = vmax.f32 %v268_v20, 0.0 }
  0xda   :  { %v247_v17 = vpop.f32.mrf.mxu2  ;;  %v270_v18 = vpop.f32.mrf.mxu3 }
  0xdb   :  { %v248_v19 = vadd.f32 %v247_v17, %v225_v15 }
  0xdd   :  { %v271_v21 = vadd.f32 %v270_v18, %v248_v19 }
  0xdf   :  { %v274_v22 = vmax.f32 %v271_v21, 0.0 }
  0xe1   :  { %298 = vmatpush.msrb.mxu0 %v274_v22  ;;  %2351 = vmatpush.msrb.mxu2 %v274_v22 }
  0xe3   :  { %299 = vmatpush.msrb.mxu0 %v273_v23  ;;  %2352 = vmatpush.msrb.mxu2 %v273_v23 }
  0xe4   :  { %2169 = vmatmul.msk.f32.vlgmr.msrb.gmra.mxu0 %vm277_vm0, %v275_v24 }
 0x161   :  { %v301_v25 = vpop.f32.mrf.mxu0 }
 0x162   :  { %307 = vadd.xlane.f32.xlu0 %v301_v25  ;;  %v311_v26 = vmul.f32 %v301_v25, %v301_v25 }
 0x16a   :  { %313 = vadd.xlane.f32.xlu0 %v311_v26 }
 0x1d5   :  { %v308_v27 = vpop.xlane.xlu0 %307 }
 0x1d6   :  { %v317_v28 = vmul.f32 0.0078125, %v308_v27 }
 0x1d8   :  { %v321_v30 = vmul.f32 %v317_v28, %v317_v28  ;;  %v327_v41 = vsub.f32 %v301_v25, %v317_v28 }
 0x1dd   :  { %v314_v29 = vpop.xlane.xlu0 %313 }
 0x1de   :  { %v319_v31 = vmul.f32 0.0078125, %v314_v29 }
 0x1e0   :  { %v323_v32 = vsub.f32 %v319_v31, %v321_v30 }
 0x1e2   :  { %v325_v33 = vmax.f32 %v323_v32, 0.0 }
 0x1e4   :  { %v329_v34 = vadd.f32 1e-05, %v325_v33 }
 0x1e6   :  { %2400 = vrsqrt.f32 %v329_v34  ;;  %vm337_vm2 = vweird.f32 %v329_v34 }
 0x1ec   :  { %v2401_v35 = vpop.eup %2400 }
 0x1ed   :  { %v332_v36 = vmul.f32 %v2401_v35, %v329_v34  ;;  %vm338_vm1 = vweird.f32 %v2401_v35 }
 0x1ee   :  { %vm339_vm3 = vmor %vm337_vm2, %vm338_vm1 }
 0x1ef   :  { %v333_v37 = vmul.f32 %v2401_v35, %v332_v36 }
 0x1f1   :  { %v334_v38 = vmul.f32 0.5, %v333_v37 }
 0x1f3   :  { %v335_v39 = vsub.f32 1.5, %v334_v38 }
 0x1f5   :  { %v336_v40 = vmul.f32 %v2401_v35, %v335_v39 }
 0x1f7   :  { %v340_v42 = vsel %vm339_vm3, %v2401_v35, %v336_v40 }
 0x1f8   :  { %v2860_v43 = vmul.f32 %v340_v42, %v327_v41 }
 0x1fa   :  { %v479_v44 = vmax.f32 %v2860_v43, 0.0 }
 0x1fc   :  { %v481_v45 = vrot.slane %v479_v44, 6  ;;  %v483_v46 = vrot.slane %v479_v44, 4  ;;  %v485_v47 = vrot.slane %v479_v44, 2 }
 0x1fe   :  { %v487_v48 = vsel %vm451_vm4, %v479_v44, %v481_v45 }
 0x1ff   :  { %v488_v49 = vsel %vm4094_vm5, %v487_v48, %v483_v46 }
 0x200   :  { %v2866_v50 = vsel %vm4093_vm6, %v488_v49, %v485_v47 }
 0x201   :  { %510 = vrot.lane.b32.xlu0 %v2866_v50, %s4025_s30  ;;  %533 = vrot.lane.b32.xlu2 %v2866_v50, %s4071_s5  ;;  %s4037_s30 = smov 36   ;;  %s4133_s5 = smov 127  }
 0x202   :  { %494 = vrot.lane.b32.xlu1 %v2866_v50, %s4083_s22  ;;  %s4138_s22 = smov 113  }
 0x209   :  { %613 = vrot.lane.b32.xlu0 %v2866_v50, %s4081_s23  ;;  %563 = vrot.lane.b32.xlu2 %v2866_v50, %s4033_s1  ;;  %s4043_s1 = smov 114   ;;  %s4139_s23 = smov 7  }
 0x20a   :  { %502 = vrot.lane.b32.xlu1 %v2866_v50, %s4077_s25  ;;  %s4135_s25 = smov 114  }
 0x211   :  { %623 = vrot.lane.b32.xlu0 %v2866_v50, %s4075_s24  ;;  %573 = vrot.lane.b32.xlu2 %v2866_v50, %s4085_s3  ;;  %s4136_s24 = smov 119  }
 0x212   :  { %543 = vrot.lane.b32.xlu1 %v2866_v50, %s4087_s2 }
 0x219   :  { %633 = vrot.lane.b32.xlu0 %v2866_v50, %s4038_s27  ;;  %518 = vrot.lane.b32.xlu2 %v2866_v50, %s4027_s7  ;;  %s4073_s7 = smov 16   ;;  %s4048_s27 = smov 113  }
 0x21a   :  { %603 = vrot.lane.b32.xlu1 %v2866_v50, %s4029_s28  ;;  %s4040_s28 = smov 2  }
 0x221   :  { %724 = vrot.lane.b32.xlu0 %v2866_v50, %s4031_s29  ;;  %583 = vrot.lane.b32.xlu2 %v2866_v50, %s4079_s26  ;;  %s4042_s29 = smov 34   ;;  %s4128_s26 = smov 14  }
 0x222   :  { %553 = vrot.lane.b32.xlu1 %v2866_v50, %s4035_s0  ;;  %s4045_s0 = smov 126  }
 0x229   :  { %734 = vrot.lane.b32.xlu0 %v2866_v50, %s4037_s30  ;;  %593 = vrot.lane.b32.xlu2 %v2866_v50, %s4073_s7  ;;  %s4047_s30 = smov 32   ;;  %s4140_s7 = smov 111  }
 0x22a   :  { %643 = vrot.lane.b32.xlu1 %v2866_v50, %s4040_s28  ;;  %s4050_s28 = smov 122  }
 0x231   :  { %744 = vrot.lane.b32.xlu0 %v2866_v50, %s4042_s29  ;;  %684 = vrot.lane.b32.xlu2 %v2866_v50, %s4043_s1  ;;  %s4052_s29 = smov 100   ;;  %s4053_s1 = smov 112  }
 0x232   :  { %654 = vrot.lane.b32.xlu1 %v2866_v50, %s4045_s0  ;;  %s4055_s0 = smov 118  }
 0x239   :  { %754 = vrot.lane.b32.xlu0 %v2866_v50, %s4047_s30  ;;  %694 = vrot.lane.b32.xlu2 %v2866_v50, %s4048_s27  ;;  %s4057_s30 = smov 98   ;;  %s4058_s27 = smov 111  }
 0x23a   :  { %664 = vrot.lane.b32.xlu1 %v2866_v50, %s4050_s28  ;;  %s4060_s28 = smov 30  }
 0x241   :  { %845 = vrot.lane.b32.xlu0 %v2866_v50, %s4052_s29  ;;  %704 = vrot.lane.b32.xlu2 %v2866_v50, %s4053_s1  ;;  %s4061_s29 = smov 96   ;;  %s4070_s1 = smov 4  }
 0x242   :  { %674 = vrot.lane.b32.xlu1 %v2866_v50, %s4055_s0  ;;  %s4062_s0 = smov 28  }
 0x249   :  { %855 = vrot.lane.b32.xlu0 %v2866_v50, %s4057_s30  ;;  %714 = vrot.lane.b32.xlu2 %v2866_v50, %s4058_s27  ;;  %s4063_s30 = smov 124   ;;  %s4064_s27 = smov 20  }
 0x24a   :  { %764 = vrot.lane.b32.xlu1 %v2866_v50, %s4060_s28  ;;  %s4069_s28 = smov 116  }
 0x251   :  { %865 = vrot.lane.b32.xlu0 %v2866_v50, %s4061_s29  ;;  %804 = vrot.lane.b32.xlu2 %v2866_v50, %s4070_s1  ;;  %s4068_s29 = smov 12   ;;  %s4134_s1 = smov 6  }
 0x252   :  { %774 = vrot.lane.b32.xlu1 %v2866_v50, %s4062_s0  ;;  %s4067_s0 = smov 108  }
 0x259   :  { %815 = vrot.lane.b32.xlu2 %v2866_v50, %s4063_s30  ;;  %s4066_s30 = smov 92  }
 0x25a   :  { %784 = vrot.lane.b32.xlu1 %v2866_v50, %s4064_s27  ;;  %s4065_s27 = smov 94  }
 0x25b   :  { %v534_v51 = vpop.permute.xlu2 %533 }
 0x261   :  { %825 = vrot.lane.b32.xlu2 %v2866_v50, %s4069_s28  ;;  %s4131_s28 = smov 10  }
 0x262   :  { %794 = vrot.lane.b32.xlu1 %v2866_v50, %s4068_s29  ;;  %s4132_s29 = smov 16  }
 0x263   :  { %v2942_v52 = vpop.permute.xlu2 %563 }
 0x269   :  { %835 = vrot.lane.b32.xlu2 %v2866_v50, %s4067_s0  ;;  %s4126_s0 = sld [smem:[#allocation17_spill]] }
 0x26a   :  { %885 = vrot.lane.b32.xlu1 %v2866_v50, %s4066_s30  ;;  %s4129_s30 = smov 17  }
 0x26b   :  { %v2948_v53 = vpop.permute.xlu2 %573 }
 0x26f   :  { %v2171_v13 = vld [vmem:[%s4126_s0 + $0x10] sm:$0xff]  ;;  %v2172_v14 = vld [vmem:[%s4126_s0 + $0x18] sm:$0xff]  ;;  %v491_v16 = vld [vmem:[%s4126_s0] sm:$0xff] }
 0x270   :  { %v2179_v15 = vld [vmem:[%s4126_s0 + $0x50] sm:$0xff]  ;;  %v492_v17 = vld [vmem:[%s4126_s0 + $0x8] sm:$0xff]  ;;  %v2180_v18 = vld [vmem:[%s4126_s0 + $0x58] sm:$0xff] }
 0x271   :  { %v2181_v19 = vld [vmem:[%s4126_s0 + $0x60] sm:$0xff]  ;;  %v2182_v20 = vld [vmem:[%s4126_s0 + $0x68] sm:$0xff]  ;;  %v536_v31 = vmul.f32 %v2179_v15, %v534_v51  ;;  %v537_v32 = vmul.f32 %v2180_v18, %v534_v51  ;;  %v2187_v34 = vld [vmem:[%s4126_s0 + $0x90] sm:$0xff] }
 0x272   :  { %875 = vrot.lane.b32.xlu1 %v2866_v50, %s4065_s27  ;;  %v2185_v22 = vld [vmem:[%s4126_s0 + $0x80] sm:$0xff]  ;;  %v2178_v24 = vld [vmem:[%s4126_s0 + $0x48] sm:$0xff]  ;;  %v2188_v38 = vld [vmem:[%s4126_s0 + $0x98] sm:$0xff]  ;;  %s4130_s27 = smov 8  }
 0x273   :  { %v511_v55 = vpop.permute.xlu0 %510  ;;  %v2952_v56 = vpop.permute.xlu2 %518  ;;  %v2177_v23 = vld [vmem:[%s4126_s0 + $0x40] sm:$0xff]  ;;  %v2174_v28 = vld [vmem:[%s4126_s0 + $0x28] sm:$0xff]  ;;  %v566_v37 = vmul.f32 %v2185_v22, %v2942_v52  ;;  %v2175_v39 = vld [vmem:[%s4126_s0 + $0x30] sm:$0xff]  ;;  %v527_v42 = vmul.f32 %v2178_v24, %v2866_v50 }
 0x274   :  { %v495_v54 = vpop.permute.xlu1 %494  ;;  %v2173_v27 = vld [vmem:[%s4126_s0 + $0x20] sm:$0xff]  ;;  %v2186_v33 = vld [vmem:[%s4126_s0 + $0x88] sm:$0xff]  ;;  %v2176_v40 = vld [vmem:[%s4126_s0 + $0x38] sm:$0xff]  ;;  %v526_v41 = vmul.f32 %v2177_v23, %v2866_v50  ;;  %v514_v45 = vmul.f32 %v2174_v28, %v511_v55 }
 0x275   :  { %v497_v29 = vmul.f32 %v495_v54, %v491_v16  ;;  %v498_v30 = vmul.f32 %v495_v54, %v492_v17  ;;  %v513_v44 = vmul.f32 %v2173_v27, %v511_v55  ;;  %v2194_v48 = vld [vmem:[%s4126_s0 + $0xc8] sm:$0xff]  ;;  %v2183_v49 = vld [vmem:[%s4126_s0 + $0x70] sm:$0xff]  ;;  %v2184_v51 = vld [vmem:[%s4126_s0 + $0x78] sm:$0xff]  ;;  %v567_v50 = vmul.f32 %v2186_v33, %v2942_v52 }
 0x276   :  { %v576_v55 = vmul.f32 %v2187_v34, %v2948_v53  ;;  %v2190_v15 = vld [vmem:[%s4126_s0 + $0xa8] sm:$0xff]  ;;  %v577_v16 = vmul.f32 %v2188_v38, %v2948_v53  ;;  %v521_v17 = vmul.f32 %v2175_v39, %v2952_v56  ;;  %v2193_v52 = vld [vmem:[%s4126_s0 + $0xc0] sm:$0xff]  ;;  %v522_v22 = vmul.f32 %v2176_v40, %v2952_v56  ;;  %v2195_v23 = vld [vmem:[%s4126_s0 + $0xd0] sm:$0xff] }
 0x277   :  { %v2196_v53 = vld [vmem:[%s4126_s0 + $0xd8] sm:$0xff]  ;;  %v2191_v39 = vld [vmem:[%s4126_s0 + $0xb0] sm:$0xff] }
 0x278   :  { %v2192_v40 = vld [vmem:[%s4126_s0 + $0xb8] sm:$0xff] }
 0x27b   :  { %v2954_v59 = vpop.permute.xlu0 %613  ;;  %v2956_v60 = vpop.permute.xlu2 %583 }
 0x27c   :  { %v503_v57 = vpop.permute.xlu1 %502  ;;  %v587_v56 = vmul.f32 %v2190_v15, %v2956_v60  ;;  %v617_v38 = vmul.f32 %v2196_v53, %v2954_v59  ;;  %v2205_v15 = vld [vmem:[%s4126_s0 + $0x120] sm:$0xff] }
 0x27d   :  { %v505_v25 = vmul.f32 %v2171_v13, %v503_v57  ;;  %v506_v26 = vmul.f32 %v2172_v14, %v503_v57  ;;  %v529_v13 = vadd.f32 %v527_v42, %v498_v30  ;;  %v2189_v14 = vld [vmem:[%s4126_s0 + $0xa0] sm:$0xff] }
 0x27e   :  { %v586_v28 = vmul.f32 %v2189_v14, %v2956_v60 }
 0x27f   :  { %v538_v46 = vadd.f32 %v536_v31, %v505_v25  ;;  %v539_v47 = vadd.f32 %v537_v32, %v506_v26  ;;  %v2201_v31 = vld [vmem:[%s4126_s0 + $0x100] sm:$0xff]  ;;  %v569_v34 = vadd.f32 %v567_v50, %v529_v13  ;;  %v2200_v13 = vld [vmem:[%s4126_s0 + $0xf8] sm:$0xff] }
 0x280   :  { %v2197_v32 = vld [vmem:[%s4126_s0 + $0xe0] sm:$0xff] }
 0x281   :  { %v579_v30 = vadd.f32 %v577_v16, %v539_v47  ;;  %v2206_v16 = vld [vmem:[%s4126_s0 + $0x128] sm:$0xff] }
 0x283   :  { %v2960_v62 = vpop.permute.xlu0 %623  ;;  %v2962_v63 = vpop.permute.xlu2 %593  ;;  %v619_v50 = vadd.f32 %v617_v38, %v579_v30 }
 0x284   :  { %v544_v58 = vpop.permute.xlu1 %543  ;;  %v626_v47 = vmul.f32 %v2197_v32, %v2960_v62 }
 0x285   :  { %v546_v35 = vmul.f32 %v2181_v19, %v544_v58  ;;  %v547_v36 = vmul.f32 %v2182_v20, %v544_v58  ;;  %v528_v58 = vadd.f32 %v526_v41, %v497_v29  ;;  %v2202_v20 = vld [vmem:[%s4126_s0 + $0x108] sm:$0xff]  ;;  %v578_v29 = vadd.f32 %v576_v55, %v538_v46  ;;  %v2203_v46 = vld [vmem:[%s4126_s0 + $0x110] sm:$0xff] }
 0x286   :  { %v596_v55 = vmul.f32 %v2191_v39, %v2962_v63 }
 0x287   :  { %v548_v18 = vadd.f32 %v546_v35, %v513_v44  ;;  %v549_v19 = vadd.f32 %v547_v36, %v514_v45  ;;  %v568_v33 = vadd.f32 %v566_v37, %v528_v58  ;;  %v616_v36 = vmul.f32 %v2195_v23, %v2954_v59  ;;  %v2204_v59 = vld [vmem:[%s4126_s0 + $0x118] sm:$0xff] }
 0x288   :  { %v597_v58 = vmul.f32 %v2192_v40, %v2962_v63  ;;  %v2217_v63 = vld [vmem:[%s4126_s0 + $0x180] sm:$0xff] }
 0x289   :  { %v588_v41 = vadd.f32 %v586_v28, %v548_v18  ;;  %v589_v42 = vadd.f32 %v587_v56, %v549_v19  ;;  %v2218_v18 = vld [vmem:[%s4126_s0 + $0x188] sm:$0xff] }
 0x28b   :  { %v2966_v1 = vpop.permute.xlu0 %633  ;;  %v2968_v2 = vpop.permute.xlu2 %684 }
 0x28c   :  { %v2958_v61 = vpop.permute.xlu1 %603 }
 0x28d   :  { %v607_v24 = vmul.f32 %v2194_v48, %v2958_v61  ;;  %v606_v35 = vmul.f32 %v2193_v52, %v2958_v61 }
 0x28f   :  { %v609_v37 = vadd.f32 %v607_v24, %v569_v34  ;;  %v608_v14 = vadd.f32 %v606_v35, %v568_v33  ;;  %v2226_v33 = vld [vmem:[%s4126_s0 + $0x1c8] sm:$0xff] }
 0x293   :  { %v2972_v4 = vpop.permute.xlu0 %724  ;;  %v2974_v5 = vpop.permute.xlu2 %694 }
 0x294   :  { %v2964_v0 = vpop.permute.xlu1 %553  ;;  %v727_v35 = vmul.f32 %v2217_v63, %v2972_v4  ;;  %v2234_v63 = vld [vmem:[%s4126_s0 + $0x208] sm:$0xff] }
 0x295   :  { %v556_v25 = vmul.f32 %v2183_v49, %v2964_v0  ;;  %v557_v26 = vmul.f32 %v2184_v51, %v2964_v0  ;;  %v2198_v0 = vld [vmem:[%s4126_s0 + $0xe8] sm:$0xff]  ;;  %v2199_v49 = vld [vmem:[%s4126_s0 + $0xf0] sm:$0xff]  ;;  %v618_v51 = vadd.f32 %v616_v36, %v578_v29 }
 0x296   :  { %v627_v48 = vmul.f32 %v2198_v0, %v2960_v62  ;;  %v636_v30 = vmul.f32 %v2199_v49, %v2966_v1  ;;  %v2219_v36 = vld [vmem:[%s4126_s0 + $0x190] sm:$0xff]  ;;  %v2222_v49 = vld [vmem:[%s4126_s0 + $0x1a8] sm:$0xff] }
 0x297   :  { %v558_v44 = vadd.f32 %v556_v25, %v521_v17  ;;  %v559_v45 = vadd.f32 %v557_v26, %v522_v22  ;;  %v2209_v17 = vld [vmem:[%s4126_s0 + $0x140] sm:$0xff]  ;;  %v2211_v25 = vld [vmem:[%s4126_s0 + $0x150] sm:$0xff]  ;;  %v2212_v26 = vld [vmem:[%s4126_s0 + $0x158] sm:$0xff] }
 0x298   :  { %v629_v22 = vadd.f32 %v627_v48, %v589_v42  ;;  %v687_v34 = vmul.f32 %v2209_v17, %v2968_v2  ;;  %v698_v39 = vmul.f32 %v2212_v26, %v2974_v5  ;;  %v2208_v42 = vld [vmem:[%s4126_s0 + $0x138] sm:$0xff]  ;;  %v2221_v48 = vld [vmem:[%s4126_s0 + $0x1a0] sm:$0xff] }
 0x299   :  { %v598_v28 = vadd.f32 %v596_v55, %v558_v44  ;;  %v599_v56 = vadd.f32 %v597_v58, %v559_v45  ;;  %v2215_v55 = vld [vmem:[%s4126_s0 + $0x170] sm:$0xff] }
 0x29b   :  { %v2980_v8 = vpop.permute.xlu0 %734  ;;  %v2982_v9 = vpop.permute.xlu2 %704 }
 0x29c   :  { %v2970_v3 = vpop.permute.xlu1 %643 }
 0x29d   :  { %v648_v60 = vmul.f32 %v2202_v20, %v2970_v3  ;;  %v647_v61 = vmul.f32 %v2201_v31, %v2970_v3  ;;  %v2210_v3 = vld [vmem:[%s4126_s0 + $0x148] sm:$0xff]  ;;  %v628_v20 = vadd.f32 %v626_v47, %v588_v41  ;;  %v637_v31 = vmul.f32 %v2200_v13, %v2966_v1  ;;  %v2220_v1 = vld [vmem:[%s4126_s0 + $0x198] sm:$0xff] }
 0x29e   :  { %v688_v24 = vmul.f32 %v2210_v3, %v2968_v2  ;;  %v2213_v2 = vld [vmem:[%s4126_s0 + $0x160] sm:$0xff]  ;;  %v738_v47 = vmul.f32 %v2220_v1, %v2980_v8 }
 0x29f   :  { %v650_v62 = vadd.f32 %v648_v60, %v609_v37  ;;  %v649_v29 = vadd.f32 %v647_v61, %v608_v14  ;;  %v728_v60 = vmul.f32 %v2218_v18, %v2972_v4  ;;  %v2207_v4 = vld [vmem:[%s4126_s0 + $0x130] sm:$0xff]  ;;  %v2214_v37 = vld [vmem:[%s4126_s0 + $0x168] sm:$0xff]  ;;  %v639_v45 = vadd.f32 %v637_v31, %v599_v56  ;;  %v2225_v61 = vld [vmem:[%s4126_s0 + $0x1c0] sm:$0xff] }
 0x2a0   :  { %v2228_v14 = vld [vmem:[%s4126_s0 + $0x1d8] sm:$0xff] }
 0x2a1   :  { %v690_v38 = vadd.f32 %v688_v24, %v650_v62  ;;  %v689_v44 = vadd.f32 %v687_v34, %v649_v29  ;;  %v708_v62 = vmul.f32 %v2214_v37, %v2982_v9 }
 0x2a3   :  { %v2986_v11 = vpop.permute.xlu0 %744  ;;  %v2988_v12 = vpop.permute.xlu2 %714  ;;  %v730_v13 = vadd.f32 %v728_v60, %v690_v38  ;;  %v2242_v60 = vld [vmem:[%s4126_s0 + $0x248] sm:$0xff] }
 0x2a4   :  { %v2976_v6 = vpop.permute.xlu1 %654  ;;  %v717_v24 = vmul.f32 %v2215_v55, %v2988_v12 }
 0x2a5   :  { %v657_v19 = vmul.f32 %v2203_v46, %v2976_v6  ;;  %v658_v52 = vmul.f32 %v2204_v59, %v2976_v6  ;;  %v737_v59 = vmul.f32 %v2219_v36, %v2980_v8 }
 0x2a7   :  { %v659_v40 = vadd.f32 %v657_v19, %v618_v51  ;;  %v660_v41 = vadd.f32 %v658_v52, %v619_v50  ;;  %v707_v50 = vmul.f32 %v2213_v2, %v2982_v9  ;;  %v748_v19 = vmul.f32 %v2222_v49, %v2986_v11  ;;  %v2227_v9 = vld [vmem:[%s4126_s0 + $0x1d0] sm:$0xff]  ;;  %v2236_v2 = vld [vmem:[%s4126_s0 + $0x218] sm:$0xff] }
 0x2a8   :  { %v729_v52 = vadd.f32 %v727_v35, %v689_v44  ;;  %v2241_v35 = vld [vmem:[%s4126_s0 + $0x240] sm:$0xff] }
 0x2a9   :  { %v700_v17 = vadd.f32 %v698_v39, %v660_v41  ;;  %v2229_v41 = vld [vmem:[%s4126_s0 + $0x1e0] sm:$0xff] }
 0x2ab   :  { %v3058_v54 = vpop.permute.xlu0 %754  ;;  %v3060_v57 = vpop.permute.xlu2 %804  ;;  %v740_v38 = vadd.f32 %v738_v47, %v700_v17  ;;  %v2249_v47 = vld [vmem:[%s4126_s0 + $0x280] sm:$0xff] }
 0x2ac   :  { %v2978_v7 = vpop.permute.xlu1 %664 }
 0x2ad   :  { %v667_v32 = vmul.f32 %v2205_v15, %v2978_v7  ;;  %v668_v0 = vmul.f32 %v2206_v16, %v2978_v7  ;;  %v697_v7 = vmul.f32 %v2211_v25, %v2974_v5  ;;  %v638_v5 = vadd.f32 %v636_v30, %v598_v28  ;;  %v2216_v15 = vld [vmem:[%s4126_s0 + $0x178] sm:$0xff]  ;;  %v2223_v25 = vld [vmem:[%s4126_s0 + $0x1b0] sm:$0xff]  ;;  %v2230_v30 = vld [vmem:[%s4126_s0 + $0x1e8] sm:$0xff] }
 0x2ae   :  { %v718_v31 = vmul.f32 %v2216_v15, %v2988_v12  ;;  %v2243_v15 = vld [vmem:[%s4126_s0 + $0x250] sm:$0xff] }
 0x2af   :  { %v669_v3 = vadd.f32 %v667_v32, %v628_v20  ;;  %v670_v51 = vadd.f32 %v668_v0, %v629_v22  ;;  %v699_v16 = vadd.f32 %v697_v7, %v659_v40  ;;  %v2233_v32 = vld [vmem:[%s4126_s0 + $0x200] sm:$0xff]  ;;  %v809_v0 = vmul.f32 %v2234_v63, %v3060_v57 }
 0x2b0   :  { %v757_v7 = vmul.f32 %v2223_v25, %v3058_v54 }
 0x2b1   :  { %v709_v26 = vadd.f32 %v707_v50, %v669_v3  ;;  %v710_v28 = vadd.f32 %v708_v62, %v670_v51  ;;  %v739_v1 = vadd.f32 %v737_v59, %v699_v16  ;;  %v2238_v3 = vld [vmem:[%s4126_s0 + $0x228] sm:$0xff] }
 0x2b3   :  { %v3148_v23 = vpop.permute.xlu0 %845  ;;  %v3150_v53 = vpop.permute.xlu2 %815 }
 0x2b4   :  { %v2984_v10 = vpop.permute.xlu1 %674  ;;  %v819_v49 = vmul.f32 %v2236_v2, %v3150_v53 }
 0x2b5   :  { %v677_v58 = vmul.f32 %v2207_v4, %v2984_v10  ;;  %v678_v8 = vmul.f32 %v2208_v42, %v2984_v10  ;;  %v747_v10 = vmul.f32 %v2221_v48, %v2986_v11  ;;  %v808_v42 = vmul.f32 %v2233_v32, %v3060_v57  ;;  %v2231_v57 = vld [vmem:[%s4126_s0 + $0x1f0] sm:$0xff]  ;;  %v2250_v48 = vld [vmem:[%s4126_s0 + $0x288] sm:$0xff] }
 0x2b7   :  { %v680_v34 = vadd.f32 %v678_v8, %v639_v45  ;;  %v749_v44 = vadd.f32 %v747_v10, %v709_v26  ;;  %v848_v45 = vmul.f32 %v2241_v35, %v3148_v23 }
 0x2b9   :  { %v720_v59 = vadd.f32 %v718_v31, %v680_v34 }
 0x2bb   :  { %v3232_v11 = vpop.permute.xlu0 %855  ;;  %v3234_v56 = vpop.permute.xlu2 %825 }
 0x2bc   :  { %v3014_v21 = vpop.permute.xlu1 %764 }
 0x2bd   :  { %v768_v46 = vmul.f32 %v2226_v33, %v3014_v21  ;;  %v767_v18 = vmul.f32 %v2225_v61, %v3014_v21  ;;  %v2224_v21 = vld [vmem:[%s4126_s0 + $0x1b8] sm:$0xff]  ;;  %v679_v33 = vadd.f32 %v677_v58, %v638_v5  ;;  %v849_v61 = vmul.f32 %v2242_v60, %v3148_v23 }
 0x2be   :  { %v758_v39 = vmul.f32 %v2224_v21, %v3058_v54  ;;  %v750_v54 = vadd.f32 %v748_v19, %v710_v28  ;;  %v2232_v5 = vld [vmem:[%s4126_s0 + $0x1f8] sm:$0xff] }
 0x2bf   :  { %v770_v20 = vadd.f32 %v768_v46, %v730_v13  ;;  %v769_v36 = vadd.f32 %v767_v18, %v729_v52  ;;  %v719_v46 = vadd.f32 %v717_v24, %v679_v33  ;;  %v2244_v23 = vld [vmem:[%s4126_s0 + $0x258] sm:$0xff]  ;;  %v2245_v33 = vld [vmem:[%s4126_s0 + $0x260] sm:$0xff] }
 0x2c0   :  { %v859_v10 = vmul.f32 %v2244_v23, %v3232_v11  ;;  %v760_v52 = vadd.f32 %v758_v39, %v720_v59 }
 0x2c1   :  { %v811_v40 = vadd.f32 %v809_v0, %v770_v20  ;;  %v810_v51 = vadd.f32 %v808_v42, %v769_v36  ;;  %v759_v19 = vadd.f32 %v757_v7, %v719_v46  ;;  %v2246_v20 = vld [vmem:[%s4126_s0 + $0x268] sm:$0xff] }
 0x2c3   :  { %v851_v62 = vadd.f32 %v849_v61, %v811_v40  ;;  %v836_v24 = vpop.permute.xlu2 %835  ;;  %v850_v26 = vadd.f32 %v848_v45, %v810_v51 }
 0x2c4   :  { %v3088_v27 = vpop.permute.xlu1 %774 }
 0x2c5   :  { %v778_v29 = vmul.f32 %v2228_v14, %v3088_v27  ;;  %v777_v12 = vmul.f32 %v2227_v9, %v3088_v27  ;;  %v2235_v27 = vld [vmem:[%s4126_s0 + $0x210] sm:$0xff]  ;;  %v866_v9 = vpop.permute.xlu0 %865 }
 0x2c6   :  { %v818_v58 = vmul.f32 %v2235_v27, %v3150_v53  ;;  %v829_v53 = vmul.f32 %v2238_v3, %v3234_v56  ;;  %v869_v36 = vmul.f32 %v2246_v20, %v866_v9  ;;  %v868_v2 = vmul.f32 %v2245_v33, %v866_v9  ;;  %v976_v33 = vld [vmem:[#allocation7] sm:$0xff] }
 0x2c7   :  { %v780_v37 = vadd.f32 %v778_v29, %v740_v38  ;;  %v779_v50 = vadd.f32 %v777_v12, %v739_v1  ;;  %v858_v29 = vmul.f32 %v2243_v15, %v3232_v11  ;;  %v2247_v11 = vld [vmem:[%s4126_s0 + $0x270] sm:$0xff]  ;;  %v2248_v38 = vld [vmem:[%s4126_s0 + $0x278] sm:$0xff] }
 0x2c9   :  { %v821_v16 = vadd.f32 %v819_v49, %v780_v37  ;;  %v820_v25 = vadd.f32 %v818_v58, %v779_v50 }
 0x2cb   :  { %v861_v60 = vadd.f32 %v859_v10, %v821_v16  ;;  %v860_v39 = vadd.f32 %v858_v29, %v820_v25 }
 0x2cc   :  { %v3159_v6 = vpop.permute.xlu1 %784 }
 0x2cd   :  { %v788_v4 = vmul.f32 %v2230_v30, %v3159_v6  ;;  %v787_v55 = vmul.f32 %v2229_v41, %v3159_v6  ;;  %v2237_v6 = vld [vmem:[%s4126_s0 + $0x220] sm:$0xff]  ;;  %v2239_v30 = vld [vmem:[%s4126_s0 + $0x230] sm:$0xff] }
 0x2ce   :  { %v828_v0 = vmul.f32 %v2237_v6, %v3234_v56  ;;  %v838_v12 = vmul.f32 %v2239_v30, %v836_v24 }
 0x2cf   :  { %v790_v8 = vadd.f32 %v788_v4, %v750_v54  ;;  %v789_v21 = vadd.f32 %v787_v55, %v749_v44 }
 0x2d1   :  { %v831_v31 = vadd.f32 %v829_v53, %v790_v8  ;;  %v830_v7 = vadd.f32 %v828_v0, %v789_v21 }
 0x2d3   :  { %v871_v4 = vadd.f32 %v869_v36, %v831_v31  ;;  %v870_v45 = vadd.f32 %v868_v2, %v830_v7  ;;  %v1005_v36 = vld [vmem:[#allocation7 + $0x28] sm:$0xff] }
 0x2d4   :  { %v795_v22 = vpop.permute.xlu1 %794 }
 0x2d5   :  { %v798_v13 = vmul.f32 %v2232_v5, %v795_v22  ;;  %v797_v17 = vmul.f32 %v2231_v57, %v795_v22  ;;  %v2240_v22 = vld [vmem:[%s4126_s0 + $0x238] sm:$0xff]  ;;  %s4137_s0 = smov 110  }
 0x2d6   :  { %v839_v1 = vmul.f32 %v2240_v22, %v836_v24 }
 0x2d7   :  { %v800_v32 = vadd.f32 %v798_v13, %v760_v52  ;;  %v799_v34 = vadd.f32 %v797_v17, %v759_v19 }
 0x2d9   :  { %v841_v41 = vadd.f32 %v839_v1, %v800_v32  ;;  %v840_v37 = vadd.f32 %v838_v12, %v799_v34  ;;  %v1026_v1 = vld [vmem:[#allocation7 + $0x40] sm:$0xff] }
 0x2da   :  { %v1054_v12 = vld [vmem:[#allocation7 + $0x60] sm:$0xff] }
 0x2dc   :  { %v886_v14 = vpop.permute.xlu1 %885 }
 0x2dd   :  { %v888_v63 = vmul.f32 %v2249_v47, %v886_v14  ;;  %v889_v18 = vmul.f32 %v2250_v48, %v886_v14  ;;  %v898_v47 = vld [vmem:[%s4005_s6] sm:$0xff]  ;;  %v899_v48 = vld [vmem:[%s4005_s6 + $0x8] sm:$0xff]  ;;  %s4127_s6 = smov 9  }
 0x2df   :  { %v891_v28 = vadd.f32 %v889_v18, %v851_v62  ;;  %v890_v35 = vadd.f32 %v888_v63, %v850_v26 }
 0x2e1   :  { %v893_v56 = vadd.f32 %v891_v28, %v861_v60  ;;  %v892_v44 = vadd.f32 %v890_v35, %v860_v39  ;;  %v276_v35 = vld [vmem:[%s4125_s4 + $0x8] sm:$0xff]  ;;  %v1001_v60 = vld [vmem:[#allocation7 + $0x20] sm:$0xff]  ;;  %s3520_s4 = sld [smem:[#allocation2 + $0x83]] }
 0x2e2   :  { %2170 = vmatmul.msk.f32.vlgmr.msrb.gmra.mxu2 %vm277_vm0, %v276_v35 }
 0x2e3   :  { %v895_v5 = vadd.f32 %v893_v56, %v871_v4  ;;  %v894_v59 = vadd.f32 %v892_v44, %v870_v45 }
 0x2e4   :  { %v876_v40 = vpop.permute.xlu1 %875 }
 0x2e5   :  { %v878_v42 = vmul.f32 %v2247_v11, %v876_v40  ;;  %v879_v27 = vmul.f32 %v2248_v38, %v876_v40  ;;  %v983_v38 = vld [vmem:[#allocation7 + $0x8] sm:$0xff] }
 0x2e7   :  { %v881_v54 = vadd.f32 %v879_v27, %v841_v41  ;;  %v880_v61 = vadd.f32 %v878_v42, %v840_v37  ;;  %v1082_v41 = vld [vmem:[#allocation7 + $0x80] sm:$0xff]  ;;  %v1033_v37 = vld [vmem:[#allocation7 + $0x48] sm:$0xff] }
 0x2e9   :  { %v897_v46 = vadd.f32 %v895_v5, %v881_v54  ;;  %v896_v57 = vadd.f32 %v894_v59, %v880_v61  ;;  %v1110_v59 = vld [vmem:[#allocation7 + $0xa0] sm:$0xff] }
 0x2eb   :  { %920 = vmatpush.msrb.mxu1 %v897_v46 }
 0x2ed   :  { %921 = vmatpush.msrb.mxu1 %v896_v57  ;;  %v1061_v57 = vld [vmem:[#allocation7 + $0x68] sm:$0xff] }
 0x2ee   :  { %2251 = vmatmul.msk.f32.vlgmr.msrb.gmra.mxu1 %vm277_vm0, %v898_v47  ;;  %v989_v47 = vld [vmem:[#allocation7 + $0x10] sm:$0xff] }
 0x2f6   :  { %2252 = vmatmul.msk.f32.gmra.mxu1 %vm277_vm0, %v899_v48 }
 0x36b   :  { %v923_v49 = vpop.f32.mrf.mxu1 }
 0x36c   :  { %929 = vadd.xlane.f32.xlu2 %v923_v49  ;;  %v933_v23 = vmul.f32 %v923_v49, %v923_v49 }
 0x36e   :  { %935 = vadd.xlane.f32.xlu0 %v933_v23  ;;  %v1012_v23 = vld [vmem:[#allocation7 + $0x30] sm:$0xff] }
 0x373   :  { %v3346_v52 = vpop.f32.mrf.mxu1 }
 0x3df   :  { %v930_v3 = vpop.xlane.xlu2 %929 }
 0x3e0   :  { %v939_v51 = vmul.f32 0.0078125, %v930_v3  ;;  %v1089_v3 = vld [vmem:[#allocation7 + $0x88] sm:$0xff] }
 0x3e1   :  { %v936_v50 = vpop.xlane.xlu0 %935 }
 0x3e2   :  { %v943_v55 = vmul.f32 %v939_v51, %v939_v51  ;;  %v941_v58 = vmul.f32 0.0078125, %v936_v50  ;;  %v949_v10 = vsub.f32 %v923_v49, %v939_v51 }
 0x3e4   :  { %v945_v8 = vsub.f32 %v941_v58, %v943_v55 }
 0x3e6   :  { %v947_v13 = vmax.f32 %v945_v8, 0.0  ;;  %v1117_v8 = vld [vmem:[#allocation7 + $0xa8] sm:$0xff] }
 0x3e8   :  { %v951_v14 = vadd.f32 1e-05, %v947_v13  ;;  %v1138_v13 = vld [vmem:[#allocation7 + $0xc0] sm:$0xff] }
 0x3ea   :  { %2402 = vrsqrt.f32 %v951_v14  ;;  %vm959_vm8 = vweird.f32 %v951_v14 }
 0x3f0   :  { %v2403_v62 = vpop.eup %2402 }
 0x3f1   :  { %v954_v15 = vmul.f32 %v2403_v62, %v951_v14  ;;  %vm960_vm7 = vweird.f32 %v2403_v62 }
 0x3f2   :  { %vm961_vm9 = vmor %vm959_vm8, %vm960_vm7 }
 0x3f3   :  { %v955_v16 = vmul.f32 %v2403_v62, %v954_v15 }
 0x3f5   :  { %v956_v17 = vmul.f32 0.5, %v955_v16 }
 0x3f7   :  { %v957_v63 = vsub.f32 1.5, %v956_v17 }
 0x3f9   :  { %v958_v18 = vmul.f32 %v2403_v62, %v957_v63 }
 0x3fb   :  { %v962_v6 = vsel %vm961_vm9, %v2403_v62, %v958_v18  ;;  %v1040_v18 = vld [vmem:[#allocation7 + $0x50] sm:$0xff] }
 0x3fc   :  { %v973_v53 = vmul.f32 %v962_v6, %v949_v10  ;;  %v1019_v10 = vld [vmem:[#allocation7 + $0x38] sm:$0xff] }
 0x3fe   :  { %v975_v19 = vmax.f32 %v973_v53, 0.0 }
 0x400   :  { %1034 = vrot.lane.b32.xlu0 %v975_v19, %s4085_s3  ;;  %1013 = vrot.lane.b32.xlu2 %v975_v19, %s4087_s2  ;;  %s4141_s3 = smov 112   ;;  %s4142_s2 = smov 15   ;;  %v1002_v56 = vmul.f32 %v1001_v60, %v975_v19 }
 0x401   :  { %978 = vrot.lane.b32.xlu1 %v975_v19, %s4127_s6 }
 0x408   :  { %1062 = vrot.lane.b32.xlu0 %v975_v19, %s4128_s26  ;;  %1041 = vrot.lane.b32.xlu2 %v975_v19, %s4129_s30 }
 0x409   :  { %984 = vrot.lane.b32.xlu1 %v975_v19, %s4130_s27 }
 0x410   :  { %1069 = vrot.lane.b32.xlu0 %v975_v19, %s4131_s28  ;;  %1048 = vrot.lane.b32.xlu2 %v975_v19, %s4132_s29 }
 0x411   :  { %1006 = vrot.lane.b32.xlu1 %v975_v19, %s4133_s5 }
 0x418   :  { %1076 = vrot.lane.b32.xlu0 %v975_v19, %s4134_s1  ;;  %1111 = vrot.lane.b32.xlu2 %v975_v19, %s4135_s25 }
 0x419   :  { %1027 = vrot.lane.b32.xlu1 %v975_v19, %s4136_s24 }
 0x420   :  { %1139 = vrot.lane.b32.xlu0 %v975_v19, %s4137_s0  ;;  %1118 = vrot.lane.b32.xlu2 %v975_v19, %s4138_s22 }
 0x421   :  { %990 = vrot.lane.b32.xlu1 %v975_v19, %s4139_s23 }
 0x428   :  { %1132 = vrot.lane.b32.xlu0 %v975_v19, %s4140_s7  ;;  %1125 = vrot.lane.b32.xlu2 %v975_v19, %s4141_s3  ;;  %s2255_s7 = sld [smem:[#allocation2 + $0x2]] }
 0x429   :  { %1055 = vrot.lane.b32.xlu1 %v975_v19, %s4142_s2 }
 0x431   :  { %996 = vrot.lane.b32.xlu1 %v975_v19, %s4143_s19 }
 0x439   :  { %1020 = vrot.lane.b32.xlu1 %v975_v19, %s4144_s20 }
 0x441   :  { %1083 = vrot.lane.b32.xlu1 %v975_v19, %s4145_s12 }
 0x449   :  { %1090 = vrot.lane.b32.xlu1 %v975_v19, %s4146_s11 }
 0x451   :  { %1097 = vrot.lane.b32.xlu1 %v975_v19, %s4147_s10  ;;  %931 = vadd.xlane.f32.xlu2 %v3346_v52 }
 0x459   :  { %1104 = vrot.lane.b32.xlu1 %v975_v19, %s4148_s9  ;;  %s2257_s9 = sld [smem:[#allocation2 + $0x81]] }
 0x45a   :  { %v1014_v25 = vpop.permute.xlu2 %1013 }
 0x45b   :  { %v1016_v15 = vmul.f32 %v1014_v25, %v1012_v23  ;;  %v1047_v25 = vld [vmem:[#allocation7 + $0x58] sm:$0xff] }
 0x462   :  { %v1042_v29 = vpop.permute.xlu2 %1041 }
 0x469   :  { %357 = vrot.lane.b32.xlu2 %v2860_v43, %s4127_s6 }
 0x46a   :  { %v3357_v32 = vpop.permute.xlu2 %1048 }
 0x471   :  { %402 = vrot.lane.b32.xlu2 %v2860_v43, %s4133_s5 }
 0x472   :  { %v1035_v21 = vpop.permute.xlu0 %1034  ;;  %v1112_v7 = vpop.permute.xlu2 %1111 }
 0x473   :  { %v979_v20 = vpop.permute.xlu1 %978  ;;  %v1037_v61 = vmul.f32 %v1035_v21, %v1033_v37  ;;  %v1114_v51 = vmul.f32 %v1112_v7, %v1110_v59  ;;  %v1147_v59 = vld [vmem:[%s4007_s8] sm:$0xff]  ;;  %s4149_s8 = smov 121  }
 0x474   :  { %v981_v11 = vmul.f32 %v979_v20, %v976_v33 }
 0x476   :  { %v1003_v4 = vadd.f32 %v1002_v56, %v981_v11  ;;  %v1124_v56 = vld [vmem:[#allocation7 + $0xb0] sm:$0xff] }
 0x479   :  { %422 = vrot.lane.b32.xlu2 %v2860_v43, %s4144_s20 }
 0x47a   :  { %v1063_v30 = vpop.permute.xlu0 %1062  ;;  %v1119_v55 = vpop.permute.xlu2 %1118 }
 0x47b   :  { %v985_v9 = vpop.permute.xlu1 %984  ;;  %v1065_v50 = vmul.f32 %v1063_v30, %v1061_v57  ;;  %v1121_v6 = vmul.f32 %v1119_v55, %v1117_v8  ;;  %v1096_v30 = vld [vmem:[#allocation7 + $0x90] sm:$0xff] }
 0x47c   :  { %v987_v42 = vmul.f32 %v985_v9, %v983_v38  ;;  %v995_v9 = vld [vmem:[#allocation7 + $0x18] sm:$0xff] }
 0x482   :  { %v3359_v0 = vpop.permute.xlu0 %1069 }
 0x483   :  { %v1007_v22 = vpop.permute.xlu1 %1006 }
 0x484   :  { %v1009_v39 = vmul.f32 %v1007_v22, %v1005_v36  ;;  %v1044_v22 = vmul.f32 %v1042_v29, %v1040_v18  ;;  %v1075_v29 = vld [vmem:[#allocation7 + $0x78] sm:$0xff] }
 0x486   :  { %v1010_v54 = vadd.f32 %v1009_v39, %v987_v42  ;;  %v1126_v39 = vpop.permute.xlu2 %1125 }
 0x488   :  { %v1038_v48 = vadd.f32 %v1037_v61, %v1010_v54 }
 0x48a   :  { %v1077_v40 = vpop.permute.xlu0 %1076  ;;  %v1066_v17 = vadd.f32 %v1065_v50, %v1038_v48  ;;  %v934_v48 = vmul.f32 %v3346_v52, %v3346_v52 }
 0x48b   :  { %v1028_v24 = vpop.permute.xlu1 %1027  ;;  %v1079_v42 = vmul.f32 %v1077_v40, %v1075_v29  ;;  %v3371_v40 = vpop.f32.mrf.mxu2 }
 0x48c   :  { %v1030_v2 = vmul.f32 %v1028_v24, %v1026_v1 }
 0x48e   :  { %v1031_v5 = vadd.f32 %v1030_v2, %v1003_v4  ;;  %v1128_v4 = vmul.f32 %v1126_v39, %v1124_v56 }
 0x492   :  { %v1140_v14 = vpop.permute.xlu0 %1139 }
 0x493   :  { %v991_v26 = vpop.permute.xlu1 %990  ;;  %v1142_v53 = vmul.f32 %v1140_v14, %v1138_v13 }
 0x494   :  { %v993_v58 = vmul.f32 %v991_v26, %v989_v47  ;;  %v1068_v26 = vld [vmem:[#allocation7 + $0x70] sm:$0xff] }
 0x495   :  { %v1072_v1 = vmul.f32 %v3359_v0, %v1068_v26 }
 0x496   :  { %v1017_v19 = vadd.f32 %v1016_v15, %v993_v58 }
 0x498   :  { %v1045_v33 = vadd.f32 %v1044_v22, %v1017_v19  ;;  %v2519_v19 = vmov 0  }
 0x49a   :  { %v1073_v7 = vadd.f32 %v1072_v1, %v1045_v33 }
 0x49b   :  { %v1056_v28 = vpop.permute.xlu1 %1055 }
 0x49c   :  { %v1058_v27 = vmul.f32 %v1056_v28, %v1054_v12  ;;  %v1051_v12 = vmul.f32 %v3357_v32, %v1047_v25 }
 0x49e   :  { %v1059_v46 = vadd.f32 %v1058_v27, %v1031_v5  ;;  %v1131_v27 = vld [vmem:[#allocation7 + $0xb8] sm:$0xff] }
 0x4a3   :  { %v997_v31 = vpop.permute.xlu1 %996 }
 0x4a4   :  { %v999_v35 = vmul.f32 %v997_v31, %v995_v9  ;;  %v1133_v31 = vpop.permute.xlu0 %1132 }
 0x4a5   :  { %v1135_v0 = vmul.f32 %v1133_v31, %v1131_v27 }
 0x4ab   :  { %v1021_v34 = vpop.permute.xlu1 %1020 }
 0x4ac   :  { %v1023_v24 = vmul.f32 %v1021_v34, %v1019_v10  ;;  %v3398_v10 = vld [vmem:[%s4012_s13] sm:$0xff] }
 0x4ad   :  { %vm360_vm11 = vcmp.gt.f32.partialorder %v3398_v10, 0.5  ;;  %v375_v25 = vperm.slane %v3398_v10, 1 }
 0x4ae   :  { %v1024_v11 = vadd.f32 %v1023_v24, %v999_v35 }
 0x4b0   :  { %v1052_v34 = vadd.f32 %v1051_v12, %v1024_v11 }
 0x4b2   :  { %v1080_v54 = vadd.f32 %v1079_v42, %v1052_v34  ;;  %v385_v42 = vperm.slane %v3398_v10, 2 }
 0x4b3   :  { %v1084_v44 = vpop.permute.xlu1 %1083 }
 0x4b4   :  { %v1086_v45 = vmul.f32 %v1084_v44, %v1082_v41  ;;  %v1103_v41 = vld [vmem:[#allocation7 + $0x98] sm:$0xff] }
 0x4b6   :  { %v1087_v49 = vadd.f32 %v1086_v45, %v1059_v46 }
 0x4b8   :  { %v1115_v16 = vadd.f32 %v1114_v51, %v1087_v49 }
 0x4ba   :  { %v1143_v21 = vadd.f32 %v1142_v53, %v1115_v16 }
 0x4bb   :  { %v1091_v62 = vpop.permute.xlu1 %1090 }
 0x4bc   :  { %v1093_v63 = vmul.f32 %v1091_v62, %v1089_v3 }
 0x4be   :  { %v1094_v20 = vadd.f32 %v1093_v63, %v1066_v17 }
 0x4c0   :  { %v1122_v28 = vadd.f32 %v1121_v6, %v1094_v20  ;;  %v3402_v20 = vsel %vm360_vm11, 1, %v2519_v19 }
 0x4c1   :  { %v371_v24 = vperm.slane %v3402_v20, 1  ;;  %v381_v11 = vperm.slane %v3402_v20, 2  ;;  %v391_v39 = vperm.slane %v3402_v20, 3 }
 0x4c2   :  { %v1144_v60 = vadd.f32 %v1143_v21, %v1122_v28 }
 0x4c3   :  { %v1098_v36 = vpop.permute.xlu1 %1097  ;;  %vm3406_vm13 = vcmp.eq.s32.totalorder %v371_v24, 1  ;;  %vm3425_vm3 = vcmp.eq.s32.totalorder %v381_v11, 1  ;;  %vm3440_vm8 = vcmp.eq.s32.totalorder %v391_v39, 1 }
 0x4c4   :  { %v1100_v38 = vmul.f32 %v1098_v36, %v1096_v30  ;;  %v932_v55 = vpop.xlane.xlu2 %931  ;;  %v362_v30 = vperm.slane %v3402_v20, 0 }
 0x4c5   :  { %v3391_v58 = vmul.f32 0.0078125, %v932_v55 }
 0x4c6   :  { %v1101_v2 = vadd.f32 %v1100_v38, %v1073_v7  ;;  %v365_v38 = vperm.slane %v3398_v10, 0  ;;  %vm3414_vm1 = vcmp.eq.s32.totalorder %v362_v30, 1 }
 0x4c7   :  { %v944_v13 = vmul.f32 %v3391_v58, %v3391_v58 }
 0x4c8   :  { %v1129_v44 = vadd.f32 %v1128_v4, %v1101_v2 }
 0x4ca   :  { %v1145_v61 = vadd.f32 %v1144_v60, %v1129_v44  ;;  %v399_v44 = vperm.slane %v3398_v10, 4 }
 0x4cb   :  { %v1105_v37 = vpop.permute.xlu1 %1104 }
 0x4cc   :  { %v1107_v5 = vmul.f32 %v1105_v37, %v1103_v41  ;;  %v358_v9 = vpop.permute.xlu2 %357 }
 0x4ce   :  { %v1108_v45 = vadd.f32 %v1107_v5, %v1080_v54  ;;  %v364_v54 = vsel %vm3414_vm1, %v358_v9, %v2860_v43  ;;  %v366_v5 = vmul.f32 %v365_v38, %v358_v9 }
 0x4d0   :  { %v1136_v46 = vadd.f32 %v1135_v0, %v1108_v45  ;;  %v405_v0 = vperm.slane %v3402_v20, 5  ;;  %v395_v45 = vperm.slane %v3398_v10, 3 }
 0x4d2   :  { %v1146_v32 = vadd.f32 %v1145_v61, %v1136_v46  ;;  %v1226_v61 = vld [vmem:[%s4016_s17] sm:$0xf]  ;;  %vm3466_vm11 = vcmp.eq.s32.totalorder %v405_v0, 1  ;;  %s2254_s17 = sld [smem:[#allocation2 + $0x1]] }
 0x4d4   :  { %1166 = vmatpush.msra.mxu2 %v1146_v32  ;;  %v403_v27 = vpop.permute.xlu2 %402 }
 0x4d5   :  { %2253 = vmatmul.msk.f32.vlgmr.msra.gmra.mxu2 %vm4092_vm10, %v1147_v59  ;;  %v407_v24 = vsel %vm3466_vm11, %v403_v27, %v2860_v43 }
 0x558   :  { %v3373_v57 = vpop.f32.mrf.mxu2 }
 0x559   :  { %1171 = vadd.xlane.f32.xlu1 %v3373_v57  ;;  %v1173_v47 = vmul.f32 %v3373_v57, %v3373_v57 }
 0x55b   :  { %1174 = vadd.xlane.f32.xlu0 %v1173_v47  ;;  %v950_v47 = vsub.f32 %v3346_v52, %v3391_v58  ;;  %v354_v52 = vld [vmem:[%s4012_s13 + $0x8] sm:$0x1] }
 0x561   :  { %937 = vadd.xlane.f32.xlu1 %v934_v48 }
 0x56f   :  { %367 = vrot.lane.b32.xlu0 %v2860_v43, %s4130_s27 }
 0x577   :  { %388 = vrot.lane.b32.xlu0 %v2860_v43, %s4143_s19 }
 0x57a   :  { %378 = vrot.lane.b32.xlu1 %v2860_v43, %s4139_s23 }
 0x57f   :  { %412 = vrot.lane.b32.xlu0 %v2860_v43, %s4149_s8 }
 0x582   :  { %432 = vrot.lane.b32.xlu1 %v2860_v43, %s4136_s24 }
 0x5ac   :  { %309 = vadd.xlane.f32.xlu1 %v3371_v40 }
 0x5cc   :  { %v1172_v49 = vpop.xlane.xlu1 %1171 }
 0x5cd   :  { %v1176_v23 = vmul.f32 0.0078125, %v1172_v49 }
 0x5ce   :  { %v1175_v3 = vpop.xlane.xlu0 %1174 }
 0x5cf   :  { %v1178_v51 = vmul.f32 %v1176_v23, %v1176_v23  ;;  %v1177_v50 = vmul.f32 0.0078125, %v1175_v3  ;;  %v1181_v12 = vsub.f32 %v3373_v57, %v1176_v23  ;;  %v409_v3 = vperm.slane %v3398_v10, 5 }
 0x5d1   :  { %v1179_v8 = vsub.f32 %v1177_v50, %v1178_v51  ;;  %v415_v50 = vperm.slane %v3402_v20, 6 }
 0x5d3   :  { %v1180_v14 = vmax.f32 %v1179_v8, 0.0 }
 0x5d4   :  { %v938_v62 = vpop.xlane.xlu1 %937 }
 0x5d5   :  { %v1182_v15 = vadd.f32 1e-05, %v1180_v14  ;;  %v942_v16 = vmul.f32 0.0078125, %v938_v62  ;;  %v1251_v62 = vld [vmem:[%s4017_s18] sm:$0xf]  ;;  %s2258_s18 = sld [smem:[#allocation2 + $0x82]] }
 0x5d7   :  { %2404 = vrsqrt.f32 %v1182_v15  ;;  %v946_v17 = vsub.f32 %v942_v16, %v944_v13  ;;  %vm1189_vm14 = vweird.f32 %v1182_v15 }
 0x5d9   :  { %v948_v63 = vmax.f32 %v946_v17, 0.0 }
 0x5db   :  { %v952_v18 = vadd.f32 1e-05, %v948_v63  ;;  %v419_v63 = vperm.slane %v3398_v10, 6 }
 0x5dd   :  { %v2405_v6 = vpop.eup %2404  ;;  %2406 = vrsqrt.f32 %v952_v18  ;;  %vm969_vm7 = vweird.f32 %v952_v18 }
 0x5de   :  { %v1184_v53 = vmul.f32 %v2405_v6, %v1182_v15  ;;  %vm1190_vm12 = vweird.f32 %v2405_v6 }
 0x5df   :  { %vm1191_vm15 = vmor %vm1189_vm14, %vm1190_vm12  ;;  %vm435_vm12 = vcmp.gt.f32.partialorder %v354_v52, 0.5  ;;  %vm3483_vm14 = vcmp.eq.s32.totalorder %v415_v50, 1 }
 0x5e0   :  { %v1185_v22 = vmul.f32 %v2405_v6, %v1184_v53  ;;  %v429_v53 = vperm.slane %v3398_v10, 7 }
 0x5e1   :  { %v368_v21 = vpop.permute.xlu0 %367 }
 0x5e2   :  { %v1186_v28 = vmul.f32 0.5, %v1185_v22  ;;  %v373_v34 = vsel %vm3406_vm13, %v368_v21, %v2860_v43  ;;  %v376_v2 = vmul.f32 %v375_v25, %v368_v21  ;;  %v410_v21 = vmul.f32 %v409_v3, %v403_v27 }
 0x5e3   :  { %v2407_v26 = vpop.eup %2406  ;;  %v374_v46 = vmax.f32 %v364_v54, %v373_v34 }
 0x5e4   :  { %v964_v33 = vmul.f32 %v2407_v26, %v952_v18  ;;  %v1187_v35 = vsub.f32 1.5, %v1186_v28  ;;  %vm970_vm2 = vweird.f32 %v2407_v26  ;;  %v377_v48 = vadd.f32 %v376_v2, %v366_v5  ;;  %v2399_v2 = vld [vmem:[%s4013_s14] ss:$0 sm:$0xff]  ;;  %s3522_s14 = sld [smem:[#allocation2 + $0x3]] }
 0x5e5   :  { %vm971_vm9 = vmor %vm969_vm7, %vm970_vm2  ;;  %v400_v18 = vmul.f32 %v399_v44, %v2860_v43 }
 0x5e6   :  { %v965_v36 = vmul.f32 %v2407_v26, %v964_v33  ;;  %v1188_v1 = vmul.f32 %v2405_v6, %v1187_v35  ;;  %v436_v33 = vsel %vm435_vm12, 1, %v2519_v19 }
 0x5e7   :  { %v437_v34 = vperm.slane %v436_v33, 0 }
 0x5e8   :  { %v966_v56 = vmul.f32 0.5, %v965_v36  ;;  %v1192_v29 = vsel %vm1191_vm15, %v2405_v6, %v1188_v1  ;;  %v425_v6 = vperm.slane %v3402_v20, 7  ;;  %v423_v20 = vpop.permute.xlu2 %422  ;;  %v2398_v1 = vld [vmem:[%s4012_s13 + $0x8] ss:$0 sm:$0xff]  ;;  %s4175_s13 = smov 4  }
 0x5e9   :  { %v389_v41 = vpop.permute.xlu0 %388  ;;  %v1193_v4 = vmul.f32 %v1192_v29, %v1181_v12  ;;  %v430_v19 = vmul.f32 %v429_v53, %v423_v20  ;;  %vm3508_vm2 = vcmp.eq.s32.totalorder %v437_v34, 1  ;;  %v1212_v34 = vstv %s2258_s18  ;;  %s4174_s18 = smov 30  }
 0x5ea   :  { %v967_v31 = vsub.f32 1.5, %v966_v56  ;;  %v393_v58 = vsel %vm3440_vm8, %v389_v41, %v2860_v43  ;;  %v396_v8 = vmul.f32 %v395_v45, %v389_v41  ;;  %vm3493_vm15 = vcmp.eq.s32.totalorder %v425_v6, 1 }
 0x5eb   :  { %1245 = vmatpush.msrb.mxu3 %v1193_v4  ;;  %v427_v27 = vsel %vm3493_vm15, %v423_v20, %v2860_v43 }
 0x5ec   :  { %v379_v59 = vpop.permute.xlu1 %378  ;;  %v968_v57 = vmul.f32 %v2407_v26, %v967_v31  ;;  %2260 = vmatmul.msk.f32.vlgmr.msrb.gmra.mxu3 %vm4092_vm10, %v1226_v61 }
 0x5ed   :  { %v383_v49 = vsel %vm3425_vm3, %v379_v59, %v2860_v43  ;;  %v386_v23 = vmul.f32 %v385_v42, %v379_v59 }
 0x5ee   :  { %v384_v51 = vmax.f32 %v374_v46, %v383_v49  ;;  %v972_v55 = vsel %vm971_vm9, %v2407_v26, %v968_v57 }
 0x5ef   :  { %v387_v13 = vadd.f32 %v386_v23, %v377_v48  ;;  %v974_v14 = vmul.f32 %v972_v55, %v950_v47  ;;  %v312_v23 = vmul.f32 %v3371_v40, %v3371_v40 }
 0x5f0   :  { %v394_v16 = vmax.f32 %v384_v51, %v393_v58 }
 0x5f1   :  { %v397_v17 = vadd.f32 %v396_v8, %v387_v13  ;;  %1270 = vmatpush.msrb.mxu2 %v974_v14  ;;  %v413_v9 = vpop.permute.xlu0 %412 }
 0x5f2   :  { %v398_v22 = vmax.f32 %v394_v16, %v2860_v43  ;;  %2261 = vmatmul.msk.f32.vlgmr.msrb.gmra.mxu2 %vm4092_vm10, %v1251_v62  ;;  %v420_v36 = vmul.f32 %v419_v63, %v413_v9  ;;  %v417_v12 = vsel %vm3483_vm14, %v413_v9, %v2860_v43 }
 0x5f3   :  { %v401_v26 = vadd.f32 %v400_v18, %v397_v17 }
 0x5f4   :  { %v408_v30 = vmax.f32 %v398_v22, %v407_v24  ;;  %v433_v56 = vpop.permute.xlu1 %432 }
 0x5f5   :  { %v411_v35 = vadd.f32 %v410_v21, %v401_v26  ;;  %v442_v4 = vmul.f32 %v2398_v1, %v433_v56  ;;  %v439_v61 = vsel %vm3508_vm2, %v433_v56, %v2860_v43 }
 0x5f6   :  { %v418_v39 = vmax.f32 %v408_v30, %v417_v12 }
 0x5f7   :  { %v421_v29 = vadd.f32 %v420_v36, %v411_v35 }
 0x5f8   :  { %v428_v31 = vmax.f32 %v418_v39, %v427_v27  ;;  %v1209_v27 = vstv %s2257_s9  ;;  %s4171_s9 = smov 118  }
 0x5f9   :  { %v431_v41 = vadd.f32 %v430_v19, %v421_v29  ;;  %v1198_v29 = vstv %s2255_s7  ;;  %s3552_s7 = sld [smem:[#allocation5]] }
 0x5fa   :  { %v440_v46 = vmax.f32 %v428_v31, %v439_v61 }
 0x5fb   :  { %v443_v5 = vadd.f32 %v442_v4, %v431_v41  ;;  %v1195_v4 = vstv %s2254_s17  ;;  %s4170_s17 = smov 36  }
 0x5fd   :  { %v447_v0 = vmul.f32 %v2399_v2, %v443_v5 }
 0x5ff   :  { %v449_v59 = vrot.slane %v447_v0, 6  ;;  %4166 = sst [smem:[#allocation11_spill]] %s3552_s7 }
 0x601   :  { %v452_v57 = vsel %vm451_vm4, %v440_v46, %v449_v59  ;;  %v1219_v46 = vstv %s3520_s4  ;;  %s4172_s4 = smov 111  }
 0x602   :  { %v454_v47 = vsel %vm4094_vm5, %v452_v57, 0.0  ;;  %v457_v48 = vmul.f32 %v452_v57, %v452_v57 }
 0x603   :  { %455 = vadd.xlane.f32.xlu0 %v454_v47 }
 0x604   :  { %v458_v49 = vsel %vm4094_vm5, %v457_v48, 0.0 }
 0x605   :  { %459 = vadd.xlane.f32.xlu2 %v458_v49 }
 0x60b   :  { %315 = vadd.xlane.f32.xlu0 %v312_v23  ;;  %v1205_v23 = vstv %s3522_s14  ;;  %s4169_s14 = smov 18  }
 0x61f   :  { %v310_v55 = vpop.xlane.xlu1 %309 }
 0x620   :  { %v318_v13 = vmul.f32 0.0078125, %v310_v55 }
 0x622   :  { %v322_v17 = vmul.f32 %v318_v13, %v318_v13  ;;  %v328_v0 = vsub.f32 %v3371_v40, %v318_v13  ;;  %v3531_v40 = vld [vmem:[%s4014_s15] sm:$0xff] }
 0x676   :  { %v456_v51 = vpop.xlane.xlu0 %455 }
 0x677   :  { %v461_v50 = vmul.f32 0.0078125, %v456_v51 }
 0x678   :  { %v460_v52 = vpop.xlane.xlu2 %459 }
 0x679   :  { %v463_v58 = vmul.f32 %v461_v50, %v461_v50  ;;  %v462_v8 = vmul.f32 0.0078125, %v460_v52  ;;  %v466_v56 = vsub.f32 %v452_v57, %v461_v50  ;;  %v1220_v52 = vmul.f32 %v1219_v46, %v2860_v43 }
 0x67b   :  { %v464_v14 = vsub.f32 %v462_v8, %v463_v58  ;;  %v1206_v58 = vmul.f32 %v1205_v23, %v2860_v43 }
 0x67d   :  { %v465_v62 = vmax.f32 %v464_v14, 0.0 }
 0x67e   :  { %v316_v16 = vpop.xlane.xlu0 %315 }
 0x67f   :  { %v467_v18 = vadd.f32 1e-05, %v465_v62  ;;  %v320_v6 = vmul.f32 0.0078125, %v316_v16  ;;  %v1247_v62 = vpop.f32.mrf.mxu3 }
 0x681   :  { %2408 = vrsqrt.f32 %v467_v18  ;;  %v324_v9 = vsub.f32 %v320_v6, %v322_v17  ;;  %vm474_vm9 = vweird.f32 %v467_v18  ;;  %v1272_v17 = vpop.f32.mrf.mxu2 }
 0x683   :  { %v326_v22 = vmax.f32 %v324_v9, 0.0  ;;  %v1310_v9 = vld [vmem:[%s4015_s16] sm:$0xff]  ;;  %s4178_s16 = smov 124  }
 0x685   :  { %v330_v24 = vadd.f32 1e-05, %v326_v22 }
 0x687   :  { %v2409_v21 = vpop.eup %2408  ;;  %2410 = vrsqrt.f32 %v330_v24  ;;  %vm347_vm6 = vweird.f32 %v330_v24 }
 0x688   :  { %v469_v26 = vmul.f32 %v2409_v21, %v467_v18  ;;  %vm475_vm7 = vweird.f32 %v2409_v21 }
 0x689   :  { %vm476_vm12 = vmor %vm474_vm9, %vm475_vm7  ;;  %vm4190_vm7 = vcmask 64512  }
 0x68a   :  { %v470_v20 = vmul.f32 %v2409_v21, %v469_v26  ;;  %v1346_v26 = vstv %s3552_s7  ;;  %s4177_s7 = smov 28  }
 0x68c   :  { %v471_v30 = vmul.f32 0.5, %v470_v20 }
 0x68d   :  { %v2411_v33 = vpop.eup %2410 }
 0x68e   :  { %v472_v35 = vsub.f32 1.5, %v471_v30  ;;  %v342_v36 = vmul.f32 %v2411_v33, %v330_v24  ;;  %vm348_vm10 = vweird.f32 %v2411_v33 }
 0x68f   :  { %vm349_vm5 = vmor %vm347_vm6, %vm348_vm10  ;;  %vm4167_vm6 = vcmask 1043456   ;;  %vm4168_vm10 = vcmask 1045504  }
 0x690   :  { %v473_v1 = vmul.f32 %v2409_v21, %v472_v35  ;;  %v343_v12 = vmul.f32 %v2411_v33, %v342_v36 }
 0x692   :  { %v477_v19 = vsel %vm476_vm12, %v2409_v21, %v473_v1  ;;  %v344_v39 = vmul.f32 0.5, %v343_v12 }
 0x693   :  { %v478_v2 = vmul.f32 %v477_v19, %v466_v56 }
 0x694   :  { %v345_v41 = vsub.f32 1.5, %v344_v39 }
 0x695   :  { %v1199_v31 = vmul.f32 %v1198_v29, %v478_v2  ;;  %v1213_v5 = vmul.f32 %v1212_v34, %v478_v2  ;;  %v1196_v59 = vmul.f32 %v1195_v4, %v478_v2  ;;  %v1210_v47 = vmul.f32 %v1209_v27, %v478_v2 }
 0x696   :  { %v346_v61 = vmul.f32 %v2411_v33, %v345_v41 }
 0x697   :  { %v1201_v57 = vrot.slane %v1199_v31, 2  ;;  %v1215_v48 = vrot.slane %v1213_v5, 2 }
 0x698   :  { %v350_v49 = vsel %vm349_vm5, %v2411_v33, %v346_v61  ;;  %vm646_vm5 = vcmask 15360  }
 0x699   :  { %v352_v51 = vmul.f32 %v350_v49, %v328_v0  ;;  %v1203_v50 = vadd.f32 %v1201_v57, %v1196_v59  ;;  %v1217_v55 = vadd.f32 %v1215_v48, %v1210_v47 }
 0x69b   :  { %1301 = vmatpush.msra.mxu3 %v352_v51  ;;  %v1221_v8 = vadd.f32 %v1220_v52, %v1217_v55  ;;  %v1207_v13 = vadd.f32 %v1206_v58, %v1203_v50 }
 0x69d   :  { %1302 = vmatpush.msra.mxu3 %v2860_v43  ;;  %v1223_v14 = vrot.slane %v1221_v8, 6  ;;  %v3544_v43 = vld [vmem:[%s4014_s15 + $0x8] sm:$0xff]  ;;  %s4173_s15 = smov 34  }
 0x69e   :  { %2264 = vmatmul.msk.f32.vlgmr.msra.gmra.mxu3 %vm277_vm0, %v3531_v40 }
 0x69f   :  { %v1225_v16 = vsel %vm451_vm4, %v1207_v13, %v1223_v14 }
 0x6a0   :  { %v1250_v18 = vadd.f32 %v1247_v62, %v1225_v16 }
 0x6a2   :  { %v1275_v6 = vadd.f32 %v1272_v17, %v1250_v18 }
 0x6a4   :  { %v2073_v22 = vrot.slane %v1275_v6, 2  ;;  %2266 = vmatpush.msk.msra.mxu0 %vm451_vm4, %v1275_v6 }
 0x6a5   :  { %2267 = vmatmul.msk.f32.vlgmr.msra.gmra.mxu0 %vm646_vm5, %v1310_v9 }
 0x6a6   :  { %2265 = vmatmul.msk.f32.gmra.mxu3 %vm277_vm0, %v3544_v43 }
 0x6a7   :  { %2343 = vmatpush.msk.msrb.mxu3 %vm451_vm4, %v2073_v22 }
 0x6ae   :  { %2344 = vmatmul.msk.f32.vlgmr.msrb.gmra.mxu3 %vm646_vm5, %v1310_v9 }
 0x721   :  { %v3554_v24 = vpop.f32.mrf.mxu3 }
 0x722   :  { %v1338_v21 = vpop.f32.mrf.mxu0 }
 0x723   :  { %v1344_v20 = vadd.f32 %v1338_v21, %v3554_v24 }
 0x725   :  { %v3560_v30 = vmul.f32 %v1346_v26, %v1344_v20 }
 0x727   :  { %v1437_v33 = vmax.f32 %v3560_v30, 0.0  ;;  %2158 = vst [vmem:[%s4020_s21] sm:$0xff] %v3560_v30  ;;  %s4176_s21 = smov 32   ;;  %v1377_v7 = vmul.f32 %v3560_v30, %v399_v44 }
 0x729   :  { %v1439_v35 = vrot.slane %v1437_v33, 6  ;;  %v1441_v36 = vrot.slane %v1437_v33, 4  ;;  %v1443_v1 = vrot.slane %v1437_v33, 2 }
 0x72b   :  { %v1445_v12 = vsel %vm451_vm4, %v1437_v33, %v1439_v35 }
 0x72c   :  { %v1446_v56 = vsel %vm4167_vm6, %v1445_v12, %v1441_v36 }
 0x72d   :  { %v1447_v19 = vsel %vm4168_vm10, %v1446_v56, %v1443_v1  ;;  %vm807_vm10 = vcmask 31744  }
 0x72e   :  { %1478 = vrot.lane.b32.xlu0 %v1447_v19, %s4133_s5  ;;  %1456 = vrot.lane.b32.xlu1 %v1447_v19, %s4130_s27 }
 0x72f   :  { %1450 = vrot.lane.b32.xlu2 %v1447_v19, %s4127_s6 }
 0x736   :  { %1462 = vrot.lane.b32.xlu0 %v1447_v19, %s4139_s23  ;;  %1485 = vrot.lane.b32.xlu1 %v1447_v19, %s4149_s8 }
 0x737   :  { %1499 = vrot.lane.b32.xlu2 %v1447_v19, %s4136_s24 }
 0x73e   :  { %1527 = vrot.lane.b32.xlu0 %v1447_v19, %s4142_s2  ;;  %1468 = vrot.lane.b32.xlu1 %v1447_v19, %s4143_s19 }
 0x73f   :  { %1506 = vrot.lane.b32.xlu2 %v1447_v19, %s4169_s14 }
 0x746   :  { %1513 = vrot.lane.b32.xlu0 %v1447_v19, %s4129_s30  ;;  %1534 = vrot.lane.b32.xlu1 %v1447_v19, %s4128_s26 }
 0x747   :  { %1492 = vrot.lane.b32.xlu2 %v1447_v19, %s4144_s20 }
 0x74e   :  { %1520 = vrot.lane.b32.xlu0 %v1447_v19, %s4132_s29  ;;  %1541 = vrot.lane.b32.xlu1 %v1447_v19, %s4131_s28 }
 0x74f   :  { %1555 = vrot.lane.b32.xlu2 %v1447_v19, %s4145_s12  ;;  %s4183_s12 = smov 12  }
 0x756   :  { %1583 = vrot.lane.b32.xlu0 %v1447_v19, %s4135_s25  ;;  %1548 = vrot.lane.b32.xlu1 %v1447_v19, %s4134_s1 }
 0x757   :  { %1562 = vrot.lane.b32.xlu2 %v1447_v19, %s4146_s11  ;;  %s4180_s11 = smov 20  }
 0x75e   :  { %1590 = vrot.lane.b32.xlu0 %v1447_v19, %s4138_s22  ;;  %1611 = vrot.lane.b32.xlu1 %v1447_v19, %s4137_s0 }
 0x75f   :  { %1569 = vrot.lane.b32.xlu2 %v1447_v19, %s4147_s10  ;;  %s4179_s10 = smov 100  }
 0x766   :  { %1597 = vrot.lane.b32.xlu0 %v1447_v19, %s4141_s3  ;;  %1618 = vrot.lane.b32.xlu1 %v1447_v19, %s4170_s17  ;;  %s4181_s17 = smov 116  }
 0x767   :  { %1576 = vrot.lane.b32.xlu2 %v1447_v19, %s4171_s9  ;;  %s4182_s9 = smov 98  }
 0x76e   :  { %1604 = vrot.lane.b32.xlu0 %v1447_v19, %s4172_s4  ;;  %1625 = vrot.lane.b32.xlu1 %v1447_v19, %s4173_s15  ;;  %s2337_s15 = sld [smem:[#allocation2 + $0x102]] }
 0x76f   :  { %1639 = vrot.lane.b32.xlu2 %v1447_v19, %s4174_s18  ;;  %s2336_s18 = sld [smem:[#allocation2 + $0x101]] }
 0x776   :  { %1667 = vrot.lane.b32.xlu0 %v1447_v19, %s4175_s13  ;;  %1632 = vrot.lane.b32.xlu1 %v1447_v19, %s4176_s21  ;;  %s4184_s13 = sld [smem:[#allocation18_spill]] }
 0x777   :  { %1646 = vrot.lane.b32.xlu2 %v1447_v19, %s4177_s7  ;;  %s2338_s21 = sld [smem:[#allocation2 + $0x103]] }
 0x778   :  { %s2263_s7 = sld [smem:[#allocation5 + $0x2]] }
 0x77c   :  { %v1448_v29 = vld [vmem:[%s4184_s13] sm:$0xff]  ;;  %v2273_v46 = vld [vmem:[%s4184_s13 + $0x28] sm:$0xff]  ;;  %v2270_v58 = vld [vmem:[%s4184_s13 + $0x10] sm:$0xff] }
 0x77d   :  { %v2272_v34 = vld [vmem:[%s4184_s13 + $0x20] sm:$0xff]  ;;  %v2269_v59 = vld [vmem:[%s4184_s13 + $0x8] sm:$0xff]  ;;  %v2274_v8 = vld [vmem:[%s4184_s13 + $0x30] sm:$0xff] }
 0x77e   :  { %1674 = vrot.lane.b32.xlu0 %v1447_v19, %s4178_s16  ;;  %1695 = vrot.lane.b32.xlu1 %v1447_v19, %s4179_s10  ;;  %s4185_s16 = smov 108   ;;  %s4186_s10 = smov 96   ;;  %v2276_v41 = vld [vmem:[%s4184_s13 + $0x40] sm:$0xff]  ;;  %v1474_v4 = vmul.f32 %v2272_v34, %v1447_v19  ;;  %v2277_v57 = vld [vmem:[%s4184_s13 + $0x48] sm:$0xff] }
 0x77f   :  { %1653 = vrot.lane.b32.xlu2 %v1447_v19, %s4180_s11  ;;  %s4187_s11 = smov 92   ;;  %v2275_v6 = vld [vmem:[%s4184_s13 + $0x38] sm:$0xff]  ;;  %v2280_v9 = vld [vmem:[%s4184_s13 + $0x60] sm:$0xff] }
 0x780   :  { %v2271_v22 = vld [vmem:[%s4184_s13 + $0x18] sm:$0xff] }
 0x786   :  { %1681 = vrot.lane.b32.xlu0 %v1447_v19, %s4181_s17  ;;  %1702 = vrot.lane.b32.xlu1 %v1447_v19, %s4182_s9  ;;  %s4189_s17 = sld [smem:[#allocation19_spill]] }
 0x787   :  { %1660 = vrot.lane.b32.xlu2 %v1447_v19, %s4183_s12  ;;  %s4188_s12 = smov 94  }
 0x789   :  { %v1451_v39 = vpop.permute.xlu2 %1450 }
 0x78a   :  { %v1453_v2 = vmul.f32 %v1451_v39, %v1448_v29 }
 0x78c   :  { %v1475_v31 = vadd.f32 %v1474_v4, %v1453_v2 }
 0x78e   :  { %1688 = vrot.lane.b32.xlu0 %v1447_v19, %s4185_s16  ;;  %1709 = vrot.lane.b32.xlu1 %v1447_v19, %s4186_s10 }
 0x78f   :  { %1723 = vrot.lane.b32.xlu2 %v1447_v19, %s4187_s11  ;;  %s2262_s11 = sld [smem:[#allocation5 + $0x1]] }
 0x791   :  { %v1500_v27 = vpop.permute.xlu2 %1499 }
 0x792   :  { %v1502_v5 = vmul.f32 %v2276_v41, %v1500_v27 }
 0x794   :  { %v1503_v0 = vadd.f32 %v1502_v5, %v1475_v31 }
 0x797   :  { %1716 = vrot.lane.b32.xlu2 %v1447_v19, %s4188_s12 }
 0x799   :  { %v1507_v61 = vpop.permute.xlu2 %1506 }
 0x79a   :  { %v1509_v50 = vmul.f32 %v2277_v57, %v1507_v61 }
 0x7a0   :  { %v1479_v47 = vpop.permute.xlu0 %1478  ;;  %v1457_v48 = vpop.permute.xlu1 %1456 }
 0x7a1   :  { %v1481_v49 = vmul.f32 %v2273_v46, %v1479_v47  ;;  %v1459_v23 = vmul.f32 %v2269_v59, %v1457_v48  ;;  %v1493_v51 = vpop.permute.xlu2 %1492 }
 0x7a2   :  { %v1495_v33 = vmul.f32 %v2275_v6, %v1493_v51  ;;  %v2288_v51 = vld [vmem:[%s4184_s13 + $0xa0] sm:$0xff]  ;;  %v2289_v6 = vld [vmem:[%s4184_s13 + $0xa8] sm:$0xff] }
 0x7a3   :  { %v1482_v55 = vadd.f32 %v1481_v49, %v1459_v23  ;;  %v2281_v49 = vld [vmem:[%s4184_s13 + $0x68] sm:$0xff]  ;;  %v2284_v23 = vld [vmem:[%s4184_s13 + $0x80] sm:$0xff] }
 0x7a5   :  { %v1510_v52 = vadd.f32 %v1509_v50, %v1482_v55  ;;  %v2292_v55 = vld [vmem:[%s4184_s13 + $0xc0] sm:$0xff] }
 0x7a8   :  { %v1463_v13 = vpop.permute.xlu0 %1462  ;;  %v1486_v14 = vpop.permute.xlu1 %1485 }
 0x7a9   :  { %v1465_v62 = vmul.f32 %v2270_v58, %v1463_v13  ;;  %v1488_v16 = vmul.f32 %v2274_v8, %v1486_v14  ;;  %v1556_v17 = vpop.permute.xlu2 %1555  ;;  %v2278_v14 = vld [vmem:[%s4184_s13 + $0x50] sm:$0xff] }
 0x7aa   :  { %v1558_v13 = vmul.f32 %v2284_v23, %v1556_v17  ;;  %v2282_v17 = vld [vmem:[%s4184_s13 + $0x70] sm:$0xff] }
 0x7ab   :  { %v1489_v18 = vadd.f32 %v1488_v16, %v1465_v62  ;;  %v2285_v16 = vld [vmem:[%s4184_s13 + $0x88] sm:$0xff] }
 0x7b0   :  { %v1528_v21 = vpop.permute.xlu0 %1527  ;;  %v1469_v20 = vpop.permute.xlu1 %1468 }
 0x7b1   :  { %v1530_v35 = vmul.f32 %v2280_v9, %v1528_v21  ;;  %v1471_v36 = vmul.f32 %v2271_v22, %v1469_v20  ;;  %v1563_v1 = vpop.permute.xlu2 %1562  ;;  %v2279_v22 = vld [vmem:[%s4184_s13 + $0x58] sm:$0xff] }
 0x7b3   :  { %v1531_v12 = vadd.f32 %v1530_v35, %v1503_v0  ;;  %v1496_v56 = vadd.f32 %v1495_v33, %v1471_v36  ;;  %v2293_v36 = vld [vmem:[%s4184_s13 + $0xc8] sm:$0xff] }
 0x7b5   :  { %v1559_v21 = vadd.f32 %v1558_v13, %v1531_v12  ;;  %v2296_v12 = vld [vmem:[%s4184_s13 + $0xe0] sm:$0xff] }
 0x7b8   :  { %v1514_v19 = vpop.permute.xlu0 %1513  ;;  %v1535_v39 = vpop.permute.xlu1 %1534 }
 0x7b9   :  { %v3643_v29 = vpop.permute.xlu2 %1569  ;;  %v1537_v50 = vmul.f32 %v2281_v49, %v1535_v39  ;;  %v1516_v35 = vmul.f32 %v2278_v14, %v1514_v19  ;;  %v1565_v39 = vmul.f32 %v2285_v16, %v1563_v1  ;;  %v2300_v19 = vld [vmem:[%s4184_s13 + $0x100] sm:$0xff] }
 0x7bb   :  { %v1538_v9 = vadd.f32 %v1537_v50, %v1510_v52  ;;  %v2283_v52 = vld [vmem:[%s4184_s13 + $0x78] sm:$0xff]  ;;  %v1517_v1 = vadd.f32 %v1516_v35, %v1489_v18 }
 0x7c0   :  { %v1521_v34 = vpop.permute.xlu0 %1520  ;;  %v1542_v2 = vpop.permute.xlu1 %1541 }
 0x7c1   :  { %v3645_v41 = vpop.permute.xlu2 %1576  ;;  %v1523_v23 = vmul.f32 %v2279_v22, %v1521_v34  ;;  %v2301_v22 = vld [vmem:[%s4184_s13 + $0x108] sm:$0xff] }
 0x7c8   :  { %v1584_v4 = vpop.permute.xlu0 %1583  ;;  %v1549_v27 = vpop.permute.xlu1 %1548 }
 0x7c9   :  { %v1640_v31 = vpop.permute.xlu2 %1639  ;;  %v1586_v62 = vmul.f32 %v2288_v51, %v1584_v4  ;;  %v1544_v51 = vmul.f32 %v2282_v17, %v1542_v2  ;;  %v1551_v13 = vmul.f32 %v2283_v52, %v1549_v27  ;;  %v2286_v2 = vld [vmem:[%s4184_s13 + $0x90] sm:$0xff]  ;;  %v2297_v27 = vld [vmem:[%s4184_s13 + $0xe8] sm:$0xff] }
 0x7ca   :  { %v1572_v35 = vmul.f32 %v2286_v2, %v3643_v29  ;;  %v2295_v29 = vld [vmem:[%s4184_s13 + $0xd8] sm:$0xff] }
 0x7cb   :  { %v1587_v4 = vadd.f32 %v1586_v62, %v1559_v21  ;;  %v1642_v62 = vmul.f32 %v2296_v12, %v1640_v31  ;;  %v1545_v18 = vadd.f32 %v1544_v51, %v1517_v1  ;;  %v2287_v31 = vld [vmem:[%s4184_s13 + $0x98] sm:$0xff] }
 0x7cc   :  { %v1579_v51 = vmul.f32 %v2287_v31, %v3645_v41 }
 0x7cd   :  { %v1573_v12 = vadd.f32 %v1572_v35, %v1545_v18  ;;  %v2299_v18 = vld [vmem:[%s4184_s13 + $0xf8] sm:$0xff] }
 0x7d0   :  { %v1591_v5 = vpop.permute.xlu0 %1590  ;;  %v1612_v61 = vpop.permute.xlu1 %1611 }
 0x7d1   :  { %v1647_v46 = vpop.permute.xlu2 %1646  ;;  %v1614_v20 = vmul.f32 %v2292_v55, %v1612_v61  ;;  %v1593_v49 = vmul.f32 %v2289_v6, %v1591_v5  ;;  %v1566_v61 = vadd.f32 %v1565_v39, %v1538_v9  ;;  %v2304_v5 = vld [vmem:[%s4184_s13 + $0x120] sm:$0xff]  ;;  %v2290_v6 = vld [vmem:[%s4184_s13 + $0xb0] sm:$0xff] }
 0x7d2   :  { %v2294_v39 = vld [vmem:[%s4184_s13 + $0xd0] sm:$0xff] }
 0x7d3   :  { %v1615_v50 = vadd.f32 %v1614_v20, %v1587_v4  ;;  %v1594_v16 = vadd.f32 %v1593_v49, %v1566_v61  ;;  %v1649_v4 = vmul.f32 %v2297_v27, %v1647_v46 }
 0x7d5   :  { %v1643_v21 = vadd.f32 %v1642_v62, %v1615_v50 }
 0x7d8   :  { %v1598_v59 = vpop.permute.xlu0 %1597  ;;  %v1619_v57 = vpop.permute.xlu1 %1618 }
 0x7d9   :  { %v3651_v48 = vpop.permute.xlu2 %1653  ;;  %v1621_v55 = vmul.f32 %v2293_v36, %v1619_v57  ;;  %v1524_v57 = vadd.f32 %v1523_v23, %v1496_v56  ;;  %v1600_v56 = vmul.f32 %v2290_v6, %v1598_v59  ;;  %v2291_v36 = vld [vmem:[%s4184_s13 + $0xb8] sm:$0xff]  ;;  %v2308_v59 = vld [vmem:[%s4184_s13 + $0x140] sm:$0xff] }
 0x7db   :  { %v1622_v17 = vadd.f32 %v1621_v55, %v1594_v16  ;;  %v1601_v41 = vadd.f32 %v1600_v56, %v1573_v12  ;;  %v2298_v16 = vld [vmem:[%s4184_s13 + $0xf0] sm:$0xff]  ;;  %v2307_v56 = vld [vmem:[%s4184_s13 + $0x138] sm:$0xff] }
 0x7dd   :  { %v1650_v50 = vadd.f32 %v1649_v4, %v1622_v17  ;;  %v2303_v17 = vld [vmem:[%s4184_s13 + $0x118] sm:$0xff] }
 0x7e0   :  { %v3647_v47 = vpop.permute.xlu0 %1604  ;;  %v3649_v0 = vpop.permute.xlu1 %1625 }
 0x7e1   :  { %v3682_v33 = vpop.permute.xlu2 %1660  ;;  %v1607_v46 = vmul.f32 %v2291_v36, %v3647_v47  ;;  %v1628_v61 = vmul.f32 %v2294_v39, %v3649_v0  ;;  %v2302_v47 = vld [vmem:[%s4184_s13 + $0x110] sm:$0xff] }
 0x7e3   :  { %v1629_v6 = vadd.f32 %v1628_v61, %v1601_v41 }
 0x7e8   :  { %v1668_v58 = vpop.permute.xlu0 %1667  ;;  %v3665_v8 = vpop.permute.xlu1 %1632 }
 0x7e9   :  { %v1670_v9 = vmul.f32 %v2300_v19, %v1668_v58  ;;  %v1552_v58 = vadd.f32 %v1551_v13, %v1524_v57  ;;  %v1724_v49 = vpop.permute.xlu2 %1723  ;;  %v2305_v19 = vld [vmem:[%s4184_s13 + $0x128] sm:$0xff] }
 0x7eb   :  { %v1671_v52 = vadd.f32 %v1670_v9, %v1643_v21  ;;  %v1580_v1 = vadd.f32 %v1579_v51, %v1552_v58  ;;  %v2306_v21 = vld [vmem:[%s4184_s13 + $0x130] sm:$0xff]  ;;  %s4208_s13 = sld [smem:[#allocation25_spill]] }
 0x7ed   :  { %v1608_v0 = vadd.f32 %v1607_v46, %v1580_v1 }
 0x7f0   :  { %v1675_v14 = vpop.permute.xlu0 %1674  ;;  %v1696_v34 = vpop.permute.xlu1 %1695 }
 0x7f1   :  { %v1698_v20 = vmul.f32 %v2304_v5, %v1696_v34  ;;  %v1677_v23 = vmul.f32 %v2301_v22, %v1675_v14  ;;  %v1635_v5 = vmul.f32 %v2295_v29, %v3665_v8  ;;  %v1726_v34 = vmul.f32 %v2308_v59, %v1724_v49  ;;  %v1717_v35 = vpop.permute.xlu2 %1716 }
 0x7f2   :  { %v1656_v8 = vmul.f32 %v2298_v16, %v3651_v48 }
 0x7f3   :  { %v1699_v55 = vadd.f32 %v1698_v20, %v1671_v52  ;;  %v1678_v2 = vadd.f32 %v1677_v23, %v1650_v50  ;;  %v1636_v27 = vadd.f32 %v1635_v5, %v1608_v0  ;;  %v1663_v20 = vmul.f32 %v2299_v18, %v3682_v33  ;;  %v1731_v33 = vld [vmem:[%s4189_s17] sm:$0xff] }
 0x7f4   :  { %v1657_v58 = vadd.f32 %v1656_v8, %v1629_v6  ;;  %v1719_v23 = vmul.f32 %v2307_v56, %v1717_v35 }
 0x7f5   :  { %v1727_v9 = vadd.f32 %v1726_v34, %v1699_v55  ;;  %v1664_v4 = vadd.f32 %v1663_v20, %v1636_v27 }
 0x7f8   :  { %v1682_v13 = vpop.permute.xlu0 %1681  ;;  %v1703_v14 = vpop.permute.xlu1 %1702 }
 0x7f9   :  { %v1705_v62 = vmul.f32 %v2305_v19, %v1703_v14  ;;  %v1684_v22 = vmul.f32 %v2302_v47, %v1682_v13 }
 0x7fb   :  { %v1706_v57 = vadd.f32 %v1705_v62, %v1678_v2  ;;  %v1685_v39 = vadd.f32 %v1684_v22, %v1657_v58 }
 0x7fd   :  { %v1728_v31 = vadd.f32 %v1727_v9, %v1706_v57 }
 0x800   :  { %v1689_v48 = vpop.permute.xlu0 %1688  ;;  %v1710_v36 = vpop.permute.xlu1 %1709 }
 0x801   :  { %v1691_v52 = vmul.f32 %v2303_v17, %v1689_v48  ;;  %v1712_v49 = vmul.f32 %v2306_v21, %v1710_v36 }
 0x803   :  { %v1692_v51 = vadd.f32 %v1691_v52, %v1664_v4  ;;  %v1713_v12 = vadd.f32 %v1712_v49, %v1685_v39 }
 0x805   :  { %v1720_v29 = vadd.f32 %v1719_v23, %v1692_v51  ;;  %v1729_v59 = vadd.f32 %v1728_v31, %v1713_v12 }
 0x807   :  { %v1730_v19 = vadd.f32 %v1729_v59, %v1720_v29 }
 0x809   :  { %1750 = vmatpush.msra.mxu1 %v1730_v19 }
 0x80a   :  { %2309 = vmatmul.msk.f32.vlgmr.msra.gmra.mxu1 %vm4190_vm7, %v1731_v33  ;;  %vm4198_vm7 = vcmask 1043456  }
 0x887   :  { %v1752_v46 = vpop.f32.mrf.mxu1 }
 0x888   :  { %1755 = vadd.xlane.f32.xlu0 %v1752_v46  ;;  %v1757_v61 = vmul.f32 %v1752_v46, %v1752_v46 }
 0x88a   :  { %1758 = vadd.xlane.f32.xlu1 %v1757_v61 }
 0x8fb   :  { %v1756_v50 = vpop.xlane.xlu0 %1755 }
 0x8fc   :  { %v1760_v55 = vmul.f32 0.0078125, %v1756_v50 }
 0x8fd   :  { %v1759_v41 = vpop.xlane.xlu1 %1758 }
 0x8fe   :  { %v1762_v1 = vmul.f32 %v1760_v55, %v1760_v55  ;;  %v1761_v13 = vmul.f32 0.0078125, %v1759_v41  ;;  %v1765_v9 = vsub.f32 %v1752_v46, %v1760_v55 }
 0x900   :  { %v1763_v14 = vsub.f32 %v1761_v13, %v1762_v1 }
 0x902   :  { %v1764_v5 = vmax.f32 %v1763_v14, 0.0 }
 0x904   :  { %v1766_v34 = vadd.f32 1e-05, %v1764_v5 }
 0x906   :  { %2412 = vrsqrt.f32 %v1766_v34  ;;  %vm1773_vm12 = vweird.f32 %v1766_v34 }
 0x90c   :  { %v2413_v2 = vpop.eup %2412 }
 0x90d   :  { %v1768_v62 = vmul.f32 %v2413_v2, %v1766_v34  ;;  %vm1774_vm9 = vweird.f32 %v2413_v2 }
 0x90e   :  { %vm1775_vm6 = vmor %vm1773_vm12, %vm1774_vm9 }
 0x90f   :  { %v1769_v16 = vmul.f32 %v2413_v2, %v1768_v62  ;;  %vm4199_vm9 = vmmov %vm4198_vm7 }
 0x910   :  { %vm4202_vm12 = vmmov %vm4198_vm7 }
 0x911   :  { %v1770_v47 = vmul.f32 0.5, %v1769_v16 }
 0x913   :  { %v1771_v0 = vsub.f32 1.5, %v1770_v47 }
 0x915   :  { %v1772_v6 = vmul.f32 %v2413_v2, %v1771_v0 }
 0x917   :  { %v1776_v57 = vsel %vm1775_vm6, %v2413_v2, %v1772_v6  ;;  %vm4203_vm6 = vmmov %vm4198_vm7 }
 0x918   :  { %v3758_v18 = vmul.f32 %v1776_v57, %v1765_v9 }
 0x91a   :  { %v1778_v8 = vmax.f32 %v3758_v18, 0.0 }
 0x91c   :  { %1837 = vrot.lane.b32.xlu1 %v1778_v8, %s4169_s14  ;;  %1816 = vrot.lane.b32.xlu0 %v1778_v8, %s4149_s8 }
 0x91d   :  { %1781 = vrot.lane.b32.xlu2 %v1778_v8, %s4127_s6 }
 0x924   :  { %1865 = vrot.lane.b32.xlu1 %v1778_v8, %s4128_s26  ;;  %1844 = vrot.lane.b32.xlu0 %v1778_v8, %s4129_s30  ;;  %s4191_s26 = smov 120   ;;  %s4192_s30 = smov 2  }
 0x925   :  { %1787 = vrot.lane.b32.xlu2 %v1778_v8, %s4130_s27 }
 0x92c   :  { %1872 = vrot.lane.b32.xlu1 %v1778_v8, %s4131_s28  ;;  %1851 = vrot.lane.b32.xlu0 %v1778_v8, %s4132_s29  ;;  %s4196_s28 = sld [smem:[#allocation20_spill]] }
 0x92d   :  { %1809 = vrot.lane.b32.xlu2 %v1778_v8, %s4133_s5 }
 0x932   :  { %v1779_v52 = vld [vmem:[%s4196_s28] sm:$0xf]  ;;  %v2313_v23 = vld [vmem:[%s4196_s28 + $0x10] sm:$0xf]  ;;  %v2314_v46 = vld [vmem:[%s4196_s28 + $0x14] sm:$0xf] }
 0x933   :  { %v2317_v51 = vld [vmem:[%s4196_s28 + $0x20] sm:$0xf]  ;;  %v2321_v29 = vld [vmem:[%s4196_s28 + $0x30] sm:$0xf]  ;;  %v1805_v59 = vmul.f32 %v2313_v23, %v1778_v8  ;;  %v2310_v1 = vld [vmem:[%s4196_s28 + $0x4] sm:$0xf] }
 0x934   :  { %1879 = vrot.lane.b32.xlu1 %v1778_v8, %s4134_s1  ;;  %1914 = vrot.lane.b32.xlu0 %v1778_v8, %s4135_s25  ;;  %v2325_v50 = vld [vmem:[%s4196_s28 + $0x40] sm:$0xf]  ;;  %v2318_v13 = vld [vmem:[%s4196_s28 + $0x24] sm:$0xf] }
 0x935   :  { %1830 = vrot.lane.b32.xlu2 %v1778_v8, %s4136_s24  ;;  %v2322_v62 = vld [vmem:[%s4196_s28 + $0x34] sm:$0xf]  ;;  %v2329_v6 = vld [vmem:[%s4196_s28 + $0x50] sm:$0xf] }
 0x93c   :  { %1942 = vrot.lane.b32.xlu1 %v1778_v8, %s4137_s0  ;;  %1921 = vrot.lane.b32.xlu0 %v1778_v8, %s4138_s22 }
 0x93d   :  { %1793 = vrot.lane.b32.xlu2 %v1778_v8, %s4139_s23 }
 0x944   :  { %1935 = vrot.lane.b32.xlu1 %v1778_v8, %s4172_s4  ;;  %1928 = vrot.lane.b32.xlu0 %v1778_v8, %s4141_s3  ;;  %s4193_s3 = smov 126  }
 0x945   :  { %1858 = vrot.lane.b32.xlu2 %v1778_v8, %s4142_s2  ;;  %s4194_s2 = smov 122  }
 0x94c   :  { %1350 = vrot.lane.b32.xlu1 %v3560_v30, %s4127_s6  ;;  %s4195_s6 = smov 118  }
 0x94d   :  { %1799 = vrot.lane.b32.xlu2 %v1778_v8, %s4143_s19 }
 0x954   :  { %1355 = vrot.lane.b32.xlu1 %v3560_v30, %s4130_s27  ;;  %s4204_s27 = sld [smem:[#allocation27_spill]] }
 0x955   :  { %1823 = vrot.lane.b32.xlu2 %v1778_v8, %s4191_s26 }
 0x95c   :  { %1362 = vrot.lane.b32.xlu1 %v3560_v30, %s4139_s23  ;;  %s4207_s23 = sld [smem:[#allocation23_spill]] }
 0x95d   :  { %1886 = vrot.lane.b32.xlu2 %v1778_v8, %s4192_s30  ;;  %s4197_s30 = sld [smem:[#allocation21_spill]] }
 0x964   :  { %1369 = vrot.lane.b32.xlu1 %v3560_v30, %s4143_s19 }
 0x965   :  { %1893 = vrot.lane.b32.xlu2 %v1778_v8, %s4193_s3 }
 0x96c   :  { %1379 = vrot.lane.b32.xlu1 %v3560_v30, %s4133_s5  ;;  %s4205_s5 = sld [smem:[#allocation26_spill]] }
 0x96d   :  { %1900 = vrot.lane.b32.xlu2 %v1778_v8, %s4194_s2  ;;  %s4200_s2 = sld [smem:[#allocation24_spill]] }
 0x974   :  { %1400 = vrot.lane.b32.xlu1 %v3560_v30, %s4136_s24  ;;  %s4206_s24 = sld [smem:[#allocation22_spill]] }
 0x975   :  { %1907 = vrot.lane.b32.xlu2 %v1778_v8, %s4195_s6 }
 0x977   :  { %v1782_v27 = vpop.permute.xlu2 %1781 }
 0x978   :  { %v1784_v12 = vmul.f32 %v1782_v27, %v1779_v52  ;;  %v2311_v27 = vld [vmem:[%s4196_s28 + $0x8] sm:$0xf]  ;;  %v2330_v52 = vld [vmem:[%s4196_s28 + $0x54] sm:$0xf] }
 0x97a   :  { %v1806_v55 = vadd.f32 %v1805_v59, %v1784_v12  ;;  %v2418_v15 = vld [vmem:[%s4206_s24 + $0x8] ss:$0 sm:$0xff] }
 0x97f   :  { %v1788_v22 = vpop.permute.xlu2 %1787 }
 0x980   :  { %v1790_v16 = vmul.f32 %v2310_v1, %v1788_v22  ;;  %v2319_v1 = vld [vmem:[%s4196_s28 + $0x28] sm:$0xf] }
 0x987   :  { %v1810_v31 = vpop.permute.xlu2 %1809 }
 0x988   :  { %v1812_v5 = vmul.f32 %v2314_v46, %v1810_v31  ;;  %v2326_v31 = vld [vmem:[%s4196_s28 + $0x44] sm:$0xf]  ;;  %v2316_v46 = vld [vmem:[%s4196_s28 + $0x1c] sm:$0xf] }
 0x98a   :  { %v1813_v9 = vadd.f32 %v1812_v5, %v1790_v16 }
 0x98e   :  { %v1838_v21 = vpop.permute.xlu1 %1837  ;;  %v1817_v20 = vpop.permute.xlu0 %1816 }
 0x98f   :  { %v1831_v17 = vpop.permute.xlu2 %1830  ;;  %v1840_v47 = vmul.f32 %v2318_v13, %v1838_v21  ;;  %v2315_v21 = vld [vmem:[%s4196_s28 + $0x18] sm:$0xf] }
 0x990   :  { %v1833_v19 = vmul.f32 %v2317_v51, %v1831_v17  ;;  %v2323_v13 = vld [vmem:[%s4196_s28 + $0x38] sm:$0xf] }
 0x991   :  { %v1841_v17 = vadd.f32 %v1840_v47, %v1813_v9 }
 0x992   :  { %v1834_v34 = vadd.f32 %v1833_v19, %v1806_v55 }
 0x996   :  { %v1866_v56 = vpop.permute.xlu1 %1865  ;;  %v1845_v48 = vpop.permute.xlu0 %1844 }
 0x997   :  { %v1794_v35 = vpop.permute.xlu2 %1793  ;;  %v1868_v57 = vmul.f32 %v2322_v62, %v1866_v56  ;;  %v2333_v56 = vld [vmem:[%s4196_s28 + $0x60] sm:$0xf]  ;;  %v1847_v62 = vmul.f32 %v2319_v1, %v1845_v48  ;;  %v2331_v48 = vld [vmem:[%s4196_s28 + $0x58] sm:$0xf] }
 0x999   :  { %v1869_v12 = vadd.f32 %v1868_v57, %v1841_v17  ;;  %v2324_v17 = vld [vmem:[%s4196_s28 + $0x3c] sm:$0xf] }
 0x99e   :  { %v1873_v39 = vpop.permute.xlu1 %1872  ;;  %v3797_v4 = vpop.permute.xlu0 %1851 }
 0x99f   :  { %v1859_v58 = vpop.permute.xlu2 %1858  ;;  %v1875_v16 = vmul.f32 %v2323_v13, %v1873_v39 }
 0x9a0   :  { %v1861_v41 = vmul.f32 %v2321_v29, %v1859_v58  ;;  %v1796_v29 = vmul.f32 %v2311_v27, %v1794_v35  ;;  %v2312_v35 = vld [vmem:[%s4196_s28 + $0xc] sm:$0xf] }
 0x9a2   :  { %v1862_v0 = vadd.f32 %v1861_v41, %v1834_v34 }
 0x9a6   :  { %v3811_v33 = vpop.permute.xlu1 %1879  ;;  %v1915_v61 = vpop.permute.xlu0 %1914 }
 0x9a7   :  { %v1800_v36 = vpop.permute.xlu2 %1799  ;;  %v1917_v58 = vmul.f32 %v2329_v6, %v1915_v61  ;;  %v1819_v61 = vmul.f32 %v2315_v21, %v1817_v20  ;;  %v2327_v20 = vld [vmem:[%s4196_s28 + $0x48] sm:$0xf]  ;;  %v2320_v6 = vld [vmem:[%s4196_s28 + $0x2c] sm:$0xf]  ;;  %v1882_v21 = vmul.f32 %v2324_v17, %v3811_v33  ;;  %v1950_v33 = vld [vmem:[%s4197_s30] sm:$0xf] }
 0x9a8   :  { %v1802_v47 = vmul.f32 %v2312_v35, %v1800_v36 }
 0x9ae   :  { %v1943_v22 = vpop.permute.xlu1 %1942  ;;  %v1922_v23 = vpop.permute.xlu0 %1921 }
 0x9af   :  { %v1824_v49 = vpop.permute.xlu2 %1823  ;;  %v1924_v55 = vmul.f32 %v2330_v52, %v1922_v23 }
 0x9b0   :  { %v1826_v5 = vmul.f32 %v2316_v46, %v1824_v49  ;;  %v1854_v49 = vmul.f32 %v2320_v6, %v3797_v4  ;;  %v2332_v4 = vld [vmem:[%s4196_s28 + $0x5c] sm:$0xf] }
 0x9b6   :  { %v1929_v36 = vpop.permute.xlu0 %1928  ;;  %v1936_v52 = vpop.permute.xlu1 %1935 }
 0x9b7   :  { %v1887_v14 = vpop.permute.xlu2 %1886 }
 0x9b8   :  { %v1889_v2 = vmul.f32 %v2325_v50, %v1887_v14  ;;  %v1945_v50 = vmul.f32 %v2333_v56, %v1943_v22  ;;  %v1820_v14 = vadd.f32 %v1819_v61, %v1796_v29  ;;  %v2328_v22 = vld [vmem:[%s4196_s28 + $0x4c] sm:$0xf]  ;;  %v1931_v56 = vmul.f32 %v2331_v48, %v1929_v36 }
 0x9ba   :  { %v1890_v8 = vadd.f32 %v1889_v2, %v1862_v0  ;;  %v1848_v57 = vadd.f32 %v1847_v62, %v1820_v14 }
 0x9bc   :  { %v1918_v59 = vadd.f32 %v1917_v58, %v1890_v8  ;;  %v1827_v8 = vadd.f32 %v1826_v5, %v1802_v47 }
 0x9be   :  { %v1946_v34 = vadd.f32 %v1945_v50, %v1918_v59  ;;  %v1855_v39 = vadd.f32 %v1854_v49, %v1827_v8  ;;  %v1938_v59 = vmul.f32 %v2332_v4, %v1936_v52  ;;  %v1351_v14 = vpop.permute.xlu1 %1350 }
 0x9bf   :  { %v1894_v51 = vpop.permute.xlu2 %1893  ;;  %v1354_v17 = vmul.f32 %v1351_v14, %v365_v38 }
 0x9c0   :  { %v1896_v19 = vmul.f32 %v2326_v31, %v1894_v51  ;;  %v1876_v31 = vadd.f32 %v1875_v16, %v1848_v57 }
 0x9c2   :  { %v1897_v41 = vadd.f32 %v1896_v19, %v1869_v12  ;;  %v1883_v12 = vadd.f32 %v1882_v21, %v1855_v39 }
 0x9c4   :  { %v1925_v2 = vadd.f32 %v1924_v55, %v1897_v41  ;;  %v2046_v55 = vrot.slane %v3758_v18, 4  ;;  %v3888_v41 = vld [vmem:[%s4200_s2 + $0x8] sm:$0xff] }
 0x9c5   :  { %2268 = vmatmul.msk.f32.gmra.mxu0 %vm646_vm5, %v3888_v41  ;;  %2345 = vmatmul.msk.f32.gmra.mxu3 %vm646_vm5, %v3888_v41 }
 0x9c6   :  { %v1947_v0 = vadd.f32 %v1946_v34, %v1925_v2  ;;  %v1356_v5 = vpop.permute.xlu1 %1355  ;;  %v3905_v2 = vpop.f32.mrf.mxu3 }
 0x9c7   :  { %v1901_v9 = vpop.permute.xlu2 %1900  ;;  %v1358_v36 = vsel %vm3406_vm13, %v1356_v5, %v3560_v30 }
 0x9c8   :  { %v1903_v27 = vmul.f32 %v2327_v20, %v1901_v9 }
 0x9ca   :  { %v1904_v58 = vadd.f32 %v1903_v27, %v1876_v31  ;;  %v2044_v27 = vld [vmem:[%s4205_s5] sm:$0x3] }
 0x9cc   :  { %v1932_v51 = vadd.f32 %v1931_v56, %v1904_v58 }
 0x9ce   :  { %v1948_v46 = vadd.f32 %v1947_v0, %v1932_v51  ;;  %v1363_v34 = vpop.permute.xlu1 %1362 }
 0x9cf   :  { %v1908_v23 = vpop.permute.xlu2 %1907  ;;  %v1367_v48 = vmul.f32 %v1363_v34, %v385_v42  ;;  %v1365_v38 = vsel %vm3425_vm3, %v1363_v34, %v3560_v30 }
 0x9d0   :  { %v1910_v29 = vmul.f32 %v2328_v22, %v1908_v23 }
 0x9d2   :  { %v1911_v19 = vadd.f32 %v1910_v29, %v1883_v12 }
 0x9d4   :  { %v1939_v61 = vadd.f32 %v1938_v59, %v1911_v19 }
 0x9d6   :  { %v1949_v50 = vadd.f32 %v1948_v46, %v1939_v61  ;;  %v1370_v47 = vpop.permute.xlu1 %1369 }
 0x9d7   :  { %v1374_v22 = vmul.f32 %v1370_v47, %v395_v45  ;;  %v1372_v60 = vsel %vm3440_vm8, %v1370_v47, %v3560_v30  ;;  %v2419_v47 = vld [vmem:[%s4207_s23] ss:$0 sm:$0xff]  ;;  %vm4209_vm8 = vmmov %vm4203_vm6 }
 0x9d8   :  { %2334 = vmatpush.msk.msra.mxu2 %vm4198_vm7, %v1949_v50 }
 0x9d9   :  { %2335 = vmatmul.msk.f32.vlgmr.msra.gmra.mxu2 %vm807_vm10, %v1950_v33 }
 0x9da   :  { %2341 = vmatpush.msk.msrb.mxu2 %vm4199_vm9, %v2046_v55 }
 0x9de   :  { %v1380_v21 = vpop.permute.xlu1 %1379 }
 0x9df   :  { %v1384_v51 = vmul.f32 %v1380_v21, %v409_v3  ;;  %v1382_v32 = vsel %vm3466_vm11, %v1380_v21, %v3560_v30  ;;  %vm4210_vm11 = vmmov %vm4203_vm6 }
 0x9e1   :  { %2342 = vmatmul.msk.f32.vlgmr.msrb.gmra.mxu2 %vm807_vm10, %v2044_v27  ;;  %v2016_v27 = vld [vmem:[%s4208_s13] sm:$0x3] }
 0x9e6   :  { %v1401_v61 = vpop.permute.xlu1 %1400 }
 0x9e7   :  { %v1403_v11 = vsel %vm3508_vm2, %v1401_v61, %v3560_v30 }
 0xa42   :  { %v1341_v20 = vpop.f32.mrf.mxu0 }
 0xa43   :  { %v1345_v62 = vadd.f32 %v1341_v20, %v3905_v2 }
 0xa45   :  { %v3910_v16 = vmul.f32 %v1346_v26, %v1345_v62  ;;  %v1360_v26 = vmul.f32 %v1356_v5, %v375_v25  ;;  %v1353_v25 = vsel %vm3414_vm1, %v1351_v14, %v3560_v30 }
 0xa46   :  { %v1359_v42 = vmax.f32 %v1353_v25, %v1358_v36 }
 0xa47   :  { %2159 = vst [vmem:[%s4204_s27 + $0x8] sm:$0xff] %v3910_v16  ;;  %v1361_v58 = vadd.f32 %v1360_v26, %v1354_v17 }
 0xa48   :  { %v1366_v4 = vmax.f32 %v1359_v42, %v1365_v38 }
 0xa49   :  { %v1368_v56 = vadd.f32 %v1367_v48, %v1361_v58 }
 0xa4a   :  { %v1373_v45 = vmax.f32 %v1366_v4, %v1372_v60  ;;  %v2006_v60 = vstv %s2337_s15 }
 0xa4b   :  { %v1375_v52 = vadd.f32 %v1374_v22, %v1368_v56 }
 0xa4c   :  { %v1376_v19 = vmax.f32 %v1373_v45, %v3560_v30  ;;  %v2013_v45 = vstv %s2338_s21 }
 0xa4d   :  { %v1378_v12 = vadd.f32 %v1377_v7, %v1375_v52  ;;  %v2003_v52 = vstv %s2336_s18 }
 0xa4e   :  { %v1383_v33 = vmax.f32 %v1376_v19, %v1382_v32 }
 0xa4f   :  { %v1385_v46 = vadd.f32 %v1384_v51, %v1378_v12  ;;  %v2014_v12 = vmul.f32 %v2013_v45, %v3560_v30 }
 0xa5c   :  { %v3894_v1 = vpop.f32.mrf.mxu2 }
 0xa5d   :  { %v1977_v18 = vsel %vm4202_vm12, %v3894_v1, 0.0  ;;  %v1980_v13 = vmul.f32 %v3894_v1, %v3894_v1 }
 0xa5e   :  { %1978 = vadd.xlane.f32.xlu2 %v1977_v18 }
 0xa5f   :  { %v1981_v35 = vsel %vm4203_vm6, %v1980_v13, 0.0  ;;  %v1405_v13 = vmul.f32 %v2418_v15, %v1401_v61  ;;  %v2420_v61 = vld [vmem:[%s4200_s2] sm:$0xff] }
 0xa60   :  { %1982 = vadd.xlane.f32.xlu0 %v1981_v35 }
 0xa64   :  { %v2069_v32 = vpop.f32.mrf.mxu2 }
 0xa74   :  { %1393 = vrot.lane.b32.xlu0 %v3560_v30, %s4191_s26 }
 0xa76   :  { %1386 = vrot.lane.b32.xlu2 %v3560_v30, %s4149_s8 }
 0xad1   :  { %v1979_v0 = vpop.xlane.xlu2 %1978 }
 0xad2   :  { %v1984_v6 = vmul.f32 0.0078125, %v1979_v0 }
 0xad3   :  { %v1983_v9 = vpop.xlane.xlu0 %1982 }
 0xad4   :  { %v1986_v57 = vmul.f32 %v1984_v6, %v1984_v6  ;;  %v1985_v8 = vmul.f32 0.0078125, %v1983_v9  ;;  %v1989_v10 = vsub.f32 %v3894_v1, %v1984_v6 }
 0xad6   :  { %v1987_v31 = vsub.f32 %v1985_v8, %v1986_v57 }
 0xad8   :  { %v1988_v49 = vmax.f32 %v1987_v31, 0.0 }
 0xad9   :  { %v1387_v23 = vpop.permute.xlu2 %1386 }
 0xada   :  { %v1990_v39 = vadd.f32 1e-05, %v1988_v49  ;;  %v1391_v59 = vmul.f32 %v1387_v23, %v419_v63  ;;  %v1389_v44 = vsel %vm3483_vm14, %v1387_v23, %v3560_v30  ;;  %vm4211_vm14 = vmmov %vm4203_vm6 }
 0xadb   :  { %v1390_v28 = vmax.f32 %v1383_v33, %v1389_v44 }
 0xadc   :  { %2414 = vrsqrt.f32 %v1990_v39  ;;  %v1392_v18 = vadd.f32 %v1391_v59, %v1385_v46  ;;  %vm1997_vm1 = vweird.f32 %v1990_v39 }
 0xae2   :  { %v2415_v37 = vpop.eup %2414 }
 0xae3   :  { %v1992_v29 = vmul.f32 %v2415_v37, %v1990_v39  ;;  %vm1998_vm13 = vweird.f32 %v2415_v37 }
 0xae4   :  { %vm1999_vm3 = vmor %vm1997_vm1, %vm1998_vm13 }
 0xae5   :  { %v1993_v50 = vmul.f32 %v2415_v37, %v1992_v29 }
 0xae6   :  { %v1394_v3 = vpop.permute.xlu0 %1393 }
 0xae7   :  { %v1994_v55 = vmul.f32 0.5, %v1993_v50  ;;  %v1398_v63 = vmul.f32 %v1394_v3, %v429_v53  ;;  %v1396_v35 = vsel %vm3493_vm15, %v1394_v3, %v3560_v30  ;;  %v2093_v50 = vpop.f32.mrf.mxu3  ;;  %v2101_v3 = vstv %s2262_s11 }
 0xae8   :  { %v1397_v20 = vmax.f32 %v1390_v28, %v1396_v35  ;;  %v2099_v44 = vadd.f32 %v2093_v50, %v3554_v24 }
 0xae9   :  { %v1995_v14 = vsub.f32 1.5, %v1994_v55  ;;  %v1399_v5 = vadd.f32 %v1398_v63, %v1392_v18  ;;  %v2153_v55 = vstv %s2263_s7 }
 0xaea   :  { %v1404_v57 = vmax.f32 %v1397_v20, %v1403_v11  ;;  %v2102_v63 = vmul.f32 %v2101_v3, %v2099_v44 }
 0xaeb   :  { %v1996_v34 = vmul.f32 %v2415_v37, %v1995_v14  ;;  %v1406_v62 = vadd.f32 %v1405_v13, %v1399_v5 }
 0xaed   :  { %v2000_v53 = vsel %vm1999_vm3, %v2415_v37, %v1996_v34  ;;  %v1407_v0 = vmul.f32 %v2419_v47, %v1406_v62 }
 0xaee   :  { %v2001_v9 = vmul.f32 %v2000_v53, %v1989_v10 }
 0xaef   :  { %v1409_v8 = vrot.slane %v1407_v0, 6  ;;  %v2096_v13 = vpop.f32.mrf.mxu3 }
 0xaf0   :  { %2339 = vmatpush.msk.msrb.mxu1 %vm4209_vm8, %v2001_v9  ;;  %v2100_v28 = vadd.f32 %v2096_v13, %v3905_v2 }
 0xaf1   :  { %v1411_v1 = vsel %vm451_vm4, %v1404_v57, %v1409_v8  ;;  %2340 = vmatmul.msk.f32.vlgmr.msrb.gmra.mxu1 %vm807_vm10, %v2016_v27 }
 0xaf2   :  { %2144 = vmatpush.msra.mxu1 %v3910_v16  ;;  %v1412_v6 = vsel %vm4210_vm11, %v1411_v1, 0.0  ;;  %v1415_v31 = vmul.f32 %v1411_v1, %v1411_v1  ;;  %v2103_v34 = vmul.f32 %v2101_v3, %v2100_v28 }
 0xaf3   :  { %1413 = vadd.xlane.f32.xlu1 %v1412_v6 }
 0xaf4   :  { %2145 = vmatpush.msra.mxu1 %v3560_v30  ;;  %v1416_v54 = vsel %vm4211_vm14, %v1415_v31, 0.0 }
 0xaf5   :  { %1417 = vadd.xlane.f32.xlu0 %v1416_v54 }
 0xaf9   :  { %2349 = vmatmul.msk.f32.vlgmr.msra.gmra.mxu1 %vm277_vm0, %v3531_v40 }
 0xb01   :  { %2350 = vmatmul.msk.f32.gmra.mxu1 %vm277_vm0, %v3544_v43 }
 0xb66   :  { %v1414_v16 = vpop.xlane.xlu1 %1413 }
 0xb67   :  { %v1419_v26 = vmul.f32 0.0078125, %v1414_v16 }
 0xb68   :  { %v1418_v49 = vpop.xlane.xlu0 %1417 }
 0xb69   :  { %v1421_v17 = vmul.f32 %v1419_v26, %v1419_v26  ;;  %v1420_v48 = vmul.f32 0.0078125, %v1418_v49  ;;  %v1424_v43 = vsub.f32 %v1411_v1, %v1419_v26 }
 0xb6b   :  { %v1422_v36 = vsub.f32 %v1420_v48, %v1421_v17 }
 0xb6d   :  { %v1423_v39 = vmax.f32 %v1422_v36, 0.0 }
 0xb6e   :  { %v2040_v29 = vpop.f32.mrf.mxu1 }
 0xb6f   :  { %v1425_v58 = vadd.f32 1e-05, %v1423_v39 }
 0xb71   :  { %2416 = vrsqrt.f32 %v1425_v58  ;;  %vm1432_vm0 = vweird.f32 %v1425_v58 }
 0xb76   :  { %v2147_v30 = vpop.f32.mrf.mxu1 }
 0xb77   :  { %v2417_v22 = vpop.eup %2416 }
 0xb78   :  { %v1427_v21 = vmul.f32 %v2417_v22, %v1425_v58  ;;  %vm1433_vm15 = vweird.f32 %v2417_v22 }
 0xb79   :  { %vm1434_vm2 = vmor %vm1432_vm0, %vm1433_vm15 }
 0xb7a   :  { %v1428_v25 = vmul.f32 %v2417_v22, %v1427_v21 }
 0xb7c   :  { %v1429_v38 = vmul.f32 0.5, %v1428_v25 }
 0xb7e   :  { %v1430_v42 = vsub.f32 1.5, %v1429_v38  ;;  %v2150_v14 = vpop.f32.mrf.mxu1 }
 0xb80   :  { %v1431_v40 = vmul.f32 %v2417_v22, %v1430_v42 }
 0xb82   :  { %v1435_v56 = vsel %vm1434_vm2, %v2417_v22, %v1431_v40 }
 0xb83   :  { %v1436_v4 = vmul.f32 %v1435_v56, %v1424_v43 }
 0xb85   :  { %v2007_v23 = vmul.f32 %v2006_v60, %v1436_v4  ;;  %v2004_v7 = vmul.f32 %v2003_v52, %v1436_v4 }
 0xb87   :  { %v2009_v51 = vrot.slane %v2007_v23, 2 }
 0xb89   :  { %v2011_v37 = vadd.f32 %v2009_v51, %v2004_v7 }
 0xb8b   :  { %v2015_v59 = vadd.f32 %v2014_v12, %v2011_v37 }
 0xb8d   :  { %v2043_v19 = vadd.f32 %v2040_v29, %v2015_v59 }
 0xb8f   :  { %v2072_v46 = vadd.f32 %v2069_v32, %v2043_v19 }
 0xb91   :  { %2346 = vmatpush.msk.msrb.mxu0 %vm451_vm4, %v2072_v46 }
 0xb92   :  { %2347 = vmatmul.msk.f32.vlgmr.msrb.gmra.mxu0 %vm646_vm5, %v2420_v61 }
 0xb9a   :  { %2348 = vmatmul.msk.f32.gmra.mxu0 %vm646_vm5, %v3888_v41 }
 0xc0f   :  { %v2124_v33 = vpop.f32.mrf.mxu0 }
 0xc10   :  { %v2148_v18 = vadd.f32 %v2147_v30, %v2124_v33 }
 0xc12   :  { %v2154_v15 = vmul.f32 %v2153_v55, %v2148_v18 }
 0xc14   :  { %v2156_v35 = vadd.f32 %v2154_v15, %v2102_v63 }
 0xc16   :  { %2160 = vst [vmem:[%s4204_s27 + $0x10] sm:$0xff] %v2156_v35 }
 0xc17   :  { %v2127_v41 = vpop.f32.mrf.mxu0 }
 0xc18   :  { %v2151_v5 = vadd.f32 %v2150_v14, %v2127_v41 }
 0xc1a   :  { %v2155_v20 = vmul.f32 %v2153_v55, %v2151_v5 }
 0xc1c   :  { %v2157_v24 = vadd.f32 %v2155_v20, %v2103_v34 }
 0xc1e   :  { %2161 = vst [vmem:[%s4204_s27 + $0x18] sm:$0xff] %v2157_v24 }
 0xc1f   :  { %2166 = vsyncpa [#allocation3], 1 }
 0xc20   :  { %2167 = vsyncpa [#allocation4], 1 }
 0xc21   :  { %2168 = vsyncpa [#allocation6], 1 }

</bundles_post_ra>
